<compile_context>
chip_gen: v6e
topology: v6e:2x2x1
jax: 0.10.0
libtpu: 0.0.40
codegen_flags: <defaults>
</compile_context>

<pallas_src>
import jax
import jax.numpy as jnp
from jax.experimental import pallas as pl
from jax.experimental.pallas import tpu as pltpu


# ---------------------------------------------------------------------------
# Fused kernel: point MLP + running max over points + FC head.
# grid = (B // block_b, P // block_p); point-tile axis last ("arbitrary").
# ---------------------------------------------------------------------------
def tnet_fused_kernel(x_ref, w1_ref, t1_ref, w2_ref, t2_ref, w3_ref, t3_ref,
                      wf1_ref, tf1_ref, wf2_ref, tf2_ref, wh_ref, be_ref,
                      o_ref, g_acc):
    pk = pl.program_id(1)
    bt, pt, d = x_ref.shape

    @pl.when(pk == 0)
    def _():
        g_acc[...] = jnp.full(g_acc.shape, -jnp.inf, dtype=g_acc.dtype)

    # Pack block_b * block_p points into one tall LHS (layout-free reshape:
    # collapsing the two leading dims, block_p % 8 == 0).  Rows are b-major.
    xb = x_ref[...].reshape(bt * pt, d)                            # (rows, D)

    # BN scale folded into weight columns; bf16 matmul inputs, f32 accumulate,
    # shift + ReLU in f32 (v5e-friendly).
    h = jnp.dot(xb, w1_ref[...], preferred_element_type=jnp.float32)
    h = jnp.maximum(h + t1_ref[...], 0.0)                          # (rows, 64)
    h = jnp.dot(h.astype(jnp.bfloat16), w2_ref[...],
                preferred_element_type=jnp.float32)
    h = jnp.maximum(h + t2_ref[...], 0.0)                          # (rows, 128)
    h = jnp.dot(h.astype(jnp.bfloat16), w3_ref[...],
                preferred_element_type=jnp.float32)                # (rows, 1024)

    # Layer-3 bias+ReLU hoisted past the max: accumulate the RAW matmul-3
    # maxima (exact: relu(x + c) is monotone in x).  One vectorized segment
    # max + one full-block accumulator store per step.
    seg_max = jnp.max(h.reshape(bt, pt, 1024), axis=1)             # (bt, 1024)
    g_acc[...] = jnp.maximum(g_acc[...], seg_max)

    # Finalize: apply the hoisted bias+ReLU, then the FC head, once per batch
    # block on the resident accumulator.
    @pl.when(pk == pl.num_programs(1) - 1)
    def _():
        g = jnp.maximum(g_acc[...] + t3_ref[...], 0.0)             # (bt, 1024)
        f = jnp.dot(g.astype(jnp.bfloat16), wf1_ref[...],
                    preferred_element_type=jnp.float32)
        f = jnp.maximum(f + tf1_ref[...], 0.0)                     # (bt, 512)
        f = jnp.dot(f.astype(jnp.bfloat16), wf2_ref[...],
                    preferred_element_type=jnp.float32)
        f = jnp.maximum(f + tf2_ref[...], 0.0)                     # (bt, 256)
        out = jnp.dot(f.astype(jnp.bfloat16), wh_ref[...],
                      preferred_element_type=jnp.float32)
        o_ref[...] = out + be_ref[...]                             # (bt, dim*dim)


# ---------------------------------------------------------------------------
# Wrapper
# ---------------------------------------------------------------------------
def _default_block(n, pref):
    """Largest multiple-of-8 divisor of n that is <= pref, else n."""
    if n % 8 != 0:
        return n
    b = min(pref, n)
    b -= b % 8
    while b >= 8:
        if n % b == 0:
            return b
        b -= 8
    return n


def tnet_forward(x, kp, dim, *, block_b=None, block_p=None):
    B, P, D = x.shape
    assert D == dim, "last axis of x must equal dim (PyTorch Conv1d constraint)"
    if block_b is None:
        # Keep >= 2 batch blocks when B allows (v7x megacore: batch axis is
        # the only parallel axis).
        block_b = _default_block(B, max(8, B // 2))
    if block_p is None:
        # Rows-per-MXU-pass cap keeps the (rows, 1024) f32 temp well inside
        # the 48 MiB scoped VMEM limit on all generations.
        block_p = _default_block(P, 512)
    assert B % block_b == 0 and P % block_p == 0
    assert block_b == B or block_b % 8 == 0
    assert block_p == P or block_p % 8 == 0

    x_bf16 = x.astype(jnp.bfloat16)

    out_flat = pl.pallas_call(
        tnet_fused_kernel,
        out_shape=jax.ShapeDtypeStruct((B, dim * dim), jnp.float32),
        grid_spec=pltpu.PrefetchScalarGridSpec(
            num_scalar_prefetch=0,
            grid=(B // block_b, P // block_p),
            in_specs=[
                pl.BlockSpec((block_b, block_p, D), lambda bk, pk: (bk, pk, 0)),
                pl.BlockSpec(kp['w1'].shape, lambda bk, pk: (0, 0)),
                pl.BlockSpec(kp['t1'].shape, lambda bk, pk: (0, 0)),
                pl.BlockSpec(kp['w2'].shape, lambda bk, pk: (0, 0)),
                pl.BlockSpec(kp['t2'].shape, lambda bk, pk: (0, 0)),
                pl.BlockSpec(kp['w3'].shape, lambda bk, pk: (0, 0)),
                pl.BlockSpec(kp['t3'].shape, lambda bk, pk: (0, 0)),
                pl.BlockSpec(kp['wf1'].shape, lambda bk, pk: (0, 0)),
                pl.BlockSpec(kp['tf1'].shape, lambda bk, pk: (0, 0)),
                pl.BlockSpec(kp['wf2'].shape, lambda bk, pk: (0, 0)),
                pl.BlockSpec(kp['tf2'].shape, lambda bk, pk: (0, 0)),
                pl.BlockSpec(kp['wh'].shape, lambda bk, pk: (0, 0)),
                pl.BlockSpec(kp['bias_eye'].shape, lambda bk, pk: (0, 0)),
            ],
            out_specs=pl.BlockSpec((block_b, dim * dim), lambda bk, pk: (bk, 0)),
            scratch_shapes=[pltpu.VMEM((block_b, 1024), jnp.float32)],
        ),
        compiler_params=pltpu.CompilerParams(
            dimension_semantics=("parallel", "arbitrary"),
            vmem_limit_bytes=48 * 1024 * 1024),
    )(x_bf16, kp['w1'], kp['t1'], kp['w2'], kp['t2'], kp['w3'], kp['t3'],
      kp['wf1'], kp['tf1'], kp['wf2'], kp['tf2'], kp['wh'], kp['bias_eye'])

    # glue: view(-1, dim, dim); identity already folded into bias_eye.
    return out_flat.reshape(B, dim, dim)


# ---------------------------------------------------------------------------
# Parameter construction (inference-mode BN folded into scale/shift, scale
# folded into the weight columns; matmul weights cast to bf16).
# ---------------------------------------------------------------------------
def _bn_fold(key, c, eps=1e-5):
    k1, k2, k3, k4 = jax.random.split(key, 4)
    gamma = 1.0 + 0.1 * jax.random.normal(k1, (c,), jnp.float32)
    beta = 0.1 * jax.random.normal(k2, (c,), jnp.float32)
    mean = 0.1 * jax.random.normal(k3, (c,), jnp.float32)
    var = jnp.abs(jax.random.normal(k4, (c,), jnp.float32)) + 0.5
    scale = gamma / jnp.sqrt(var + eps)
    shift = beta - mean * scale
    return scale.reshape(1, c), shift.reshape(1, c)


def init_params(dim, key):
    ks = jax.random.split(key, 12)
    # conv / linear weights stored transposed: (in, out)
    w1t = 0.1 * jax.random.normal(ks[0], (dim, 64), jnp.float32)
    w2t = 0.1 * jax.random.normal(ks[1], (64, 128), jnp.float32)
    w3t = 0.1 * jax.random.normal(ks[2], (128, 1024), jnp.float32)
    wf1t = 0.1 * jax.random.normal(ks[3], (1024, 512), jnp.float32)
    wf2t = 0.1 * jax.random.normal(ks[4], (512, 256), jnp.float32)
    wht = 0.1 * jax.random.normal(ks[5], (256, dim * dim), jnp.float32)
    bh = 0.1 * jax.random.normal(ks[6], (1, dim * dim), jnp.float32)

    s1, t1 = _bn_fold(ks[7], 64)
    s2, t2 = _bn_fold(ks[8], 128)
    s3, t3 = _bn_fold(ks[9], 1024)
    sf1, tf1 = _bn_fold(ks[10], 512)
    sf2, tf2 = _bn_fold(ks[11], 256)

    eye_flat = jnp.eye(dim, dtype=jnp.float32).reshape(1, dim * dim)

    return {
        'w1': (w1t * s1).astype(jnp.bfloat16), 't1': t1,
        'w2': (w2t * s2).astype(jnp.bfloat16), 't2': t2,
        'w3': (w3t * s3).astype(jnp.bfloat16), 't3': t3,
        'wf1': (wf1t * sf1).astype(jnp.bfloat16), 'tf1': tf1,
        'wf2': (wf2t * sf2).astype(jnp.bfloat16), 'tf2': tf2,
        'wh': wht.astype(jnp.bfloat16),
        'bias_eye': bh + eye_flat,   # lm_head bias + flattened identity
    }


# Pure-JAX reference with the same numerics (bf16 matmul inputs, f32 accum).
def tnet_reference(x, kp, dim):
    B = x.shape[0]
    xq = x.astype(jnp.bfloat16)
    h = jnp.maximum(jnp.einsum('bpd,dk->bpk', xq, kp['w1'],
                               preferred_element_type=jnp.float32) + kp['t1'], 0.0)
    h = jnp.maximum(jnp.einsum('bpd,dk->bpk', h.astype(jnp.bfloat16), kp['w2'],
                               preferred_element_type=jnp.float32) + kp['t2'], 0.0)
    h = jnp.maximum(jnp.einsum('bpd,dk->bpk', h.astype(jnp.bfloat16), kp['w3'],
                               preferred_element_type=jnp.float32) + kp['t3'], 0.0)
    g = jnp.max(h, axis=1)                                         # (B, 1024)
    f = jnp.maximum(jnp.dot(g.astype(jnp.bfloat16), kp['wf1'],
                            preferred_element_type=jnp.float32) + kp['tf1'], 0.0)
    f = jnp.maximum(jnp.dot(f.astype(jnp.bfloat16), kp['wf2'],
                            preferred_element_type=jnp.float32) + kp['tf2'], 0.0)
    out = jnp.dot(f.astype(jnp.bfloat16), kp['wh'],
                  preferred_element_type=jnp.float32) + kp['bias_eye']
    return out.reshape(B, dim, dim)


if __name__ == "__main__":
    key = jax.random.PRNGKey(0)
    kx, kparam = jax.random.split(key)

    dim = 4          # Tnet(dim=4)
    B = 16           # batch
    P = 64           # number of points (length axis of the kernel_size=1 Conv1d)

    # x matches the PyTorch call: (B, num_points, dim); transpose(2,1) + the
    # Conv1d(kernel_size=1)+BN+ReLU stack is a per-point MLP over `dim`.
    x = jax.random.normal(kx, (B, P, dim), jnp.float32)
    params = init_params(dim, kparam)

    # grid = (2, 2): exercises the parallel batch-block axis, the running max
    # across point tiles, and the fused FC-head finalize phase.
    out = tnet_forward(x, params, dim, block_b=8, block_p=32)
    out = jax.block_until_ready(out)

    ref = tnet_reference(x, params, dim)
    assert out.shape == (B, dim, dim)
    assert jnp.allclose(out, ref, rtol=1e-2, atol=1e-2), \
        float(jnp.max(jnp.abs(out - ref)))

    print("KERNEL_OK")
</pallas_src>

<mosaic_0001>
module attributes {stable_mosaic.version = 11 : i64} {
  func.func @tnet_fused_kernel(%arg0: i32, %arg1: i32, %arg2: memref<8x32x4xbf16, #tpu.memory_space<vmem>>, %arg3: memref<4x64xbf16, #tpu.memory_space<vmem>>, %arg4: memref<1x64xf32, #tpu.memory_space<vmem>>, %arg5: memref<64x128xbf16, #tpu.memory_space<vmem>>, %arg6: memref<1x128xf32, #tpu.memory_space<vmem>>, %arg7: memref<128x1024xbf16, #tpu.memory_space<vmem>>, %arg8: memref<1x1024xf32, #tpu.memory_space<vmem>>, %arg9: memref<1024x512xbf16, #tpu.memory_space<vmem>>, %arg10: memref<1x512xf32, #tpu.memory_space<vmem>>, %arg11: memref<512x256xbf16, #tpu.memory_space<vmem>>, %arg12: memref<1x256xf32, #tpu.memory_space<vmem>>, %arg13: memref<256x16xbf16, #tpu.memory_space<vmem>>, %arg14: memref<1x16xf32, #tpu.memory_space<vmem>>, %arg15: memref<8x16xf32, #tpu.memory_space<vmem>>, %arg16: memref<8x1024xf32, #tpu.memory_space<vmem>>) attributes {dimension_semantics = [#tpu.dimension_semantics<parallel>, #tpu.dimension_semantics<arbitrary>], iteration_bounds = array<i64: 2, 2>, scalar_prefetch = 0 : i64, scratch_operands = 1 : i64, tpu.core_type = #tpu.core_type<tc>, window_params = [{transform_indices = @transform_0, window_bounds = array<i64: 8, 32, 4>}, {pipeline_mode = #tpu.pipeline_mode<synchronous>, transform_indices = @transform_1, window_bounds = array<i64: 4, 64>}, {pipeline_mode = #tpu.pipeline_mode<synchronous>, transform_indices = @transform_2, window_bounds = array<i64: 1, 64>}, {pipeline_mode = #tpu.pipeline_mode<synchronous>, transform_indices = @transform_3, window_bounds = array<i64: 64, 128>}, {pipeline_mode = #tpu.pipeline_mode<synchronous>, transform_indices = @transform_4, window_bounds = array<i64: 1, 128>}, {pipeline_mode = #tpu.pipeline_mode<synchronous>, transform_indices = @transform_5, window_bounds = array<i64: 128, 1024>}, {pipeline_mode = #tpu.pipeline_mode<synchronous>, transform_indices = @transform_6, window_bounds = array<i64: 1, 1024>}, {pipeline_mode = #tpu.pipeline_mode<synchronous>, transform_indices = @transform_7, window_bounds = array<i64: 1024, 512>}, {pipeline_mode = #tpu.pipeline_mode<synchronous>, transform_indices = @transform_8, window_bounds = array<i64: 1, 512>}, {pipeline_mode = #tpu.pipeline_mode<synchronous>, transform_indices = @transform_9, window_bounds = array<i64: 512, 256>}, {pipeline_mode = #tpu.pipeline_mode<synchronous>, transform_indices = @transform_10, window_bounds = array<i64: 1, 256>}, {pipeline_mode = #tpu.pipeline_mode<synchronous>, transform_indices = @transform_11, window_bounds = array<i64: 256, 16>}, {pipeline_mode = #tpu.pipeline_mode<synchronous>, transform_indices = @transform_12, window_bounds = array<i64: 1, 16>}, {transform_indices = @transform_13, window_bounds = array<i64: 8, 16>}]} {
    %c0_i32 = arith.constant 0 : i32
    %0 = arith.cmpi eq, %arg1, %c0_i32 : i32
    %1 = arith.extui %0 : i1 to i32
    %c0_i32_0 = arith.constant 0 : i32
    %2 = arith.cmpi ne, %1, %c0_i32_0 : i32
    scf.if %2 {
      %cst_23 = arith.constant 0xFF800000 : f32
      %31 = vector.broadcast %cst_23 : f32 to vector<8x1024xf32>
      %c0_24 = arith.constant 0 : index
      %c0_25 = arith.constant 0 : index
      %32 = vector.load %arg16[%c0_24, %c0_25] : memref<8x1024xf32, #tpu.memory_space<vmem>>, vector<8x1024xf32>
      tpu.vector_store %arg16[%c0_24, %c0_25], %31 {strides = array<i32>} : memref<8x1024xf32, #tpu.memory_space<vmem>>, vector<8x1024xf32>,
    } else {
    }
    %c0 = arith.constant 0 : index
    %c0_1 = arith.constant 0 : index
    %c0_2 = arith.constant 0 : index
    %3 = vector.load %arg2[%c0, %c0_1, %c0_2] : memref<8x32x4xbf16, #tpu.memory_space<vmem>>, vector<8x32x4xbf16>
    %4 = vector.shape_cast %3 : vector<8x32x4xbf16> to vector<256x4xbf16>
    %c0_3 = arith.constant 0 : index
    %c0_4 = arith.constant 0 : index
    %5 = vector.load %arg3[%c0_3, %c0_4] : memref<4x64xbf16, #tpu.memory_space<vmem>>, vector<4x64xbf16>
    %cst = arith.constant dense<0.000000e+00> : vector<256x64xf32>
    %6 = tpu.matmul %4, %5, %cst {dimension_numbers = #tpu.dot_dimension_numbers<[1], [0], [0], [1], [0, 0, 1, 1], [], []>} : vector<256x4xbf16>, vector<4x64xbf16>, vector<256x64xf32> -> vector<256x64xf32>
    %c0_5 = arith.constant 0 : index
    %c0_6 = arith.constant 0 : index
    %7 = vector.load %arg4[%c0_5, %c0_6] : memref<1x64xf32, #tpu.memory_space<vmem>>, vector<1x64xf32>
    %8 = vector.broadcast %7 : vector<1x64xf32> to vector<256x64xf32>
    %9 = arith.addf %6, %8 : vector<256x64xf32>
    %cst_7 = arith.constant 0.000000e+00 : f32
    %10 = vector.broadcast %cst_7 : f32 to vector<256x64xf32>
    %11 = arith.maximumf %9, %10 : vector<256x64xf32>
    %12 = arith.truncf %11 : vector<256x64xf32> to vector<256x64xbf16>
    %c0_8 = arith.constant 0 : index
    %c0_9 = arith.constant 0 : index
    %13 = vector.load %arg5[%c0_8, %c0_9] : memref<64x128xbf16, #tpu.memory_space<vmem>>, vector<64x128xbf16>
    %cst_10 = arith.constant dense<0.000000e+00> : vector<256x128xf32>
    %14 = tpu.matmul %12, %13, %cst_10 {dimension_numbers = #tpu.dot_dimension_numbers<[1], [0], [0], [1], [0, 0, 1, 1], [], []>} : vector<256x64xbf16>, vector<64x128xbf16>, vector<256x128xf32> -> vector<256x128xf32>
    %c0_11 = arith.constant 0 : index
    %c0_12 = arith.constant 0 : index
    %15 = vector.load %arg6[%c0_11, %c0_12] : memref<1x128xf32, #tpu.memory_space<vmem>>, vector<1x128xf32>
    %16 = vector.broadcast %15 : vector<1x128xf32> to vector<256x128xf32>
    %17 = arith.addf %14, %16 : vector<256x128xf32>
    %cst_13 = arith.constant 0.000000e+00 : f32
    %18 = vector.broadcast %cst_13 : f32 to vector<256x128xf32>
    %19 = arith.maximumf %17, %18 : vector<256x128xf32>
    %20 = arith.truncf %19 : vector<256x128xf32> to vector<256x128xbf16>
    %c0_14 = arith.constant 0 : index
    %c0_15 = arith.constant 0 : index
    %21 = vector.load %arg7[%c0_14, %c0_15] : memref<128x1024xbf16, #tpu.memory_space<vmem>>, vector<128x1024xbf16>
    %cst_16 = arith.constant dense<0.000000e+00> : vector<256x1024xf32>
    %22 = tpu.matmul %20, %21, %cst_16 {dimension_numbers = #tpu.dot_dimension_numbers<[1], [0], [0], [1], [0, 0, 1, 1], [], []>} : vector<256x128xbf16>, vector<128x1024xbf16>, vector<256x1024xf32> -> vector<256x1024xf32>
    %23 = vector.shape_cast %22 : vector<256x1024xf32> to vector<8x32x1024xf32>
    %cst_17 = arith.constant dense<0xFF800000> : vector<8x1024xf32>
    %24 = vector.multi_reduction <maximumf>, %23, %cst_17 [1] : vector<8x32x1024xf32> to vector<8x1024xf32>
    %c0_18 = arith.constant 0 : index
    %c0_19 = arith.constant 0 : index
    %25 = vector.load %arg16[%c0_18, %c0_19] : memref<8x1024xf32, #tpu.memory_space<vmem>>, vector<8x1024xf32>
    %26 = arith.maximumf %25, %24 : vector<8x1024xf32>
    %c0_20 = arith.constant 0 : index
    %c0_21 = arith.constant 0 : index
    %27 = vector.load %arg16[%c0_20, %c0_21] : memref<8x1024xf32, #tpu.memory_space<vmem>>, vector<8x1024xf32>
    tpu.vector_store %arg16[%c0_20, %c0_21], %26 {strides = array<i32>} : memref<8x1024xf32, #tpu.memory_space<vmem>>, vector<8x1024xf32>,
    %c1_i32 = arith.constant 1 : i32
    %28 = arith.cmpi eq, %arg1, %c1_i32 : i32
    %29 = arith.extui %28 : i1 to i32
    %c0_i32_22 = arith.constant 0 : i32
    %30 = arith.cmpi ne, %29, %c0_i32_22 : i32
    scf.if %30 {
      %c0_23 = arith.constant 0 : index
      %c0_24 = arith.constant 0 : index
      %31 = vector.load %arg16[%c0_23, %c0_24] : memref<8x1024xf32, #tpu.memory_space<vmem>>, vector<8x1024xf32>
      %c0_25 = arith.constant 0 : index
      %c0_26 = arith.constant 0 : index
      %32 = vector.load %arg8[%c0_25, %c0_26] : memref<1x1024xf32, #tpu.memory_space<vmem>>, vector<1x1024xf32>
      %33 = vector.broadcast %32 : vector<1x1024xf32> to vector<8x1024xf32>
      %34 = arith.addf %31, %33 : vector<8x1024xf32>
      %cst_27 = arith.constant 0.000000e+00 : f32
      %35 = vector.broadcast %cst_27 : f32 to vector<8x1024xf32>
      %36 = arith.maximumf %34, %35 : vector<8x1024xf32>
      %37 = arith.truncf %36 : vector<8x1024xf32> to vector<8x1024xbf16>
      %c0_28 = arith.constant 0 : index
      %c0_29 = arith.constant 0 : index
      %38 = vector.load %arg9[%c0_28, %c0_29] : memref<1024x512xbf16, #tpu.memory_space<vmem>>, vector<1024x512xbf16>
      %cst_30 = arith.constant dense<0.000000e+00> : vector<8x512xf32>
      %39 = tpu.matmul %37, %38, %cst_30 {dimension_numbers = #tpu.dot_dimension_numbers<[1], [0], [0], [1], [0, 0, 1, 1], [], []>} : vector<8x1024xbf16>, vector<1024x512xbf16>, vector<8x512xf32> -> vector<8x512xf32>
      %c0_31 = arith.constant 0 : index
      %c0_32 = arith.constant 0 : index
      %40 = vector.load %arg10[%c0_31, %c0_32] : memref<1x512xf32, #tpu.memory_space<vmem>>, vector<1x512xf32>
      %41 = vector.broadcast %40 : vector<1x512xf32> to vector<8x512xf32>
      %42 = arith.addf %39, %41 : vector<8x512xf32>
      %cst_33 = arith.constant 0.000000e+00 : f32
      %43 = vector.broadcast %cst_33 : f32 to vector<8x512xf32>
      %44 = arith.maximumf %42, %43 : vector<8x512xf32>
      %45 = arith.truncf %44 : vector<8x512xf32> to vector<8x512xbf16>
      %c0_34 = arith.constant 0 : index
      %c0_35 = arith.constant 0 : index
      %46 = vector.load %arg11[%c0_34, %c0_35] : memref<512x256xbf16, #tpu.memory_space<vmem>>, vector<512x256xbf16>
      %cst_36 = arith.constant dense<0.000000e+00> : vector<8x256xf32>
      %47 = tpu.matmul %45, %46, %cst_36 {dimension_numbers = #tpu.dot_dimension_numbers<[1], [0], [0], [1], [0, 0, 1, 1], [], []>} : vector<8x512xbf16>, vector<512x256xbf16>, vector<8x256xf32> -> vector<8x256xf32>
      %c0_37 = arith.constant 0 : index
      %c0_38 = arith.constant 0 : index
      %48 = vector.load %arg12[%c0_37, %c0_38] : memref<1x256xf32, #tpu.memory_space<vmem>>, vector<1x256xf32>
      %49 = vector.broadcast %48 : vector<1x256xf32> to vector<8x256xf32>
      %50 = arith.addf %47, %49 : vector<8x256xf32>
      %cst_39 = arith.constant 0.000000e+00 : f32
      %51 = vector.broadcast %cst_39 : f32 to vector<8x256xf32>
      %52 = arith.maximumf %50, %51 : vector<8x256xf32>
      %53 = arith.truncf %52 : vector<8x256xf32> to vector<8x256xbf16>
      %c0_40 = arith.constant 0 : index
      %c0_41 = arith.constant 0 : index
      %54 = vector.load %arg13[%c0_40, %c0_41] : memref<256x16xbf16, #tpu.memory_space<vmem>>, vector<256x16xbf16>
      %cst_42 = arith.constant dense<0.000000e+00> : vector<8x16xf32>
      %55 = tpu.matmul %53, %54, %cst_42 {dimension_numbers = #tpu.dot_dimension_numbers<[1], [0], [0], [1], [0, 0, 1, 1], [], []>} : vector<8x256xbf16>, vector<256x16xbf16>, vector<8x16xf32> -> vector<8x16xf32>
      %c0_43 = arith.constant 0 : index
      %c0_44 = arith.constant 0 : index
      %56 = vector.load %arg14[%c0_43, %c0_44] : memref<1x16xf32, #tpu.memory_space<vmem>>, vector<1x16xf32>
      %57 = vector.broadcast %56 : vector<1x16xf32> to vector<8x16xf32>
      %58 = arith.addf %55, %57 : vector<8x16xf32>
      %c0_45 = arith.constant 0 : index
      %c0_46 = arith.constant 0 : index
      %59 = vector.load %arg15[%c0_45, %c0_46] : memref<8x16xf32, #tpu.memory_space<vmem>>, vector<8x16xf32>
      tpu.vector_store %arg15[%c0_45, %c0_46], %58 {strides = array<i32>} : memref<8x16xf32, #tpu.memory_space<vmem>>, vector<8x16xf32>,
    } else {
    }
    return
  }
  func.func @transform_0(%arg0: i32, %arg1: i32) -> (i32, i32, i32) {
    %c0_i32 = arith.constant 0 : i32
    %c0_i32_0 = arith.constant 0 : i32
    return %arg0, %arg1, %c0_i32 : i32, i32, i32
  }
  func.func @transform_1(%arg0: i32, %arg1: i32) -> (i32, i32) {
    %c0_i32 = arith.constant 0 : i32
    %c0_i32_0 = arith.constant 0 : i32
    %c0_i32_1 = arith.constant 0 : i32
    return %c0_i32, %c0_i32_0 : i32, i32
  }
  func.func @transform_2(%arg0: i32, %arg1: i32) -> (i32, i32) {
    %c0_i32 = arith.constant 0 : i32
    %c0_i32_0 = arith.constant 0 : i32
    %c0_i32_1 = arith.constant 0 : i32
    return %c0_i32, %c0_i32_0 : i32, i32
  }
  func.func @transform_3(%arg0: i32, %arg1: i32) -> (i32, i32) {
    %c0_i32 = arith.constant 0 : i32
    %c0_i32_0 = arith.constant 0 : i32
    %c0_i32_1 = arith.constant 0 : i32
    return %c0_i32, %c0_i32_0 : i32, i32
  }
  func.func @transform_4(%arg0: i32, %arg1: i32) -> (i32, i32) {
    %c0_i32 = arith.constant 0 : i32
    %c0_i32_0 = arith.constant 0 : i32
    %c0_i32_1 = arith.constant 0 : i32
    return %c0_i32, %c0_i32_0 : i32, i32
  }
  func.func @transform_5(%arg0: i32, %arg1: i32) -> (i32, i32) {
    %c0_i32 = arith.constant 0 : i32
    %c0_i32_0 = arith.constant 0 : i32
    %c0_i32_1 = arith.constant 0 : i32
    return %c0_i32, %c0_i32_0 : i32, i32
  }
  func.func @transform_6(%arg0: i32, %arg1: i32) -> (i32, i32) {
    %c0_i32 = arith.constant 0 : i32
    %c0_i32_0 = arith.constant 0 : i32
    %c0_i32_1 = arith.constant 0 : i32
    return %c0_i32, %c0_i32_0 : i32, i32
  }
  func.func @transform_7(%arg0: i32, %arg1: i32) -> (i32, i32) {
    %c0_i32 = arith.constant 0 : i32
    %c0_i32_0 = arith.constant 0 : i32
    %c0_i32_1 = arith.constant 0 : i32
    return %c0_i32, %c0_i32_0 : i32, i32
  }
  func.func @transform_8(%arg0: i32, %arg1: i32) -> (i32, i32) {
    %c0_i32 = arith.constant 0 : i32
    %c0_i32_0 = arith.constant 0 : i32
    %c0_i32_1 = arith.constant 0 : i32
    return %c0_i32, %c0_i32_0 : i32, i32
  }
  func.func @transform_9(%arg0: i32, %arg1: i32) -> (i32, i32) {
    %c0_i32 = arith.constant 0 : i32
    %c0_i32_0 = arith.constant 0 : i32
    %c0_i32_1 = arith.constant 0 : i32
    return %c0_i32, %c0_i32_0 : i32, i32
  }
  func.func @transform_10(%arg0: i32, %arg1: i32) -> (i32, i32) {
    %c0_i32 = arith.constant 0 : i32
    %c0_i32_0 = arith.constant 0 : i32
    %c0_i32_1 = arith.constant 0 : i32
    return %c0_i32, %c0_i32_0 : i32, i32
  }
  func.func @transform_11(%arg0: i32, %arg1: i32) -> (i32, i32) {
    %c0_i32 = arith.constant 0 : i32
    %c0_i32_0 = arith.constant 0 : i32
    %c0_i32_1 = arith.constant 0 : i32
    return %c0_i32, %c0_i32_0 : i32, i32
  }
  func.func @transform_12(%arg0: i32, %arg1: i32) -> (i32, i32) {
    %c0_i32 = arith.constant 0 : i32
    %c0_i32_0 = arith.constant 0 : i32
    %c0_i32_1 = arith.constant 0 : i32
    return %c0_i32, %c0_i32_0 : i32, i32
  }
  func.func @transform_13(%arg0: i32, %arg1: i32) -> (i32, i32) {
    %c0_i32 = arith.constant 0 : i32
    %c0_i32_0 = arith.constant 0 : i32
    return %arg0, %c0_i32 : i32, i32
  }
}

</mosaic_0001>

<bundles_post_ra>
// kernel: tpu_custom_call.1
= control target key start
LH: loop header
LB: loop body
LE: loop exit
PB: predicated region body
PF: predicated region fallthrough
CT: control target
= control target key end

     0   :  { %s8470_s0 = inlined_call_operand.vmem [shape: bf16[16,64,4], index: 0, kind: input, shape index: {}]   ;;  %s8471_s1 = inlined_call_operand.vmem [shape: bf16[4,64], index: 1, kind: input, shape index: {}]   ;;  %s8472_s2 = inlined_call_operand.vmem [shape: f32[1,64], index: 2, kind: input, shape index: {}]   ;;  %s8473_s3 = inlined_call_operand.vmem [shape: bf16[64,128], index: 3, kind: input, shape index: {}]   ;;  %s8474_s4 = inlined_call_operand.vmem [shape: f32[1,128], index: 4, kind: input, shape index: {}]   ;;  %s8475_s5 = inlined_call_operand.vmem [shape: bf16[128,1024], index: 5, kind: input, shape index: {}]   ;;  %s8476_s6 = inlined_call_operand.vmem [shape: f32[1,1024], index: 6, kind: input, shape index: {}]   ;;  %s8477_s7 = inlined_call_operand.hbm [shape: bf16[1024,512], index: 7, kind: input, shape index: {}]   ;;  %s8478_s8 = inlined_call_operand.vmem [shape: f32[1,512], index: 8, kind: input, shape index: {}]   ;;  %s8479_s9 = inlined_call_operand.hbm [shape: bf16[512,256], index: 9, kind: input, shape index: {}]   ;;  %s8480_s10 = inlined_call_operand.vmem [shape: f32[1,256], index: 10, kind: input, shape index: {}]   ;;  %s8481_s11 = inlined_call_operand.vmem [shape: bf16[256,16], index: 11, kind: input, shape index: {}]   ;;  %s8482_s12 = inlined_call_operand.vmem [shape: f32[1,16], index: 12, kind: input, shape index: {}]   ;;  %s8483_s13 = inlined_call_operand.hbm [shape: f32[16,16], index: 13, kind: output, shape index: {}]  }
   0x1   :  { %8494 = sst [smem:[#allocation21_spill]] %s8476_s6 }
   0x2   :  { %8495 = sst [smem:[#allocation22_spill]] %s8477_s7 }
   0x3   :  { %8496 = sst [smem:[#allocation23_spill]] %s8478_s8 }
   0x4   :  { %8497 = sst [smem:[#allocation24_spill]] %s8480_s10 }
   0x5   :  { %8498 = sst [smem:[#allocation25_spill]] %s8481_s11 }
   0x6   :  { %8499 = sst [smem:[#allocation26_spill]] %s8482_s12 }
   0x7   :  { %8500 = sst [smem:[#allocation27_spill]] %s8483_s13 }
   0x8   :  { %18 = vsyncpa [#allocation5], 0 }
   0x9   :  { %19 = vsyncpa [#allocation8], 0 }
   0xa   :  { %20 = vsyncpa [#allocation6], 0 }
   0xb   :  { %22 = vsyncpa [#allocation6 + $0x1], 0  ;;  %s7476_s25 = smov 0   ;;  %s7478_s26 = smov 0  }
   0xc   :  { %s7480_s27 = smov 0   ;;  %s7482_s28 = smov 0  }
   0xd   :  { %s7484_s29 = smov 0   ;;  %s7486_s30 = smov 0  }
   0xe   :  { %s7488_s14 = smov 0   ;;  %s7490_s15 = smov 0  }
   0xf   :  { %s7492_s16 = smov 0   ;;  %s7494_s17 = smov 0  }
  0x10 LB: > { %8501 = sst [smem:[#allocation13_spill]] %s7359_s25  ;;  %s5985_s18 = sadd.s32 4294967295, %s7395_s17   ;;  %s7395_s17 = sphi %s7494_s17, %s28_s17   ;;  %s7391_s16 = sphi %s7492_s16, %s8540_s16   ;;  %s7387_s15 = sphi %s7490_s15, %s8539_s15   ;;  %s7383_s14 = sphi %s7488_s14, %s8538_s14   ;;  %s7379_s30 = sphi %s7486_s30, %s8537_s30   ;;  %s7375_s29 = sphi %s7484_s29, %s8536_s29   ;;  %s7371_s28 = sphi %s7482_s28, %s8535_s28   ;;  %s7367_s27 = sphi %s7480_s27, %s8529_s27   ;;  %s7363_s26 = sphi %s7478_s26, %s8534_s26   ;;  %s7359_s25 = sphi %s7476_s25, %s8533_s25  }
  0x11   : > { %8502 = sst [smem:[#allocation14_spill]] %s7367_s27  ;;  %s5986_s19 = sadd.s32 4294967294, %s7395_s17  }
  0x12   : > { %8503 = sst [smem:[#allocation15_spill]] %s7383_s14  ;;  %s37_s20 = sadd.s32 1, %s7387_s15 }
  0x13   : > { %s40_s21 = sadd.s32 1, %s7391_s16  ;;  %p38_p0 = scmp.ge.s32.totalorder %s37_s20, 2 }
  0x14   : > { %s49_s22 = sadd.s32 1, %s7375_s29  ;;  %p56_p1 = scmp.ne.s32.totalorder %s7375_s29, %s7371_s28 }
  0x15   : > { %p57_p2 = scmp.eq.s32.totalorder %s7395_s17, 0  ;;  %s8542_s20 = smov (%p38_p0, %s37_s20), 0 }
  0x16   : > { %8504 = sst [smem:[#allocation16_spill]] %s8542_s20  ;;  %s8544_s21 = smov (!%p38_p0, %s40_s21), %s7391_s16 }
  0x17   : > { %s45_s23 = ssub.s32 %s7387_s15, %s8542_s20  ;;  %p7539_p3 = por %p57_p2, %p56_p1 }
  0x18   : > { %p42_p4 = scmp.ge.s32.totalorder %s8544_s21, 2  ;;  %s327_s13 = sadd.s32 1, %s7367_s27 }
  0x19   : > { %p337_p5 = scmp.ne.s32.totalorder %s7367_s27, %s7363_s26  ;;  %p338_p6 = scmp.eq.s32.totalorder %s5985_s18, 3 }
  0x1a   : > { %s8546_s21 = smov (%p42_p4, %s8544_s21), 0  ;;  %p343_p8 = scmp.ne.s32.totalorder %s7363_s26, %s7359_s25 }
  0x1b   : > { %8506 = sst [smem:[#allocation17_spill]] %s8546_s21  ;;  %p7548_p7 = por %p338_p6, %p337_p5 }
  0x1c   : > { %s44_s20 = ssub.s32 %s7391_s16, %s8546_s21  ;;  %p344_p9 = scmp.eq.s32.totalorder %s5986_s19, 3 }
  0x1d   : > { %s8507_s14 = scalar_select %p7548_p7, 1, 0 }
  0x1e   : > { %s46_s12 = sor.u32 %s45_s23, %s44_s20  ;;  %p325_p10 = scmp.eq.s32.totalorder %s44_s20, 0 }
  0x1f   : > { %p47_p11 = scmp.eq.s32.totalorder %s46_s12, 0  ;;  %p7556_p12 = por %p344_p9, %p343_p8 }
  0x20   : > { %s7561_s11 = scalar_select %p325_p10, %s7367_s27, %s327_s13  }
  0x21   : > { %s8508_s10 = scalar_select %p7556_p12, 1, 0 }
  0x22   : > { %8510 = sst [smem:[#allocation19_spill]] %s7561_s11  ;;  %p5987_p13 = scmp.ge.s32.totalorder %s7395_s17, 1 }
  0x23   : > { %8509 = sst [smem:[#allocation18_spill]] %s8508_s10  ;;  %p351_p0 = scmp.lt.s32.totalorder %s7395_s17, 5 }
  0x24   : > { %s7564_s8 = scalar_select %p47_p11, %s7375_s29, %s49_s22  }
  0x25   : > { %p7568_p1 = scmp.eq.s32.totalorder %s5985_s18, 0  ;;  %p7572_p2 = pnand %p5987_p13, %p351_p0 }
  0x26   : > { %8511 = sst [smem:[#allocation20_spill]] %s7564_s8  ;;  %s7397_s12 = smov [#allocation4]  }
  0x27   : > { %s8512_s6 = scalar_select %p7568_p1, 1, 0 }
  0x28   : > { %s381_s20 = sshll.u32 %s7397_s12, 4  ;;  %p6607_p4 = pneg %p7572_p2  ;;  %s382_s20 = int_to_ptr.vmem [resolvable:$true] %s381_s20 }
  0x29   : > { %s7398_s18 = smov [#allocation7]   ;;  %s7238_s23 = scalar_lea.vmem %s382_s20, 32768 }
  0x2a   : > { %p7580_p5 = pnand %p7568_p1, %p6607_p4  ;;  %s397_s22 = sshll.u32 %s7398_s18, 4  ;;  %s398_s22 = int_to_ptr.vmem [resolvable:$true] %s397_s22 }
  0x2b   : > { %p7239_p8 = scmp.ne.s32.totalorder %s382_s20, %s7238_s23  ;;  %p7246_p11 = scmp.lt.s32.totalorder %s382_s20, %s382_s20 }
  0x2c   : > { %p7229_p6 = pneg %p7580_p5  ;;  %p7247_p13 = scmp.lt.s32.totalorder %s7238_s23, %s7238_s23 }
  0x2e   : > { %p7241_p9 = pnand %p7239_p8, %p7229_p6  ;;  %p7248_p0 = por %p7247_p13, %p7246_p11 }
  0x30   : > { %p7242_p10 = pneg %p7241_p9 }
  0x32   : > { %p7249_p4 = pnand %p7248_p0, %p7242_p10 }
  0x34   : > { %7252 = shalt.err (!%p7249_p4)
}
  0x35   : > { %s7399_s12 = smov 256   ;;  %s7400_s21 = smov 16  }
  0x36   : > { %s8515_s7 = sld [smem:[#allocation22_spill]]  ;;  %s7264_s11 = scalar_lea.vmem %s398_s22, 8192 }
  0x37   : > { %p7265_p12 = scmp.ne.s32.totalorder %s398_s22, %s7264_s11  ;;  %p7272_p7 = scmp.lt.s32.totalorder %s398_s22, %s398_s22 }
  0x38   : > { %p7273_p1 = scmp.lt.s32.totalorder %s7264_s11, %s7264_s11 }
  0x39   : > { %p7267_p8 = pnand %p7265_p12, %p7229_p6 }
  0x3a   : > { %p7274_p11 = por %p7273_p1, %p7272_p7 }
  0x3b   : > { %p7268_p9 = pneg %p7267_p8 }
  0x3c   : > { %6610 = dma.hbm_to_vmem [thread:$0]  (!%p7580_p5), %s8515_s7, 32768, %s382_s20, [#allocation5], %s7399_s12, %s7399_s12, %s7400_s21  }
  0x3d   : > { %p7275_p10 = pnand %p7274_p11, %p7268_p9 }
  0x3f   : > { %7278 = shalt.err (!%p7275_p10)
}
  0x40   : > { %s7401_s23 = smov 128   ;;  %s7402_s27 = smov 8  }
  0x41   : > { %6613 = dma.hbm_to_vmem [thread:$0]  (!%p7580_p5), %s8479_s9, 8192, %s398_s22, [#allocation8], %s7401_s23, %s7401_s23, %s7402_s27  }
  0x42   : > { %p5990_p13 = scmp.ge.s32.totalorder %s7395_s17, 4 }
  0x44   : > { %416 = sbr.rel (%p5990_p13) target bundleno = 88 (0x58), region = 64 }
  0x49   : > { %419 = sbr.rel (!%p7539_p3) target bundleno = 88 (0x58), region = 68  ;;  %s421_s8 = sand.u32 (%p7539_p3), 1, %s7375_s29  }
  0x4a   : > { %s5993_s11 = sshll.u32 (%p7539_p3), %s7387_s15, 2  ;;  %s5991_s21 = sshll.u32 (%p7539_p3), %s421_s8, 7 }
  0x4b   : > { %s6462_s20 = sshll.u32 (%p7539_p3), %s7391_s16, 6  ;;  %s423_s25 = scalar_lea.vmem (%p7539_p3), [#allocation3], %s5991_s21 }
  0x4c   : > { %s427_s12 = sadd.s32 (%p7539_p3), %s6462_s20, %s5993_s11 }
  0x4d   : > { %s5995_s18 = sshll.u32 (%p7539_p3), %s427_s12, 2 }
  0x4e   : > { %s7611_s10 = scalar_lea.vmem %s8470_s0, %s5995_s18 }
  0x4f   : > { %v446_v0 = vld [vmem:[%s7611_s10] sm:$0xff]   ;;  %v450_v1 = vld [vmem:[%s7611_s10 + $0x8] sm:$0xff]  }
  0x50   : > { %v454_v2 = vld [vmem:[%s7611_s10 + $0x20] sm:$0xff]   ;;  %447 = vst [vmem:[%s423_s25] sm:$0xff] %v446_v0   ;;  %451 = vst [vmem:[%s423_s25 + $0x8] sm:$0xff] %v450_v1   ;;  %v458_v3 = vld [vmem:[%s7611_s10 + $0x28] sm:$0xff]  }
  0x51   : > { %455 = vst [vmem:[%s423_s25 + $0x10] sm:$0xff] %v454_v2   ;;  %v462_v4 = vld [vmem:[%s7611_s10 + $0x40] sm:$0xff]   ;;  %v466_v5 = vld [vmem:[%s7611_s10 + $0x48] sm:$0xff]   ;;  %459 = vst [vmem:[%s423_s25 + $0x18] sm:$0xff] %v458_v3  }
  0x52   : > { %463 = vst [vmem:[%s423_s25 + $0x20] sm:$0xff] %v462_v4   ;;  %467 = vst [vmem:[%s423_s25 + $0x28] sm:$0xff] %v466_v5   ;;  %v470_v6 = vld [vmem:[%s7611_s10 + $0x60] sm:$0xff]   ;;  %v474_v7 = vld [vmem:[%s7611_s10 + $0x68] sm:$0xff]  }
  0x53   : > { %v478_v8 = vld [vmem:[%s7611_s10 + $0x80] sm:$0xff]   ;;  %471 = vst [vmem:[%s423_s25 + $0x30] sm:$0xff] %v470_v6   ;;  %475 = vst [vmem:[%s423_s25 + $0x38] sm:$0xff] %v474_v7   ;;  %v482_v9 = vld [vmem:[%s7611_s10 + $0x88] sm:$0xff]  }
  0x54   : > { %479 = vst [vmem:[%s423_s25 + $0x40] sm:$0xff] %v478_v8   ;;  %v486_v10 = vld [vmem:[%s7611_s10 + $0xa0] sm:$0xff]   ;;  %v490_v11 = vld [vmem:[%s7611_s10 + $0xa8] sm:$0xff]   ;;  %483 = vst [vmem:[%s423_s25 + $0x48] sm:$0xff] %v482_v9  }
  0x55   : > { %487 = vst [vmem:[%s423_s25 + $0x50] sm:$0xff] %v486_v10   ;;  %491 = vst [vmem:[%s423_s25 + $0x58] sm:$0xff] %v490_v11   ;;  %v494_v12 = vld [vmem:[%s7611_s10 + $0xc0] sm:$0xff]   ;;  %v498_v13 = vld [vmem:[%s7611_s10 + $0xc8] sm:$0xff]  }
  0x56   : > { %v502_v14 = vld [vmem:[%s7611_s10 + $0xe0] sm:$0xff]   ;;  %495 = vst [vmem:[%s423_s25 + $0x60] sm:$0xff] %v494_v12   ;;  %499 = vst [vmem:[%s423_s25 + $0x68] sm:$0xff] %v498_v13   ;;  %v506_v15 = vld [vmem:[%s7611_s10 + $0xe8] sm:$0xff]  }
  0x57   : > { %503 = vst [vmem:[%s423_s25 + $0x70] sm:$0xff] %v502_v14   ;;  %507 = vst [vmem:[%s423_s25 + $0x78] sm:$0xff] %v506_v15  }
  0x58 PF: > { %600 = sbr.rel (%p7572_p2) target bundleno = 1878 (0x756), region = 109  ;;  %s603_s7 = sand.u32 (!%p7572_p2), 1, %s7371_s28  }
  0x59   : > { %s5997_s27 = sshll.u32 (!%p7572_p2), %s603_s7, 7  ;;  %p8516_p3 = scmp.ne.s32.totalorder (!%p7572_p2), %s8512_s6, 0 }
  0x5a   : > { %s7632_s24 = scalar_lea.vmem (!%p7572_p2), [#allocation3], %s5997_s27 }
  0x5d   : > { %7346 = dma.done.wait (%p8516_p3), [#allocation5], 32768  }
  0x5e   : > { %7348 = vsyncadd (%p8516_p3), [#allocation5], 4294934528 }
  0x5f   : > { %7350 = dma.done.wait (%p8516_p3), [#allocation8], 8192  }
  0x60   : > { %7352 = vsyncadd (%p8516_p3), [#allocation8], 4294959104  ;;  %s651_s19 = sand.u32 1, %s7363_s26   ;;  %p6001_p7 = scmp.ne.s32.totalorder %s7379_s30, 0 }
  0x61   : > { %s7645_s22 = sshll.u32 %s651_s19, 3 }
  0x62   : > { %s653_s28 = scalar_lea.vmem [#allocation9], %s7645_s22  ;;  %660 = sbr.rel (%p6001_p7) target bundleno = 108 (0x6c), region = 125 }
  0x67   : > { %v7403_v16 = vmov -inf  }
  0x68   : > { %661 = vst [vmem:[#allocation2 + $0x30] sm:$0xff] %v7403_v16  ;;  %662 = vst [vmem:[#allocation2] sm:$0xff] %v7403_v16 }
  0x69   : > { %663 = vst [vmem:[#allocation2 + $0x18] sm:$0xff] %v7403_v16  ;;  %664 = vst [vmem:[#allocation2 + $0x10] sm:$0xff] %v7403_v16 }
  0x6a   : > { %665 = vst [vmem:[#allocation2 + $0x8] sm:$0xff] %v7403_v16  ;;  %666 = vst [vmem:[#allocation2 + $0x20] sm:$0xff] %v7403_v16 }
  0x6b   : > { %667 = vst [vmem:[#allocation2 + $0x28] sm:$0xff] %v7403_v16  ;;  %668 = vst [vmem:[#allocation2 + $0x38] sm:$0xff] %v7403_v16 }
  0x6c PF: > { %v701_v17 = vld [vmem:[%s8471_s1] sm:$0x3]  ;;  %vm838_vm0 = vcmask 1041408   ;;  %vm789_vm1 = vcmask 31744   ;;  %v6712_v20 = vld [vmem:[%s7632_s24 + $0x8] sm:$0xff]   ;;  %v6713_v21 = vld [vmem:[%s7632_s24 + $0x10] sm:$0xff]  }
  0x6d   : > { %v6711_v18 = vld [vmem:[%s7632_s24] sm:$0xff]   ;;  %6596 = vmatprep.subr.msk.bf16.mxu0 %vm838_vm0, %v701_v17  ;;  %v840_v19 = vsel %vm838_vm0, %v701_v17, 0  ;;  %v6714_v22 = vld [vmem:[%s7632_s24 + $0x18] sm:$0xff]   ;;  %v6716_v24 = vld [vmem:[%s7632_s24 + $0x28] sm:$0xff]   ;;  %vm1090_vm2 = vcmask 523264   ;;  %vm3152_vm3 = vcmask 1041409  }
  0x6e   : > { %6523 = vmatpush3.bf16.msra.mxu0 %v840_v19  ;;  %6524 = vmatprep.mubr.msk.bf16.mxu0 %vm789_vm1, %v6711_v18  ;;  %v6715_v23 = vld [vmem:[%s7632_s24 + $0x20] sm:$0xff]   ;;  %v6717_v25 = vld [vmem:[%s7632_s24 + $0x30] sm:$0xff]   ;;  %v6727_v26 = vld [vmem:[%s8473_s3 + $0x18] sm:$0xff]   ;;  %vm3154_vm4 = vcmask 1042434   ;;  %vm3156_vm5 = vcmask 1043459   ;;  %vm3158_vm6 = vcmask 1044484  }
  0x6f   : > { %6556 = vmatprep.subr.bf16.mxu1 %v6727_v26  ;;  %v6718_v27 = vld [vmem:[%s7632_s24 + $0x38] sm:$0xff]   ;;  %v6719_v28 = vld [vmem:[%s7632_s24 + $0x40] sm:$0xff]   ;;  %v6720_v29 = vld [vmem:[%s7632_s24 + $0x48] sm:$0xff]   ;;  %vm3160_vm7 = vcmask 1045509   ;;  %vm3162_vm8 = vcmask 1046534   ;;  %vm3164_vm9 = vcmask 1047559  }
  0x70   : > { %6557 = vmatpush3.bf16.msra.mxu1 %v6727_v26  ;;  %v6721_v30 = vld [vmem:[%s7632_s24 + $0x50] sm:$0xff]   ;;  %v6722_v31 = vld [vmem:[%s7632_s24 + $0x58] sm:$0xff]   ;;  %v6723_v32 = vld [vmem:[%s7632_s24 + $0x60] sm:$0xff]   ;;  %p6120_p12 = scmp.ne.s32.totalorder %s7379_s30, 1 }
  0x71   : > { %6525 = vmatmul.mubr.msk.bf16.vlgmr.msra.gmra.mxu0 %vm789_vm1, %v6712_v20  ;;  %v6724_v33 = vld [vmem:[%s7632_s24 + $0x68] sm:$0xff]   ;;  %v6725_v34 = vld [vmem:[%s7632_s24 + $0x70] sm:$0xff]   ;;  %v6726_v35 = vld [vmem:[%s7632_s24 + $0x78] sm:$0xff]   ;;  %s8517_s11 = sld [smem:[#allocation21_spill]] (!%p6120_p12) }
  0x72   : > { %6528 = vmatprep.mubr.msk.bf16.mxu0 %vm789_vm1, %v6713_v21  ;;  %v6728_v36 = vld [vmem:[%s8473_s3 + $0x10] sm:$0xff]   ;;  %v6729_v37 = vld [vmem:[%s8473_s3 + $0x8] sm:$0xff]   ;;  %v6730_v38 = vld [vmem:[%s8473_s3] sm:$0xff]   ;;  %s8518_s12 = sld [smem:[#allocation23_spill]] (!%p6120_p12) }
  0x73   : > { %6558 = vmatprep.subr.bf16.mxu1 %v6728_v36  ;;  %v1404_v39 = vld [vmem:[%s8475_s5 + $0x1c0] sm:$0xff]  ;;  %v7705_v41 = vld [vmem:[%s8475_s5 + $0x1c8] sm:$0xff]  ;;  %s8519_s10 = sld [smem:[#allocation25_spill]] (!%p6120_p12) }
  0x74   : > { %6559 = vmatpush3.bf16.msra.mxu1 %v6728_v36  ;;  %v1408_v40 = vld [vmem:[%s8475_s5 + $0x1e0] sm:$0xff]  ;;  %v7710_v44 = vld [vmem:[%s8475_s5 + $0x1e8] sm:$0xff]  ;;  %s8520_s6 = sld [smem:[#allocation24_spill]] (!%p6120_p12) }
  0x75   : > { %6560 = vmatprep.subr.bf16.mxu1 %v6729_v37  ;;  %v6112_v42 = vcombine.low %v1404_v39, %v1408_v40  ;;  %v6113_v43 = vcombine.high %v1404_v39, %v1408_v40  ;;  %v1396_v45 = vld [vmem:[%s8475_s5 + $0x180] sm:$0xff]  ;;  %v6114_v47 = vcombine.low %v7705_v41, %v7710_v44  ;;  %v6115_v48 = vcombine.high %v7705_v41, %v7710_v44  ;;  %v1397_v20 = vld [vmem:[%s8475_s5 + $0x188] sm:$0xff]  ;;  %s8521_s8 = sld [smem:[#allocation26_spill]] (!%p6120_p12) }
  0x76   : > { %v1400_v46 = vld [vmem:[%s8475_s5 + $0x1a0] sm:$0xff]  ;;  %v1401_v21 = vld [vmem:[%s8475_s5 + $0x1a8] sm:$0xff] }
  0x77   : > { %v6105_v49 = vcombine.high %v1396_v45, %v1400_v46  ;;  %v1388_v50 = vld [vmem:[%s8475_s5 + $0x140] sm:$0xff]  ;;  %1732 = vmatprep.subr.bf16.mxu0 %v6113_v43  ;;  %v6104_v52 = vcombine.low %v1396_v45, %v1400_v46  ;;  %v1381_v43 = vld [vmem:[%s8475_s5 + $0x108] sm:$0xff] }
  0x78   : > { %6561 = vmatpush3.bf16.msra.mxu1 %v6729_v37  ;;  %v1392_v51 = vld [vmem:[%s8475_s5 + $0x160] sm:$0xff]  ;;  %1733 = vmatpush1.bf16.msra.mxu0 %v6112_v42  ;;  %v1385_v45 = vld [vmem:[%s8475_s5 + $0x128] sm:$0xff] }
  0x79   : > { %6529 = vmatmul.mubr.msk.bf16.gmra.mxu0 %vm789_vm1, %v6714_v22  ;;  %6562 = vmatprep.subr.bf16.mxu1 %v6730_v38  ;;  %v6097_v53 = vcombine.high %v1388_v50, %v1392_v51  ;;  %v1380_v54 = vld [vmem:[%s8475_s5 + $0x100] sm:$0xff]  ;;  %v6096_v56 = vcombine.low %v1388_v50, %v1392_v51  ;;  %v6091_v51 = vcombine.high %v1381_v43, %v1385_v45 }
  0x7a   : > { %6532 = vmatprep.mubr.msk.bf16.mxu0 %vm789_vm1, %v6715_v23  ;;  %1734 = vmatprep.subr.bf16.mxu0 %v6105_v49  ;;  %v1384_v55 = vld [vmem:[%s8475_s5 + $0x120] sm:$0xff] }
  0x7b   : > { %v6089_v57 = vcombine.high %v1380_v54, %v1384_v55  ;;  %v1372_v58 = vld [vmem:[%s8475_s5 + $0xc0] sm:$0xff]  ;;  %v6088_v60 = vcombine.low %v1380_v54, %v1384_v55  ;;  %v1377_v54 = vld [vmem:[%s8475_s5 + $0xe8] sm:$0xff] }
  0x7c   : > { %6563 = vmatpush3.bf16.msra.mxu1 %v6730_v38  ;;  %1735 = vmatpush1.bf16.msra.mxu0 %v6104_v52  ;;  %v1376_v59 = vld [vmem:[%s8475_s5 + $0xe0] sm:$0xff]  ;;  %v6106_v38 = vcombine.low %v1397_v20, %v1401_v21 }
  0x7d   : > { %1925 = vmatprep.subr.bf16.mxu1 %v6115_v48  ;;  %1736 = vmatprep.subr.bf16.mxu0 %v6097_v53  ;;  %v6081_v61 = vcombine.high %v1372_v58, %v1376_v59  ;;  %v1364_v62 = vld [vmem:[%s8475_s5 + $0x80] sm:$0xff]  ;;  %v6080_v0 = vcombine.low %v1372_v58, %v1376_v59  ;;  %v1373_v53 = vld [vmem:[%s8475_s5 + $0xc8] sm:$0xff] }
  0x7e   : > { %v1368_v63 = vld [vmem:[%s8475_s5 + $0xa0] sm:$0xff] }
  0x7f   : > { %v6073_v1 = vcombine.high %v1364_v62, %v1368_v63  ;;  %v1356_v2 = vld [vmem:[%s8475_s5 + $0x40] sm:$0xff]  ;;  %v6072_v4 = vcombine.low %v1364_v62, %v1368_v63  ;;  %v6083_v62 = vcombine.high %v1373_v53, %v1377_v54 }
  0x80   : > { %1737 = vmatpush1.bf16.msra.mxu0 %v6096_v56  ;;  %v1360_v3 = vld [vmem:[%s8475_s5 + $0x60] sm:$0xff] }
  0x81   : > { %6533 = vmatmul.mubr.msk.bf16.gmra.mxu0 %vm789_vm1, %v6716_v24  ;;  %1738 = vmatprep.subr.bf16.mxu0 %v6089_v57  ;;  %v6065_v5 = vcombine.high %v1356_v2, %v1360_v3  ;;  %v6064_v6 = vcombine.low %v1356_v2, %v1360_v3  ;;  %v7755_v9 = vld [vmem:[%s8472_s2] ss:$0 sm:$0xff] }
  0x82   : > { %6536 = vmatprep.mubr.msk.bf16.mxu0 %vm789_vm1, %v6717_v25 }
  0x84   : > { %1739 = vmatpush1.bf16.msra.mxu0 %v6088_v60  ;;  %v6090_v60 = vcombine.low %v1381_v43, %v1385_v45 }
  0x85   : > { %1740 = vmatprep.subr.bf16.mxu0 %v6081_v61 }
  0x88   : > { %1741 = vmatpush1.bf16.msra.mxu0 %v6080_v0  ;;  %v1365_v0 = vld [vmem:[%s8475_s5 + $0x88] sm:$0xff] }
  0x89   : > { %6537 = vmatmul.mubr.msk.bf16.gmra.mxu0 %vm789_vm1, %v6718_v27  ;;  %1742 = vmatprep.subr.bf16.mxu0 %v6073_v1  ;;  %v1369_v1 = vld [vmem:[%s8475_s5 + $0xa8] sm:$0xff] }
  0x8a   : > { %6540 = vmatprep.mubr.msk.bf16.mxu0 %vm789_vm1, %v6719_v28 }
  0x8c   : > { %1743 = vmatpush1.bf16.msra.mxu0 %v6072_v4 }
  0x8d   : > { %1744 = vmatprep.subr.bf16.mxu0 %v6065_v5 }
  0x90   : > { %1745 = vmatpush1.bf16.msra.mxu0 %v6064_v6 }
  0x91   : > { %6541 = vmatmul.mubr.msk.bf16.gmra.mxu0 %vm789_vm1, %v6720_v29  ;;  %v6107_v29 = vcombine.high %v1397_v20, %v1401_v21 }
  0x92   : > { %6544 = vmatprep.mubr.msk.bf16.mxu0 %vm789_vm1, %v6721_v30 }
  0x99   : > { %6545 = vmatmul.mubr.msk.bf16.gmra.mxu0 %vm789_vm1, %v6722_v31  ;;  %v1389_v31 = vld [vmem:[%s8475_s5 + $0x148] sm:$0xff] }
  0x9a   : > { %6548 = vmatprep.mubr.msk.bf16.mxu0 %vm789_vm1, %v6723_v32  ;;  %v1393_v32 = vld [vmem:[%s8475_s5 + $0x168] sm:$0xff] }
  0x9b   : > { %v6099_v40 = vcombine.high %v1389_v31, %v1393_v32  ;;  %v6098_v44 = vcombine.low %v1389_v31, %v1393_v32 }
  0xa1   : > { %6549 = vmatmul.mubr.msk.bf16.gmra.mxu0 %vm789_vm1, %v6724_v33 }
  0xa2   : > { %6552 = vmatprep.mubr.msk.bf16.mxu0 %vm789_vm1, %v6725_v34 }
  0xa9   : > { %6553 = vmatmul.mubr.msk.bf16.gmra.mxu0 %vm789_vm1, %v6726_v35 }
 0x131   : > { %v6526_v7 = vpop.f32.mrf.mxu0 }
 0x132   : > { %v885_v13 = vadd.f32 %v6526_v7, %v7755_v9  ;;  %v6082_v7 = vcombine.low %v1373_v53, %v1377_v54 }
 0x133   : > { %v876_v8 = vpop.f32.mrf.mxu0 }
 0x134   : > { %v877_v11 = vadd.f32 %v7755_v9, %v876_v8  ;;  %v1005_v22 = vmax.f32 %v885_v13, 0.0  ;;  %v1361_v13 = vld [vmem:[%s8475_s5 + $0x68] sm:$0xff] }
 0x135   : > { %v6527_v10 = vpop.f32.mrf.mxu0 }
 0x136   : > { %v888_v12 = vadd.f32 %v6527_v10, %v7755_v9  ;;  %v1003_v18 = vmax.f32 %v877_v11, 0.0  ;;  %v6075_v10 = vcombine.high %v1365_v0, %v1369_v1 }
 0x137   : > { %v879_v14 = vpop.f32.mrf.mxu0 }
 0x138   : > { %v880_v15 = vadd.f32 %v7755_v9, %v879_v14  ;;  %v1006_v16 = vmax.f32 %v888_v12, 0.0  ;;  %v1357_v12 = vld [vmem:[%s8475_s5 + $0x48] sm:$0xff] }
 0x139   : > { %v6530_v17 = vpop.f32.mrf.mxu0  ;;  %v6067_v21 = vcombine.high %v1357_v12, %v1361_v13 }
 0x13a   : > { %v1004_v19 = vmax.f32 %v880_v15, 0.0  ;;  %v901_v23 = vadd.f32 %v6530_v17, %v7755_v9  ;;  %v1036_v27 = vpack.c.bf16 %v1006_v16, %v1005_v22 }
 0x13b   : > { %v892_v24 = vpop.f32.mrf.mxu0 }
 0x13c   : > { %v893_v25 = vadd.f32 %v7755_v9, %v892_v24  ;;  %v1035_v26 = vpack.c.bf16 %v1004_v19, %v1003_v18  ;;  %v1009_v33 = vmax.f32 %v901_v23, 0.0  ;;  %v6074_v19 = vcombine.low %v1365_v0, %v1369_v1 }
 0x13d   : > { %v6531_v28 = vpop.f32.mrf.mxu0 }
 0x13e   : > { %v904_v30 = vadd.f32 %v6531_v28, %v7755_v9  ;;  %6564 = vmatprep.mubr.msk.bf16.mxu1 %vm1090_vm2, %v1035_v26  ;;  %v1007_v35 = vmax.f32 %v893_v25, 0.0  ;;  %v6066_v28 = vcombine.low %v1357_v12, %v1361_v13 }
 0x13f   : > { %v895_v34 = vpop.f32.mrf.mxu0  ;;  %6565 = vmatmul.mubr.msk.bf16.vlgmr.msra.gmra.mxu1 %vm1090_vm2, %v1036_v27 }
 0x140   : > { %v1010_v36 = vmax.f32 %v904_v30, 0.0  ;;  %v896_v37 = vadd.f32 %v7755_v9, %v895_v34  ;;  %1926 = vmatpush1.bf16.msra.mxu1 %v6114_v47 }
 0x141   : > { %v6534_v39 = vpop.f32.mrf.mxu0  ;;  %1927 = vmatprep.subr.bf16.mxu1 %v6107_v29 }
 0x142   : > { %v1008_v42 = vmax.f32 %v896_v37, 0.0  ;;  %v1038_v46 = vpack.c.bf16 %v1010_v36, %v1009_v33  ;;  %v917_v48 = vadd.f32 %v6534_v39, %v7755_v9 }
 0x143   : > { %v908_v49 = vpop.f32.mrf.mxu0 }
 0x144   : > { %v1037_v50 = vpack.c.bf16 %v1008_v42, %v1007_v35  ;;  %v909_v41 = vadd.f32 %v7755_v9, %v908_v49  ;;  %1928 = vmatpush1.bf16.msra.mxu1 %v6106_v38  ;;  %v1013_v55 = vmax.f32 %v917_v48, 0.0 }
 0x145   : > { %v6535_v47 = vpop.f32.mrf.mxu0  ;;  %1929 = vmatprep.subr.bf16.mxu1 %v6099_v40 }
 0x146   : > { %6568 = vmatprep.mubr.msk.bf16.mxu1 %vm1090_vm2, %v1037_v50  ;;  %v920_v52 = vadd.f32 %v6535_v47, %v7755_v9  ;;  %v1011_v57 = vmax.f32 %v909_v41, 0.0 }
 0x147   : > { %6569 = vmatmul.mubr.msk.bf16.gmra.mxu1 %vm1090_vm2, %v1038_v46  ;;  %v911_v56 = vpop.f32.mrf.mxu0 }
 0x148   : > { %v1014_v58 = vmax.f32 %v920_v52, 0.0  ;;  %v912_v59 = vadd.f32 %v7755_v9, %v911_v56  ;;  %1930 = vmatpush1.bf16.msra.mxu1 %v6098_v44 }
 0x149   : > { %v6538_v61 = vpop.f32.mrf.mxu0  ;;  %1931 = vmatprep.subr.bf16.mxu1 %v6091_v51 }
 0x14a   : > { %v1012_v63 = vmax.f32 %v912_v59, 0.0  ;;  %v1040_v2 = vpack.c.bf16 %v1014_v58, %v1013_v55  ;;  %v933_v3 = vadd.f32 %v6538_v61, %v7755_v9 }
 0x14b   : > { %v924_v4 = vpop.f32.mrf.mxu0 }
 0x14c   : > { %v1039_v5 = vpack.c.bf16 %v1012_v63, %v1011_v57  ;;  %v925_v6 = vadd.f32 %v7755_v9, %v924_v4  ;;  %1932 = vmatpush1.bf16.msra.mxu1 %v6090_v60  ;;  %v1017_v14 = vmax.f32 %v933_v3, 0.0 }
 0x14d   : > { %v6539_v8 = vpop.f32.mrf.mxu0  ;;  %1933 = vmatprep.subr.bf16.mxu1 %v6083_v62 }
 0x14e   : > { %6572 = vmatprep.mubr.msk.bf16.mxu1 %vm1090_vm2, %v1039_v5  ;;  %v936_v11 = vadd.f32 %v6539_v8, %v7755_v9  ;;  %v1015_v16 = vmax.f32 %v925_v6, 0.0 }
 0x14f   : > { %6573 = vmatmul.mubr.msk.bf16.gmra.mxu1 %vm1090_vm2, %v1040_v2  ;;  %v927_v15 = vpop.f32.mrf.mxu0 }
 0x150   : > { %v1018_v17 = vmax.f32 %v936_v11, 0.0  ;;  %v928_v18 = vadd.f32 %v7755_v9, %v927_v15  ;;  %1934 = vmatpush1.bf16.msra.mxu1 %v6082_v7 }
 0x151   : > { %v6542_v20 = vpop.f32.mrf.mxu0  ;;  %1935 = vmatprep.subr.bf16.mxu1 %v6075_v10 }
 0x152   : > { %v1016_v22 = vmax.f32 %v928_v18, 0.0  ;;  %v1042_v23 = vpack.c.bf16 %v1018_v17, %v1017_v14  ;;  %v949_v24 = vadd.f32 %v6542_v20, %v7755_v9  ;;  %v1348_v18 = vld [vmem:[%s8475_s5] sm:$0xff]  ;;  %v1349_v20 = vld [vmem:[%s8475_s5 + $0x8] sm:$0xff] }
 0x153   : > { %v940_v25 = vpop.f32.mrf.mxu0 }
 0x154   : > { %v1041_v26 = vpack.c.bf16 %v1016_v22, %v1015_v16  ;;  %v941_v27 = vadd.f32 %v7755_v9, %v940_v25  ;;  %1936 = vmatpush1.bf16.msra.mxu1 %v6074_v19  ;;  %v1021_v31 = vmax.f32 %v949_v24, 0.0  ;;  %v1352_v19 = vld [vmem:[%s8475_s5 + $0x20] sm:$0xff]  ;;  %v7404_v25 = vmov 0  }
 0x155   : > { %v6543_v29 = vpop.f32.mrf.mxu0  ;;  %1937 = vmatprep.subr.bf16.mxu1 %v6067_v21  ;;  %v1353_v21 = vld [vmem:[%s8475_s5 + $0x28] sm:$0xff]  ;;  %v6056_v22 = vcombine.low %v1348_v18, %v1352_v19  ;;  %1764 = vmatprep.mubr.bf16.mxu0 %v7404_v25 }
 0x156   : > { %6576 = vmatprep.mubr.msk.bf16.mxu1 %vm1090_vm2, %v1041_v26  ;;  %v952_v30 = vadd.f32 %v6543_v29, %v7755_v9  ;;  %v1019_v33 = vmax.f32 %v941_v27, 0.0  ;;  %v6059_v24 = vcombine.high %v1349_v20, %v1353_v21  ;;  %v1406_v26 = vld [vmem:[%s8475_s5 + $0x1d0] sm:$0xff] }
 0x157   : > { %6577 = vmatmul.mubr.msk.bf16.gmra.mxu1 %vm1090_vm2, %v1042_v23  ;;  %v943_v32 = vpop.f32.mrf.mxu0  ;;  %v6058_v23 = vcombine.low %v1349_v20, %v1353_v21  ;;  %v1410_v27 = vld [vmem:[%s8475_s5 + $0x1f0] sm:$0xff] }
 0x158   : > { %v1022_v34 = vmax.f32 %v952_v30, 0.0  ;;  %v944_v35 = vadd.f32 %v7755_v9, %v943_v32  ;;  %1938 = vmatpush1.bf16.msra.mxu1 %v6066_v28  ;;  %v1407_v28 = vld [vmem:[%s8475_s5 + $0x1d8] sm:$0xff]  ;;  %v6116_v29 = vcombine.low %v1406_v26, %v1410_v27  ;;  %v6117_v30 = vcombine.high %v1406_v26, %v1410_v27  ;;  %v1370_v27 = vld [vmem:[%s8475_s5 + $0xb0] sm:$0xff] }
 0x159   : > { %v6546_v36 = vpop.f32.mrf.mxu0  ;;  %1939 = vmatprep.subr.bf16.mxu1 %v6059_v24  ;;  %v1366_v24 = vld [vmem:[%s8475_s5 + $0x90] sm:$0xff] }
 0x15a   : > { %v1020_v37 = vmax.f32 %v944_v35, 0.0  ;;  %v1044_v38 = vpack.c.bf16 %v1022_v34, %v1021_v31  ;;  %v965_v39 = vadd.f32 %v6546_v36, %v7755_v9  ;;  %v1411_v31 = vld [vmem:[%s8475_s5 + $0x1f8] sm:$0xff]  ;;  %v7873_v36 = vld [vmem:[%s8474_s4] ss:$0 sm:$0xff] }
 0x15b   : > { %v956_v40 = vpop.f32.mrf.mxu0  ;;  %v6118_v32 = vcombine.low %v1407_v28, %v1411_v31 }
 0x15c   : > { %v1043_v42 = vpack.c.bf16 %v1020_v37, %v1019_v33  ;;  %v957_v43 = vadd.f32 %v7755_v9, %v956_v40  ;;  %v1025_v48 = vmax.f32 %v965_v39, 0.0  ;;  %1940 = vmatpush1.bf16.msra.mxu1 %v6058_v23  ;;  %v6119_v33 = vcombine.high %v1407_v28, %v1411_v31  ;;  %v1367_v28 = vld [vmem:[%s8475_s5 + $0x98] sm:$0xff] }
 0x15d   : > { %v6547_v45 = vpop.f32.mrf.mxu0 }
 0x15e   : > { %6580 = vmatprep.mubr.msk.bf16.mxu1 %vm1090_vm2, %v1043_v42  ;;  %v968_v46 = vadd.f32 %v6547_v45, %v7755_v9  ;;  %v1023_v50 = vmax.f32 %v957_v43, 0.0  ;;  %2311 = vmatprep.subr.bf16.mxu1 %v6119_v33  ;;  %v1398_v43 = vld [vmem:[%s8475_s5 + $0x190] sm:$0xff] }
 0x15f   : > { %6581 = vmatmul.mubr.msk.bf16.gmra.mxu1 %vm1090_vm2, %v1044_v38  ;;  %v959_v49 = vpop.f32.mrf.mxu0 }
 0x160   : > { %v1026_v41 = vmax.f32 %v968_v46, 0.0  ;;  %v960_v44 = vadd.f32 %v7755_v9, %v959_v49  ;;  %v1399_v49 = vld [vmem:[%s8475_s5 + $0x198] sm:$0xff] }
 0x161   : > { %v6550_v47 = vpop.f32.mrf.mxu0 }
 0x162   : > { %v1024_v51 = vmax.f32 %v960_v44, 0.0  ;;  %v1046_v52 = vpack.c.bf16 %v1026_v41, %v1025_v48  ;;  %v981_v53 = vadd.f32 %v6550_v47, %v7755_v9  ;;  %v1402_v48 = vld [vmem:[%s8475_s5 + $0x1b0] sm:$0xff] }
 0x163   : > { %v972_v54 = vpop.f32.mrf.mxu0 }
 0x164   : > { %v1045_v55 = vpack.c.bf16 %v1024_v51, %v1023_v50  ;;  %v973_v56 = vadd.f32 %v7755_v9, %v972_v54  ;;  %v1029_v59 = vmax.f32 %v981_v53, 0.0  ;;  %v1403_v50 = vld [vmem:[%s8475_s5 + $0x1b8] sm:$0xff]  ;;  %v1390_v51 = vld [vmem:[%s8475_s5 + $0x150] sm:$0xff]  ;;  %v6109_v53 = vcombine.high %v1398_v43, %v1402_v48 }
 0x165   : > { %v6551_v57 = vpop.f32.mrf.mxu0  ;;  %v6111_v54 = vcombine.high %v1399_v49, %v1403_v50 }
 0x166   : > { %6584 = vmatprep.mubr.msk.bf16.mxu1 %vm1090_vm2, %v1045_v55  ;;  %v984_v58 = vadd.f32 %v6551_v57, %v7755_v9  ;;  %v1027_v61 = vmax.f32 %v973_v56, 0.0  ;;  %v1394_v55 = vld [vmem:[%s8475_s5 + $0x170] sm:$0xff]  ;;  %v1391_v56 = vld [vmem:[%s8475_s5 + $0x158] sm:$0xff] }
 0x167   : > { %6585 = vmatmul.mubr.msk.bf16.gmra.mxu1 %vm1090_vm2, %v1046_v52  ;;  %v975_v60 = vpop.f32.mrf.mxu0  ;;  %v1395_v57 = vld [vmem:[%s8475_s5 + $0x178] sm:$0xff] }
 0x168   : > { %v1030_v62 = vmax.f32 %v984_v58, 0.0  ;;  %v976_v63 = vadd.f32 %v7755_v9, %v975_v60  ;;  %v6110_v60 = vcombine.low %v1399_v49, %v1403_v50 }
 0x169   : > { %v6554_v0 = vpop.f32.mrf.mxu0 }
 0x16a   : > { %v1028_v1 = vmax.f32 %v976_v63, 0.0  ;;  %v1048_v2 = vpack.c.bf16 %v1030_v62, %v1029_v59  ;;  %v997_v3 = vadd.f32 %v6554_v0, %v7755_v9  ;;  %v6108_v59 = vcombine.low %v1398_v43, %v1402_v48  ;;  %v1359_v43 = vld [vmem:[%s8475_s5 + $0x58] sm:$0xff] }
 0x16b   : > { %v988_v4 = vpop.f32.mrf.mxu0  ;;  %v6101_v62 = vcombine.high %v1390_v51, %v1394_v55  ;;  %v6103_v63 = vcombine.high %v1391_v56, %v1395_v57 }
 0x16c   : > { %v1047_v5 = vpack.c.bf16 %v1028_v1, %v1027_v61  ;;  %v989_v6 = vadd.f32 %v7755_v9, %v988_v4  ;;  %v1033_v10 = vmax.f32 %v997_v3, 0.0  ;;  %v1382_v1 = vld [vmem:[%s8475_s5 + $0x110] sm:$0xff]  ;;  %v1383_v4 = vld [vmem:[%s8475_s5 + $0x118] sm:$0xff] }
 0x16d   : > { %v6555_v7 = vpop.f32.mrf.mxu0  ;;  %v1386_v3 = vld [vmem:[%s8475_s5 + $0x130] sm:$0xff] }
 0x16e   : > { %6588 = vmatprep.mubr.msk.bf16.mxu1 %vm1090_vm2, %v1047_v5  ;;  %v1000_v8 = vadd.f32 %v6555_v7, %v7755_v9  ;;  %v1031_v12 = vmax.f32 %v989_v6, 0.0  ;;  %v1387_v5 = vld [vmem:[%s8475_s5 + $0x138] sm:$0xff]  ;;  %v6100_v6 = vcombine.low %v1390_v51, %v1394_v55  ;;  %v6092_v20 = vcombine.low %v1382_v1, %v1386_v3 }
 0x16f   : > { %6589 = vmatmul.mubr.msk.bf16.gmra.mxu1 %vm1090_vm2, %v1048_v2  ;;  %v991_v11 = vpop.f32.mrf.mxu0 }
 0x170   : > { %v1034_v13 = vmax.f32 %v1000_v8, 0.0  ;;  %v992_v14 = vadd.f32 %v7755_v9, %v991_v11  ;;  %v6057_v9 = vcombine.high %v1348_v18, %v1352_v19  ;;  %v1379_v18 = vld [vmem:[%s8475_s5 + $0xf8] sm:$0xff] }
 0x172   : > { %v1032_v15 = vmax.f32 %v992_v14, 0.0  ;;  %v1050_v16 = vpack.c.bf16 %v1034_v13, %v1033_v10  ;;  %1746 = vmatprep.subr.bf16.mxu0 %v6057_v9  ;;  %v6102_v10 = vcombine.low %v1391_v56, %v1395_v57  ;;  %v6095_v13 = vcombine.high %v1383_v4, %v1387_v5  ;;  %v1374_v14 = vld [vmem:[%s8475_s5 + $0xd0] sm:$0xff] }
 0x173   : > { %1747 = vmatpush1.bf16.msra.mxu0 %v6056_v22  ;;  %v6094_v9 = vcombine.low %v1383_v4, %v1387_v5 }
 0x174   : > { %v1049_v17 = vpack.c.bf16 %v1032_v15, %v1031_v12  ;;  %2118 = vmatprep.subr.bf16.mxu0 %v6117_v30  ;;  %v6093_v12 = vcombine.high %v1382_v1, %v1386_v3 }
 0x176   : > { %6592 = vmatprep.mubr.msk.bf16.mxu1 %vm1090_vm2, %v1049_v17  ;;  %v1375_v17 = vld [vmem:[%s8475_s5 + $0xd8] sm:$0xff] }
 0x177   : > { %6593 = vmatmul.mubr.msk.bf16.gmra.mxu1 %vm1090_vm2, %v1050_v16  ;;  %v1378_v16 = vld [vmem:[%s8475_s5 + $0xf0] sm:$0xff]  ;;  %v6087_v23 = vcombine.high %v1375_v17, %v1379_v18  ;;  %v6086_v33 = vcombine.low %v1375_v17, %v1379_v18 }
 0x178   : > { %1957 = vmatprep.mubr.bf16.mxu1 %v7404_v25  ;;  %v6085_v22 = vcombine.high %v1374_v14, %v1378_v16  ;;  %v6084_v30 = vcombine.low %v1374_v14, %v1378_v16 }
 0x1ff   : > { %v6566_v34 = vpop.f32.mrf.mxu1 }
 0x200   : > { %v1182_v58 = vadd.f32 %v6566_v34, %v7873_v36 }
 0x201   : > { %v1173_v35 = vpop.f32.mrf.mxu1 }
 0x202   : > { %v1174_v38 = vadd.f32 %v7873_v36, %v1173_v35  ;;  %v1302_v2 = vmax.f32 %v1182_v58, 0.0  ;;  %v6077_v35 = vcombine.high %v1366_v24, %v1370_v27 }
 0x203   : > { %v6567_v37 = vpop.f32.mrf.mxu1 }
 0x204   : > { %v1300_v45 = vmax.f32 %v1174_v38, 0.0  ;;  %v1185_v44 = vadd.f32 %v6567_v37, %v7873_v36  ;;  %v1358_v38 = vld [vmem:[%s8475_s5 + $0x50] sm:$0xff] }
 0x205   : > { %v1176_v39 = vpop.f32.mrf.mxu1 }
 0x206   : > { %v1177_v40 = vadd.f32 %v7873_v36, %v1176_v39  ;;  %v1303_v61 = vmax.f32 %v1185_v44, 0.0  ;;  %v1350_v44 = vld [vmem:[%s8475_s5 + $0x10] sm:$0xff] }
 0x207   : > { %v7877_v42 = vpop.f32.mrf.mxu1 }
 0x208   : > { %v1301_v46 = vmax.f32 %v1177_v40, 0.0  ;;  %v7923_v7 = vpack.c.bf16 %v1303_v61, %v1302_v2  ;;  %v1198_v39 = vadd.f32 %v7877_v42, %v7873_v36  ;;  %v1362_v40 = vld [vmem:[%s8475_s5 + $0x70] sm:$0xff] }
 0x209   : > { %v1189_v41 = vpop.f32.mrf.mxu1  ;;  %v6069_v50 = vcombine.high %v1358_v38, %v1362_v40  ;;  %v6068_v55 = vcombine.low %v1358_v38, %v1362_v40 }
 0x20a   : > { %v7892_v47 = vpack.c.bf16 %v1301_v46, %v1300_v45  ;;  %v1190_v15 = vadd.f32 %v7873_v36, %v1189_v41  ;;  %v1363_v45 = vld [vmem:[%s8475_s5 + $0x78] sm:$0xff]  ;;  %v6076_v46 = vcombine.low %v1366_v24, %v1370_v27  ;;  %v1306_v51 = vmax.f32 %v1198_v39, 0.0 }
 0x20b   : > { %v6571_v52 = vpop.f32.mrf.mxu1  ;;  %v6071_v41 = vcombine.high %v1359_v43, %v1363_v45  ;;  %v6070_v56 = vcombine.low %v1359_v43, %v1363_v45 }
 0x20c   : > { %1765 = vmatmul.mubr.bf16.vlgmr.msra.gmra.mxu0 %v7892_v47  ;;  %1958 = vmatmul.mubr.bf16.vlgmr.msra.gmra.mxu1 %v7892_v47  ;;  %v1304_v26 = vmax.f32 %v1190_v15, 0.0  ;;  %v1201_v31 = vadd.f32 %v6571_v52, %v7873_v36  ;;  %v1354_v52 = vld [vmem:[%s8475_s5 + $0x30] sm:$0xff] }
 0x20d   : > { %2119 = vmatpush1.bf16.msra.mxu0 %v6116_v29  ;;  %2312 = vmatpush1.bf16.msra.mxu1 %v6118_v32  ;;  %v1192_v0 = vpop.f32.mrf.mxu1  ;;  %v1371_v29 = vld [vmem:[%s8475_s5 + $0xb8] sm:$0xff]  ;;  %v6061_v61 = vcombine.high %v1350_v44, %v1354_v52  ;;  %v6060_v1 = vcombine.low %v1350_v44, %v1354_v52 }
 0x20e   : > { %1774 = vmatprep.mubr.bf16.mxu0 %v7404_v25  ;;  %1967 = vmatprep.mubr.bf16.mxu1 %v7404_v25  ;;  %v1193_v8 = vadd.f32 %v7873_v36, %v1192_v0  ;;  %v6079_v37 = vcombine.high %v1367_v28, %v1371_v29  ;;  %v1307_v42 = vmax.f32 %v1201_v31, 0.0  ;;  %v6078_v48 = vcombine.low %v1367_v28, %v1371_v29 }
 0x20f   : > { %2120 = vmatprep.subr.bf16.mxu0 %v6109_v53  ;;  %2313 = vmatprep.subr.bf16.mxu1 %v6111_v54  ;;  %v7926_v11 = vpop.f32.mrf.mxu1  ;;  %v1351_v53 = vld [vmem:[%s8475_s5 + $0x18] sm:$0xff] }
 0x210   : > { %v1305_v19 = vmax.f32 %v1193_v8, 0.0  ;;  %v1355_v54 = vld [vmem:[%s8475_s5 + $0x38] sm:$0xff]  ;;  %v7990_v57 = vpack.c.bf16 %v1307_v42, %v1306_v51  ;;  %v1214_v4 = vadd.f32 %v7926_v11, %v7873_v36 }
 0x211   : > { %2121 = vmatpush1.bf16.msra.mxu0 %v6108_v59  ;;  %2314 = vmatpush1.bf16.msra.mxu1 %v6110_v60  ;;  %v1205_v21 = vpop.f32.mrf.mxu1  ;;  %v6062_v2 = vcombine.low %v1351_v53, %v1355_v54 }
 0x212   : > { %2122 = vmatprep.subr.bf16.mxu0 %v6101_v62  ;;  %2315 = vmatprep.subr.bf16.mxu1 %v6103_v63  ;;  %v7958_v32 = vpack.c.bf16 %v1305_v19, %v1304_v26  ;;  %v1206_v58 = vadd.f32 %v7873_v36, %v1205_v21  ;;  %v6063_v62 = vcombine.high %v1351_v53, %v1355_v54 }
 0x213   : > { %v6575_v34 = vpop.f32.mrf.mxu1 }
 0x214   : > { %1775 = vmatmul.mubr.bf16.gmra.mxu0 %v7923_v7  ;;  %1968 = vmatmul.mubr.bf16.gmra.mxu1 %v7923_v7  ;;  %v1308_v63 = vmax.f32 %v1206_v58, 0.0  ;;  %v1217_v5 = vadd.f32 %v6575_v34, %v7873_v36 }
 0x215   : > { %1784 = vmatprep.mubr.bf16.mxu0 %v7404_v25  ;;  %1977 = vmatprep.mubr.bf16.mxu1 %v7404_v25  ;;  %v1208_v49 = vpop.f32.mrf.mxu1 }
 0x216   : > { %2123 = vmatpush1.bf16.msra.mxu0 %v6100_v6  ;;  %2316 = vmatpush1.bf16.msra.mxu1 %v6102_v10  ;;  %v1209_v59 = vadd.f32 %v7873_v36, %v1208_v49  ;;  %v1310_v10 = vmax.f32 %v1214_v4, 0.0 }
 0x217   : > { %2124 = vmatprep.subr.bf16.mxu0 %v6093_v12  ;;  %2317 = vmatprep.subr.bf16.mxu1 %v6095_v13  ;;  %v6578_v60 = vpop.f32.mrf.mxu1  ;;  %v1311_v12 = vmax.f32 %v1217_v5, 0.0 }
 0x218   : > { %v1309_v0 = vmax.f32 %v1209_v59, 0.0 }
 0x219   : > { %v1221_v3 = vpop.f32.mrf.mxu1  ;;  %v8007_v14 = vpack.c.bf16 %v1311_v12, %v1310_v10 }
 0x21a   : > { %2125 = vmatpush1.bf16.msra.mxu0 %v6092_v20  ;;  %2318 = vmatpush1.bf16.msra.mxu1 %v6094_v9  ;;  %v8001_v6 = vpack.c.bf16 %v1309_v0, %v1308_v63  ;;  %v1222_v11 = vadd.f32 %v7873_v36, %v1221_v3  ;;  %v1230_v20 = vadd.f32 %v6578_v60, %v7873_v36 }
 0x21b   : > { %2126 = vmatprep.subr.bf16.mxu0 %v6085_v22  ;;  %2319 = vmatprep.subr.bf16.mxu1 %v6087_v23  ;;  %v6579_v8 = vpop.f32.mrf.mxu1 }
 0x21c   : > { %1785 = vmatmul.mubr.bf16.gmra.mxu0 %v7958_v32  ;;  %1978 = vmatmul.mubr.bf16.gmra.mxu1 %v7958_v32  ;;  %v1312_v17 = vmax.f32 %v1222_v11, 0.0  ;;  %v1233_v9 = vadd.f32 %v6579_v8, %v7873_v36  ;;  %v1314_v23 = vmax.f32 %v1230_v20, 0.0 }
 0x21d   : > { %1794 = vmatprep.mubr.bf16.mxu0 %v7404_v25  ;;  %1987 = vmatprep.mubr.bf16.mxu1 %v7404_v25  ;;  %v1224_v13 = vpop.f32.mrf.mxu1 }
 0x21e   : > { %2127 = vmatpush1.bf16.msra.mxu0 %v6084_v30  ;;  %2320 = vmatpush1.bf16.msra.mxu1 %v6086_v33  ;;  %v1225_v15 = vadd.f32 %v7873_v36, %v1224_v13  ;;  %v1315_v24 = vmax.f32 %v1233_v9, 0.0 }
 0x21f   : > { %2128 = vmatprep.subr.bf16.mxu0 %v6077_v35  ;;  %2321 = vmatprep.subr.bf16.mxu1 %v6079_v37  ;;  %v6582_v16 = vpop.f32.mrf.mxu1 }
 0x220   : > { %v1313_v18 = vmax.f32 %v1225_v15, 0.0  ;;  %v8023_v27 = vpack.c.bf16 %v1315_v24, %v1314_v23  ;;  %v1246_v35 = vadd.f32 %v6582_v16, %v7873_v36 }
 0x221   : > { %v1237_v19 = vpop.f32.mrf.mxu1 }
 0x222   : > { %2129 = vmatpush1.bf16.msra.mxu0 %v6076_v46  ;;  %2322 = vmatpush1.bf16.msra.mxu1 %v6078_v48  ;;  %v8017_v21 = vpack.c.bf16 %v1313_v18, %v1312_v17  ;;  %v1238_v28 = vadd.f32 %v7873_v36, %v1237_v19  ;;  %v1318_v40 = vmax.f32 %v1246_v35, 0.0 }
 0x223   : > { %2130 = vmatprep.subr.bf16.mxu0 %v6069_v50  ;;  %2323 = vmatprep.subr.bf16.mxu1 %v6071_v41  ;;  %v6583_v22 = vpop.f32.mrf.mxu1 }
 0x224   : > { %1795 = vmatmul.mubr.bf16.gmra.mxu0 %v7990_v57  ;;  %1988 = vmatmul.mubr.bf16.gmra.mxu1 %v7990_v57  ;;  %v1316_v31 = vmax.f32 %v1238_v28, 0.0  ;;  %v1249_v37 = vadd.f32 %v6583_v22, %v7873_v36 }
 0x225   : > { %1804 = vmatprep.mubr.bf16.mxu0 %v7404_v25  ;;  %1997 = vmatprep.mubr.bf16.mxu1 %v7404_v25  ;;  %v1240_v26 = vpop.f32.mrf.mxu1 }
 0x226   : > { %2131 = vmatpush1.bf16.msra.mxu0 %v6068_v55  ;;  %2324 = vmatpush1.bf16.msra.mxu1 %v6070_v56  ;;  %v1241_v29 = vadd.f32 %v7873_v36, %v1240_v26  ;;  %v1319_v43 = vmax.f32 %v1249_v37, 0.0 }
 0x227   : > { %2132 = vmatprep.subr.bf16.mxu0 %v6061_v61  ;;  %2325 = vmatprep.subr.bf16.mxu1 %v6063_v62  ;;  %v6586_v30 = vpop.f32.mrf.mxu1 }
 0x228   : > { %v1317_v33 = vmax.f32 %v1241_v29, 0.0  ;;  %v8039_v42 = vpack.c.bf16 %v1319_v43, %v1318_v40  ;;  %v1262_v51 = vadd.f32 %v6586_v30, %v7873_v36 }
 0x229   : > { %v1253_v34 = vpop.f32.mrf.mxu1 }
 0x22a   : > { %2133 = vmatpush1.bf16.msra.mxu0 %v6060_v1  ;;  %2326 = vmatpush1.bf16.msra.mxu1 %v6062_v2  ;;  %v8033_v38 = vpack.c.bf16 %v1317_v33, %v1316_v31  ;;  %v1254_v46 = vadd.f32 %v7873_v36, %v1253_v34  ;;  %v1322_v55 = vmax.f32 %v1262_v51, 0.0 }
 0x22b   : > { %v6587_v39 = vpop.f32.mrf.mxu1 }
 0x22c   : > { %1805 = vmatmul.mubr.bf16.gmra.mxu0 %v8001_v6  ;;  %1998 = vmatmul.mubr.bf16.gmra.mxu1 %v8001_v6  ;;  %v1320_v50 = vmax.f32 %v1254_v46, 0.0  ;;  %v1265_v52 = vadd.f32 %v6587_v39, %v7873_v36 }
 0x22d   : > { %1814 = vmatprep.mubr.bf16.mxu0 %v7404_v25  ;;  %2007 = vmatprep.mubr.bf16.mxu1 %v7404_v25  ;;  %v1256_v45 = vpop.f32.mrf.mxu1 }
 0x22e   : > { %v1257_v48 = vadd.f32 %v7873_v36, %v1256_v45  ;;  %v1323_v56 = vmax.f32 %v1265_v52, 0.0 }
 0x22f   : > { %v6590_v49 = vpop.f32.mrf.mxu1 }
 0x230   : > { %v1321_v41 = vmax.f32 %v1257_v48, 0.0  ;;  %v8055_v59 = vpack.c.bf16 %v1323_v56, %v1322_v55  ;;  %v1278_v2 = vadd.f32 %v6590_v49, %v7873_v36 }
 0x231   : > { %v1269_v44 = vpop.f32.mrf.mxu1 }
 0x232   : > { %v8049_v53 = vpack.c.bf16 %v1321_v41, %v1320_v50  ;;  %v1270_v60 = vadd.f32 %v7873_v36, %v1269_v44  ;;  %v1326_v8 = vmax.f32 %v1278_v2, 0.0 }
 0x233   : > { %v6591_v54 = vpop.f32.mrf.mxu1 }
 0x234   : > { %1815 = vmatmul.mubr.bf16.gmra.mxu0 %v8007_v14  ;;  %2008 = vmatmul.mubr.bf16.gmra.mxu1 %v8007_v14  ;;  %v1324_v63 = vmax.f32 %v1270_v60, 0.0  ;;  %v1281_v3 = vadd.f32 %v6591_v54, %v7873_v36 }
 0x235   : > { %1824 = vmatprep.mubr.bf16.mxu0 %v7404_v25  ;;  %2017 = vmatprep.mubr.bf16.mxu1 %v7404_v25  ;;  %v1272_v58 = vpop.f32.mrf.mxu1 }
 0x236   : > { %v1273_v61 = vadd.f32 %v7873_v36, %v1272_v58  ;;  %v1327_v10 = vmax.f32 %v1281_v3, 0.0 }
 0x237   : > { %v6594_v62 = vpop.f32.mrf.mxu1 }
 0x238   : > { %v1325_v0 = vmax.f32 %v1273_v61, 0.0  ;;  %v8071_v13 = vpack.c.bf16 %v1327_v10, %v1326_v8  ;;  %v1294_v18 = vadd.f32 %v6594_v62, %v7873_v36 }
 0x239   : > { %v1285_v1 = vpop.f32.mrf.mxu1 }
 0x23a   : > { %v8065_v4 = vpack.c.bf16 %v1325_v0, %v1324_v63  ;;  %v1286_v11 = vadd.f32 %v7873_v36, %v1285_v1  ;;  %v1330_v9 = vmax.f32 %v1294_v18, 0.0 }
 0x23b   : > { %v6595_v5 = vpop.f32.mrf.mxu1 }
 0x23c   : > { %1825 = vmatmul.mubr.bf16.gmra.mxu0 %v8017_v21  ;;  %2018 = vmatmul.mubr.bf16.gmra.mxu1 %v8017_v21  ;;  %v1328_v16 = vmax.f32 %v1286_v11, 0.0  ;;  %v1297_v19 = vadd.f32 %v6595_v5, %v7873_v36 }
 0x23d   : > { %1834 = vmatprep.mubr.bf16.mxu0 %v7404_v25  ;;  %2027 = vmatprep.mubr.bf16.mxu1 %v7404_v25  ;;  %v1288_v12 = vpop.f32.mrf.mxu1 }
 0x23e   : > { %v1289_v15 = vadd.f32 %v7873_v36, %v1288_v12  ;;  %v1331_v22 = vmax.f32 %v1297_v19, 0.0 }
 0x240   : > { %v1329_v17 = vmax.f32 %v1289_v15, 0.0  ;;  %v8087_v23 = vpack.c.bf16 %v1331_v22, %v1330_v9 }
 0x242   : > { %v8081_v20 = vpack.c.bf16 %v1329_v17, %v1328_v16 }
 0x244   : > { %1835 = vmatmul.mubr.bf16.gmra.mxu0 %v8023_v27  ;;  %2028 = vmatmul.mubr.bf16.gmra.mxu1 %v8023_v27 }
 0x245   : > { %1844 = vmatprep.mubr.bf16.mxu0 %v7404_v25  ;;  %2037 = vmatprep.mubr.bf16.mxu1 %v7404_v25 }
 0x24c   : > { %1845 = vmatmul.mubr.bf16.gmra.mxu0 %v8033_v38  ;;  %2038 = vmatmul.mubr.bf16.gmra.mxu1 %v8033_v38 }
 0x24d   : > { %1854 = vmatprep.mubr.bf16.mxu0 %v7404_v25  ;;  %2047 = vmatprep.mubr.bf16.mxu1 %v7404_v25 }
 0x254   : > { %1855 = vmatmul.mubr.bf16.gmra.mxu0 %v8039_v42  ;;  %2048 = vmatmul.mubr.bf16.gmra.mxu1 %v8039_v42 }
 0x255   : > { %1864 = vmatprep.mubr.bf16.mxu0 %v7404_v25  ;;  %2057 = vmatprep.mubr.bf16.mxu1 %v7404_v25 }
 0x25c   : > { %1865 = vmatmul.mubr.bf16.gmra.mxu0 %v8049_v53  ;;  %2058 = vmatmul.mubr.bf16.gmra.mxu1 %v8049_v53 }
 0x25d   : > { %1874 = vmatprep.mubr.bf16.mxu0 %v7404_v25  ;;  %2067 = vmatprep.mubr.bf16.mxu1 %v7404_v25 }
 0x264   : > { %1875 = vmatmul.mubr.bf16.gmra.mxu0 %v8055_v59  ;;  %2068 = vmatmul.mubr.bf16.gmra.mxu1 %v8055_v59 }
 0x265   : > { %1884 = vmatprep.mubr.bf16.mxu0 %v7404_v25  ;;  %2077 = vmatprep.mubr.bf16.mxu1 %v7404_v25 }
 0x26c   : > { %1885 = vmatmul.mubr.bf16.gmra.mxu0 %v8065_v4  ;;  %2078 = vmatmul.mubr.bf16.gmra.mxu1 %v8065_v4 }
 0x26d   : > { %1894 = vmatprep.mubr.bf16.mxu0 %v7404_v25  ;;  %2087 = vmatprep.mubr.bf16.mxu1 %v7404_v25 }
 0x274   : > { %1895 = vmatmul.mubr.bf16.gmra.mxu0 %v8071_v13  ;;  %2088 = vmatmul.mubr.bf16.gmra.mxu1 %v8071_v13 }
 0x275   : > { %1904 = vmatprep.mubr.bf16.mxu0 %v7404_v25  ;;  %2097 = vmatprep.mubr.bf16.mxu1 %v7404_v25 }
 0x27c   : > { %1905 = vmatmul.mubr.bf16.gmra.mxu0 %v8081_v20  ;;  %2098 = vmatmul.mubr.bf16.gmra.mxu1 %v8081_v20 }
 0x27d   : > { %1914 = vmatprep.mubr.bf16.mxu0 %v7404_v25  ;;  %2107 = vmatprep.mubr.bf16.mxu1 %v7404_v25 }
 0x284   : > { %1915 = vmatmul.mubr.bf16.gmra.mxu0 %v8087_v23  ;;  %2108 = vmatmul.mubr.bf16.gmra.mxu1 %v8087_v23 }
 0x285   : > { %2150 = vmatprep.mubr.bf16.mxu0 %v7404_v25  ;;  %2343 = vmatprep.mubr.bf16.mxu1 %v7404_v25 }
 0x28c   : > { %2151 = vmatmul.mubr.bf16.vlgmr.msra.gmra.mxu0 %v7892_v47  ;;  %2344 = vmatmul.mubr.bf16.vlgmr.msra.gmra.mxu1 %v7892_v47 }
 0x28d   : > { %2160 = vmatprep.mubr.bf16.mxu0 %v7404_v25  ;;  %2353 = vmatprep.mubr.bf16.mxu1 %v7404_v25 }
 0x294   : > { %2161 = vmatmul.mubr.bf16.gmra.mxu0 %v7923_v7  ;;  %2354 = vmatmul.mubr.bf16.gmra.mxu1 %v7923_v7 }
 0x295   : > { %2170 = vmatprep.mubr.bf16.mxu0 %v7404_v25  ;;  %2363 = vmatprep.mubr.bf16.mxu1 %v7404_v25 }
 0x29c   : > { %2171 = vmatmul.mubr.bf16.gmra.mxu0 %v7958_v32  ;;  %2364 = vmatmul.mubr.bf16.gmra.mxu1 %v7958_v32 }
 0x29d   : > { %2180 = vmatprep.mubr.bf16.mxu0 %v7404_v25  ;;  %2373 = vmatprep.mubr.bf16.mxu1 %v7404_v25 }
 0x2a4   : > { %2181 = vmatmul.mubr.bf16.gmra.mxu0 %v7990_v57  ;;  %2374 = vmatmul.mubr.bf16.gmra.mxu1 %v7990_v57 }
 0x2a5   : > { %2190 = vmatprep.mubr.bf16.mxu0 %v7404_v25  ;;  %2383 = vmatprep.mubr.bf16.mxu1 %v7404_v25 }
 0x2ac   : > { %2191 = vmatmul.mubr.bf16.gmra.mxu0 %v8001_v6  ;;  %2384 = vmatmul.mubr.bf16.gmra.mxu1 %v8001_v6 }
 0x2ad   : > { %2200 = vmatprep.mubr.bf16.mxu0 %v7404_v25  ;;  %2393 = vmatprep.mubr.bf16.mxu1 %v7404_v25 }
 0x2b4   : > { %2201 = vmatmul.mubr.bf16.gmra.mxu0 %v8007_v14  ;;  %2394 = vmatmul.mubr.bf16.gmra.mxu1 %v8007_v14 }
 0x2b5   : > { %2210 = vmatprep.mubr.bf16.mxu0 %v7404_v25  ;;  %2403 = vmatprep.mubr.bf16.mxu1 %v7404_v25 }
 0x2bc   : > { %2211 = vmatmul.mubr.bf16.gmra.mxu0 %v8017_v21  ;;  %2404 = vmatmul.mubr.bf16.gmra.mxu1 %v8017_v21 }
 0x2bd   : > { %2220 = vmatprep.mubr.bf16.mxu0 %v7404_v25  ;;  %2413 = vmatprep.mubr.bf16.mxu1 %v7404_v25 }
 0x2c4   : > { %2221 = vmatmul.mubr.bf16.gmra.mxu0 %v8023_v27  ;;  %2414 = vmatmul.mubr.bf16.gmra.mxu1 %v8023_v27 }
 0x2c5   : > { %2230 = vmatprep.mubr.bf16.mxu0 %v7404_v25  ;;  %2423 = vmatprep.mubr.bf16.mxu1 %v7404_v25 }
 0x2cc   : > { %v1766_v36 = vpop.f32.mrf.mxu0  ;;  %v1959_v47 = vpop.f32.mrf.mxu1  ;;  %2231 = vmatmul.mubr.bf16.gmra.mxu0 %v8033_v38  ;;  %2424 = vmatmul.mubr.bf16.gmra.mxu1 %v8033_v38 }
 0x2cd   : > { %2240 = vmatprep.mubr.bf16.mxu0 %v7404_v25  ;;  %2433 = vmatprep.mubr.bf16.mxu1 %v7404_v25 }
 0x2ce   : > { %v1768_v7 = vpop.f32.mrf.mxu0  ;;  %v1961_v32 = vpop.f32.mrf.mxu1 }
 0x2d0   : > { %v1770_v57 = vpop.f32.mrf.mxu0  ;;  %v1963_v6 = vpop.f32.mrf.mxu1 }
 0x2d1   : > { %v2504_v14 = vmax.f32 %v1766_v36, %v1770_v57  ;;  %v2522_v21 = vmax.f32 %v1959_v47, %v1963_v6 }
 0x2d2   : > { %v1772_v24 = vpop.f32.mrf.mxu0  ;;  %v1965_v26 = vpop.f32.mrf.mxu1 }
 0x2d3   : > { %v2513_v27 = vmax.f32 %v1768_v7, %v1772_v24  ;;  %v2531_v28 = vmax.f32 %v1961_v32, %v1965_v26 }
 0x2d4   : > { %v1776_v29 = vpop.f32.mrf.mxu0  ;;  %v1969_v30 = vpop.f32.mrf.mxu1  ;;  %2241 = vmatmul.mubr.bf16.gmra.mxu0 %v8039_v42  ;;  %2434 = vmatmul.mubr.bf16.gmra.mxu1 %v8039_v42 }
 0x2d5   : > { %v2505_v31 = vmax.f32 %v2504_v14, %v1776_v29  ;;  %v2523_v33 = vmax.f32 %v2522_v21, %v1969_v30  ;;  %2250 = vmatprep.mubr.bf16.mxu0 %v7404_v25  ;;  %2443 = vmatprep.mubr.bf16.mxu1 %v7404_v25 }
 0x2d6   : > { %v1778_v34 = vpop.f32.mrf.mxu0  ;;  %v1971_v35 = vpop.f32.mrf.mxu1 }
 0x2d7   : > { %v2514_v37 = vmax.f32 %v2513_v27, %v1778_v34  ;;  %v2532_v38 = vmax.f32 %v2531_v28, %v1971_v35 }
 0x2d8   : > { %v1780_v39 = vpop.f32.mrf.mxu0  ;;  %v1973_v40 = vpop.f32.mrf.mxu1 }
 0x2d9   : > { %v2506_v43 = vmax.f32 %v2505_v31, %v1780_v39  ;;  %v2524_v45 = vmax.f32 %v2523_v33, %v1973_v40 }
 0x2da   : > { %v1782_v46 = vpop.f32.mrf.mxu0  ;;  %v1975_v48 = vpop.f32.mrf.mxu1 }
 0x2db   : > { %v2515_v49 = vmax.f32 %v2514_v37, %v1782_v46  ;;  %v2533_v50 = vmax.f32 %v2532_v38, %v1975_v48  ;;  %v2507_v41 = vrot.slane %v2506_v43, 4  ;;  %v2525_v55 = vrot.slane %v2524_v45, 4 }
 0x2dc   : > { %v1786_v42 = vpop.f32.mrf.mxu0  ;;  %v1979_v44 = vpop.f32.mrf.mxu1  ;;  %2251 = vmatmul.mubr.bf16.gmra.mxu0 %v8049_v53  ;;  %2444 = vmatmul.mubr.bf16.gmra.mxu1 %v8049_v53 }
 0x2dd   : > { %2260 = vmatprep.mubr.bf16.mxu0 %v7404_v25  ;;  %2453 = vmatprep.mubr.bf16.mxu1 %v7404_v25  ;;  %v2508_v54 = vmax.f32 %v2506_v43, %v2507_v41  ;;  %v2516_v60 = vrot.slane %v2515_v49, 4  ;;  %v2534_v61 = vrot.slane %v2533_v50, 4  ;;  %v2526_v3 = vmax.f32 %v2524_v45, %v2525_v55 }
 0x2de   : > { %v1788_v51 = vpop.f32.mrf.mxu0  ;;  %v1981_v52 = vpop.f32.mrf.mxu1 }
 0x2df   : > { %v2509_v2 = vrot.slane %v2508_v54, 2  ;;  %v2517_v12 = vmax.f32 %v2515_v49, %v2516_v60  ;;  %v2535_v11 = vmax.f32 %v2533_v50, %v2534_v61  ;;  %v2527_v36 = vrot.slane %v2526_v3, 2 }
 0x2e0   : > { %v1790_v56 = vpop.f32.mrf.mxu0  ;;  %v1983_v58 = vpop.f32.mrf.mxu1 }
 0x2e1   : > { %v2576_v62 = vmax.f32 %v1786_v42, %v1790_v56  ;;  %v2594_v63 = vmax.f32 %v1979_v44, %v1983_v58  ;;  %v2510_v22 = vmax.f32 %v2508_v54, %v2509_v2  ;;  %v2518_v6 = vrot.slane %v2517_v12, 2 }
 0x2e2   : > { %v1792_v0 = vpop.f32.mrf.mxu0  ;;  %v1985_v1 = vpop.f32.mrf.mxu1  ;;  %v2528_v30 = vmax.f32 %v2526_v3, %v2527_v36 }
 0x2e3   : > { %v2585_v5 = vmax.f32 %v1788_v51, %v1792_v0  ;;  %v2603_v53 = vmax.f32 %v1981_v52, %v1985_v1  ;;  %v2511_v29 = vrot.slane %v2510_v22, 1  ;;  %v2519_v39 = vmax.f32 %v2517_v12, %v2518_v6 }
 0x2e4   : > { %v1796_v8 = vpop.f32.mrf.mxu0  ;;  %v1989_v10 = vpop.f32.mrf.mxu1  ;;  %2261 = vmatmul.mubr.bf16.gmra.mxu0 %v8055_v59  ;;  %2454 = vmatmul.mubr.bf16.gmra.mxu1 %v8055_v59  ;;  %v2536_v59 = vrot.slane %v2535_v11, 2  ;;  %v2529_v42 = vrot.slane %v2528_v30, 1 }
 0x2e5   : > { %2270 = vmatprep.mubr.bf16.mxu0 %v7404_v25  ;;  %2463 = vmatprep.mubr.bf16.mxu1 %v7404_v25  ;;  %v2577_v15 = vmax.f32 %v2576_v62, %v1796_v8  ;;  %v2595_v16 = vmax.f32 %v2594_v63, %v1989_v10  ;;  %v2512_v41 = vmax.f32 %v2510_v22, %v2511_v29  ;;  %v2520_v56 = vrot.slane %v2519_v39, 1 }
 0x2e6   : > { %v1798_v17 = vpop.f32.mrf.mxu0  ;;  %v1991_v18 = vpop.f32.mrf.mxu1  ;;  %v2537_v40 = vmax.f32 %v2535_v11, %v2536_v59 }
 0x2e7   : > { %v2586_v19 = vmax.f32 %v2585_v5, %v1798_v17  ;;  %v2604_v9 = vmax.f32 %v2603_v53, %v1991_v18  ;;  %v2530_v5 = vmax.f32 %v2528_v30, %v2529_v42  ;;  %v2521_v18 = vmax.f32 %v2519_v39, %v2520_v56 }
 0x2e8   : > { %v1800_v47 = vpop.f32.mrf.mxu0  ;;  %v1993_v7 = vpop.f32.mrf.mxu1  ;;  %v2538_v58 = vrot.slane %v2537_v40, 1 }
 0x2e9   : > { %v2578_v32 = vmax.f32 %v2577_v15, %v1800_v47  ;;  %v2596_v57 = vmax.f32 %v2595_v16, %v1993_v7 }
 0x2ea   : > { %v1802_v14 = vpop.f32.mrf.mxu0  ;;  %v1995_v21 = vpop.f32.mrf.mxu1 }
 0x2eb   : > { %v2579_v24 = vrot.slane %v2578_v32, 4  ;;  %v2597_v26 = vrot.slane %v2596_v57, 4  ;;  %v2587_v27 = vmax.f32 %v2586_v19, %v1802_v14  ;;  %v2605_v28 = vmax.f32 %v2604_v9, %v1995_v21 }
 0x2ec   : > { %v1806_v31 = vpop.f32.mrf.mxu0  ;;  %v1999_v33 = vpop.f32.mrf.mxu1  ;;  %2271 = vmatmul.mubr.bf16.gmra.mxu0 %v8065_v4  ;;  %2464 = vmatmul.mubr.bf16.gmra.mxu1 %v8065_v4  ;;  %v2539_v19 = vmax.f32 %v2537_v40, %v2538_v58 }
 0x2ed   : > { %v2580_v34 = vmax.f32 %v2578_v32, %v2579_v24  ;;  %v2598_v35 = vmax.f32 %v2596_v57, %v2597_v26  ;;  %v2588_v37 = vrot.slane %v2587_v27, 4  ;;  %v2606_v38 = vrot.slane %v2605_v28, 4  ;;  %2280 = vmatprep.mubr.bf16.mxu0 %v7404_v25  ;;  %2473 = vmatprep.mubr.bf16.mxu1 %v7404_v25 }
 0x2ee   : > { %v1808_v43 = vpop.f32.mrf.mxu0  ;;  %v2001_v45 = vpop.f32.mrf.mxu1 }
 0x2ef   : > { %v2581_v46 = vrot.slane %v2580_v34, 2  ;;  %v2599_v48 = vrot.slane %v2598_v35, 2  ;;  %v2589_v49 = vmax.f32 %v2587_v27, %v2588_v37  ;;  %v2607_v50 = vmax.f32 %v2605_v28, %v2606_v38 }
 0x2f0   : > { %v1810_v44 = vpop.f32.mrf.mxu0  ;;  %v2003_v4 = vpop.f32.mrf.mxu1 }
 0x2f1   : > { %v2582_v51 = vmax.f32 %v2580_v34, %v2581_v46  ;;  %v2600_v52 = vmax.f32 %v2598_v35, %v2599_v48  ;;  %v2590_v54 = vrot.slane %v2589_v49, 2  ;;  %v2608_v55 = vrot.slane %v2607_v50, 2 }
 0x2f2   : > { %v2648_v60 = vmax.f32 %v1806_v31, %v1810_v44  ;;  %v2666_v61 = vmax.f32 %v1999_v33, %v2003_v4  ;;  %v1812_v62 = vpop.f32.mrf.mxu0  ;;  %v2005_v63 = vpop.f32.mrf.mxu1 }
 0x2f3   : > { %v2583_v0 = vrot.slane %v2582_v51, 1  ;;  %v2601_v1 = vrot.slane %v2600_v52, 1  ;;  %v2591_v2 = vmax.f32 %v2589_v49, %v2590_v54  ;;  %v2609_v3 = vmax.f32 %v2607_v50, %v2608_v55 }
 0x2f4   : > { %v2657_v53 = vmax.f32 %v1808_v43, %v1812_v62  ;;  %v2675_v8 = vmax.f32 %v2001_v45, %v2005_v63  ;;  %v1816_v10 = vpop.f32.mrf.mxu0  ;;  %v2009_v12 = vpop.f32.mrf.mxu1  ;;  %2281 = vmatmul.mubr.bf16.gmra.mxu0 %v8071_v13  ;;  %2474 = vmatmul.mubr.bf16.gmra.mxu1 %v8071_v13 }
 0x2f5   : > { %v2584_v11 = vmax.f32 %v2582_v51, %v2583_v0  ;;  %v2602_v15 = vmax.f32 %v2600_v52, %v2601_v1  ;;  %v2592_v16 = vrot.slane %v2591_v2, 1  ;;  %v2610_v17 = vrot.slane %v2609_v3, 1  ;;  %2290 = vmatprep.mubr.bf16.mxu0 %v7404_v25  ;;  %2483 = vmatprep.mubr.bf16.mxu1 %v7404_v25 }
 0x2f6   : > { %v2649_v9 = vmax.f32 %v2648_v60, %v1816_v10  ;;  %v2667_v22 = vmax.f32 %v2666_v61, %v2009_v12  ;;  %v1818_v36 = vpop.f32.mrf.mxu0  ;;  %v2011_v47 = vpop.f32.mrf.mxu1 }
 0x2f7   : > { %v8150_v7 = vsel %vm3152_vm3, %v2584_v11, %v2512_v41  ;;  %v8153_v32 = vsel %vm3152_vm3, %v2602_v15, %v2530_v5  ;;  %v2593_v13 = vmax.f32 %v2591_v2, %v2592_v16  ;;  %v2611_v57 = vmax.f32 %v2609_v3, %v2610_v17 }
 0x2f8   : > { %v2658_v6 = vmax.f32 %v2657_v53, %v1818_v36  ;;  %v2676_v59 = vmax.f32 %v2675_v8, %v2011_v47  ;;  %v1820_v14 = vpop.f32.mrf.mxu0  ;;  %v2013_v21 = vpop.f32.mrf.mxu1 }
 0x2f9   : > { %v8156_v24 = vsel %vm3152_vm3, %v2593_v13, %v2521_v18  ;;  %v8159_v26 = vsel %vm3152_vm3, %v2611_v57, %v2539_v19  ;;  %v2650_v27 = vmax.f32 %v2649_v9, %v1820_v14  ;;  %v2668_v28 = vmax.f32 %v2667_v22, %v2013_v21 }
 0x2fa   : > { %v1822_v29 = vpop.f32.mrf.mxu0  ;;  %v2015_v30 = vpop.f32.mrf.mxu1 }
 0x2fb   : > { %v2651_v31 = vrot.slane %v2650_v27, 4  ;;  %v2669_v33 = vrot.slane %v2668_v28, 4  ;;  %v2659_v34 = vmax.f32 %v2658_v6, %v1822_v29  ;;  %v2677_v35 = vmax.f32 %v2676_v59, %v2015_v30 }
 0x2fc   : > { %v1826_v37 = vpop.f32.mrf.mxu0  ;;  %v2019_v38 = vpop.f32.mrf.mxu1  ;;  %2291 = vmatmul.mubr.bf16.gmra.mxu0 %v8081_v20  ;;  %2484 = vmatmul.mubr.bf16.gmra.mxu1 %v8081_v20 }
 0x2fd   : > { %v2652_v39 = vmax.f32 %v2650_v27, %v2651_v31  ;;  %v2670_v40 = vmax.f32 %v2668_v28, %v2669_v33  ;;  %v2660_v43 = vrot.slane %v2659_v34, 4  ;;  %v2678_v45 = vrot.slane %v2677_v35, 4  ;;  %2300 = vmatprep.mubr.bf16.mxu0 %v7404_v25  ;;  %2493 = vmatprep.mubr.bf16.mxu1 %v7404_v25 }
 0x2fe   : > { %v1828_v46 = vpop.f32.mrf.mxu0  ;;  %v2021_v48 = vpop.f32.mrf.mxu1 }
 0x2ff   : > { %v2653_v49 = vrot.slane %v2652_v39, 2  ;;  %v2671_v50 = vrot.slane %v2670_v40, 2  ;;  %v2661_v41 = vmax.f32 %v2659_v34, %v2660_v43  ;;  %v2679_v42 = vmax.f32 %v2677_v35, %v2678_v45 }
 0x300   : > { %v1830_v44 = vpop.f32.mrf.mxu0  ;;  %v2023_v4 = vpop.f32.mrf.mxu1 }
 0x301   : > { %v2654_v51 = vmax.f32 %v2652_v39, %v2653_v49  ;;  %v2672_v52 = vmax.f32 %v2670_v40, %v2671_v50  ;;  %v2662_v54 = vrot.slane %v2661_v41, 2  ;;  %v2680_v20 = vrot.slane %v2679_v42, 2 }
 0x302   : > { %v2720_v55 = vmax.f32 %v1826_v37, %v1830_v44  ;;  %v2738_v56 = vmax.f32 %v2019_v38, %v2023_v4  ;;  %v1832_v58 = vpop.f32.mrf.mxu0  ;;  %v2025_v60 = vpop.f32.mrf.mxu1 }
 0x303   : > { %v2655_v61 = vrot.slane %v2654_v51, 1  ;;  %v2673_v62 = vrot.slane %v2672_v52, 1  ;;  %v2663_v63 = vmax.f32 %v2661_v41, %v2662_v54  ;;  %v2681_v25 = vmax.f32 %v2679_v42, %v2680_v20 }
 0x304   : > { %v2729_v0 = vmax.f32 %v1828_v46, %v1832_v58  ;;  %v2747_v1 = vmax.f32 %v2021_v48, %v2025_v60  ;;  %v1836_v2 = vpop.f32.mrf.mxu0  ;;  %v2029_v3 = vpop.f32.mrf.mxu1  ;;  %2301 = vmatmul.mubr.bf16.gmra.mxu0 %v8087_v23  ;;  %2494 = vmatmul.mubr.bf16.gmra.mxu1 %v8087_v23 }
 0x305   : > { %v2656_v5 = vmax.f32 %v2654_v51, %v2655_v61  ;;  %v2674_v53 = vmax.f32 %v2672_v52, %v2673_v62  ;;  %v2664_v8 = vrot.slane %v2663_v63, 1  ;;  %v2682_v10 = vrot.slane %v2681_v25, 1 }
 0x306   : > { %v2721_v12 = vmax.f32 %v2720_v55, %v1836_v2  ;;  %v2739_v11 = vmax.f32 %v2738_v56, %v2029_v3  ;;  %v1838_v15 = vpop.f32.mrf.mxu0  ;;  %v2031_v16 = vpop.f32.mrf.mxu1 }
 0x307   : > { %v3155_v17 = vsel %vm3154_vm4, %v2656_v5, %v8150_v7  ;;  %v3174_v18 = vsel %vm3154_vm4, %v2674_v53, %v8153_v32  ;;  %v2665_v19 = vmax.f32 %v2663_v63, %v2664_v8  ;;  %v2683_v9 = vmax.f32 %v2681_v25, %v2682_v10 }
 0x308   : > { %v2730_v22 = vmax.f32 %v2729_v0, %v1838_v15  ;;  %v2748_v36 = vmax.f32 %v2747_v1, %v2031_v16  ;;  %v1840_v47 = vpop.f32.mrf.mxu0  ;;  %v2033_v23 = vpop.f32.mrf.mxu1 }
 0x309   : > { %v3167_v13 = vsel %vm3154_vm4, %v2665_v19, %v8156_v24  ;;  %v3181_v57 = vsel %vm3154_vm4, %v2683_v9, %v8159_v26  ;;  %v2722_v6 = vmax.f32 %v2721_v12, %v1840_v47  ;;  %v2740_v59 = vmax.f32 %v2739_v11, %v2033_v23 }
 0x30a   : > { %v1842_v14 = vpop.f32.mrf.mxu0  ;;  %v2035_v21 = vpop.f32.mrf.mxu1 }
 0x30b   : > { %v2723_v7 = vrot.slane %v2722_v6, 4  ;;  %v2741_v27 = vrot.slane %v2740_v59, 4  ;;  %v2731_v28 = vmax.f32 %v2730_v22, %v1842_v14  ;;  %v2749_v32 = vmax.f32 %v2748_v36, %v2035_v21 }
 0x30c   : > { %v1846_v29 = vpop.f32.mrf.mxu0  ;;  %v2039_v30 = vpop.f32.mrf.mxu1 }
 0x30d   : > { %v2724_v31 = vmax.f32 %v2722_v6, %v2723_v7  ;;  %v2742_v33 = vmax.f32 %v2740_v59, %v2741_v27  ;;  %v2732_v34 = vrot.slane %v2731_v28, 4  ;;  %v2750_v35 = vrot.slane %v2749_v32, 4 }
 0x30e   : > { %v1848_v37 = vpop.f32.mrf.mxu0  ;;  %v2041_v38 = vpop.f32.mrf.mxu1 }
 0x30f   : > { %v2725_v24 = vrot.slane %v2724_v31, 2  ;;  %v2743_v39 = vrot.slane %v2742_v33, 2  ;;  %v2733_v40 = vmax.f32 %v2731_v28, %v2732_v34  ;;  %v2751_v26 = vmax.f32 %v2749_v32, %v2750_v35 }
 0x310   : > { %v1850_v43 = vpop.f32.mrf.mxu0  ;;  %v2043_v45 = vpop.f32.mrf.mxu1 }
 0x311   : > { %v2726_v46 = vmax.f32 %v2724_v31, %v2725_v24  ;;  %v2744_v48 = vmax.f32 %v2742_v33, %v2743_v39  ;;  %v2734_v49 = vrot.slane %v2733_v40, 2  ;;  %v2752_v50 = vrot.slane %v2751_v26, 2 }
 0x312   : > { %v1852_v41 = vpop.f32.mrf.mxu0  ;;  %v2045_v42 = vpop.f32.mrf.mxu1  ;;  %v2810_v9 = vmax.f32 %v2039_v30, %v2043_v45 }
 0x313   : > { %v2727_v44 = vrot.slane %v2726_v46, 1  ;;  %v2745_v4 = vrot.slane %v2744_v48, 1  ;;  %v2735_v51 = vmax.f32 %v2733_v40, %v2734_v49  ;;  %v2753_v52 = vmax.f32 %v2751_v26, %v2752_v50 }
 0x314   : > { %v1856_v54 = vpop.f32.mrf.mxu0  ;;  %v2049_v20 = vpop.f32.mrf.mxu1  ;;  %v2801_v47 = vmax.f32 %v1848_v37, %v1852_v41  ;;  %v2819_v23 = vmax.f32 %v2041_v38, %v2045_v42 }
 0x315   : > { %v2728_v55 = vmax.f32 %v2726_v46, %v2727_v44  ;;  %v2746_v56 = vmax.f32 %v2744_v48, %v2745_v4  ;;  %v2736_v58 = vrot.slane %v2735_v51, 1  ;;  %v2754_v60 = vrot.slane %v2753_v52, 1 }
 0x316   : > { %v1858_v61 = vpop.f32.mrf.mxu0  ;;  %v2051_v62 = vpop.f32.mrf.mxu1 }
 0x317   : > { %v8176_v63 = vsel %vm3156_vm5, %v2728_v55, %v3155_v17  ;;  %v8179_v25 = vsel %vm3156_vm5, %v2746_v56, %v3174_v18  ;;  %v2737_v0 = vmax.f32 %v2735_v51, %v2736_v58  ;;  %v2755_v1 = vmax.f32 %v2753_v52, %v2754_v60 }
 0x318   : > { %v1860_v2 = vpop.f32.mrf.mxu0  ;;  %v2053_v3 = vpop.f32.mrf.mxu1  ;;  %v2792_v18 = vmax.f32 %v1846_v29, %v1850_v43  ;;  %v2820_v21 = vmax.f32 %v2819_v23, %v2051_v62 }
 0x319   : > { %v8182_v5 = vsel %vm3156_vm5, %v2737_v0, %v3167_v13  ;;  %v8185_v53 = vsel %vm3156_vm5, %v2755_v1, %v3181_v57  ;;  %v2811_v13 = vmax.f32 %v2810_v9, %v2049_v20  ;;  %v2802_v57 = vmax.f32 %v2801_v47, %v1858_v61 }
 0x31a   : > { %v1862_v8 = vpop.f32.mrf.mxu0  ;;  %v2055_v10 = vpop.f32.mrf.mxu1  ;;  %v2793_v6 = vmax.f32 %v2792_v18, %v1856_v54 }
 0x31b   : > { %v2812_v27 = vmax.f32 %v2811_v13, %v2053_v3  ;;  %v2803_v31 = vmax.f32 %v2802_v57, %v1862_v8  ;;  %v2821_v33 = vmax.f32 %v2820_v21, %v2055_v10 }
 0x31c   : > { %v1866_v12 = vpop.f32.mrf.mxu0  ;;  %v2059_v11 = vpop.f32.mrf.mxu1  ;;  %v2794_v7 = vmax.f32 %v2793_v6, %v1860_v2 }
 0x31d   : > { %v2813_v30 = vrot.slane %v2812_v27, 4  ;;  %v2804_v37 = vrot.slane %v2803_v31, 4  ;;  %v2822_v38 = vrot.slane %v2821_v33, 4 }
 0x31e   : > { %v1868_v15 = vpop.f32.mrf.mxu0  ;;  %v2061_v16 = vpop.f32.mrf.mxu1  ;;  %v2795_v29 = vrot.slane %v2794_v7, 4 }
 0x31f   : > { %v2814_v45 = vmax.f32 %v2812_v27, %v2813_v30  ;;  %v2805_v41 = vmax.f32 %v2803_v31, %v2804_v37  ;;  %v2823_v42 = vmax.f32 %v2821_v33, %v2822_v38 }
 0x320   : > { %v1870_v17 = vpop.f32.mrf.mxu0  ;;  %v2063_v19 = vpop.f32.mrf.mxu1  ;;  %v2796_v43 = vmax.f32 %v2794_v7, %v2795_v29 }
 0x321   : > { %v2864_v46 = vmax.f32 %v1866_v12, %v1870_v17  ;;  %v2882_v48 = vmax.f32 %v2059_v11, %v2063_v19  ;;  %v2815_v56 = vrot.slane %v2814_v45, 2  ;;  %v2806_v2 = vrot.slane %v2805_v41, 2 }
 0x322   : > { %v1872_v22 = vpop.f32.mrf.mxu0  ;;  %v2065_v36 = vpop.f32.mrf.mxu1  ;;  %v2797_v55 = vrot.slane %v2796_v43, 2  ;;  %v2824_v3 = vrot.slane %v2823_v42, 2 }
 0x323   : > { %v2873_v44 = vmax.f32 %v1868_v15, %v1872_v22  ;;  %v2891_v4 = vmax.f32 %v2061_v16, %v2065_v36  ;;  %v2816_v19 = vmax.f32 %v2814_v45, %v2815_v56 }
 0x324   : > { %v1876_v59 = vpop.f32.mrf.mxu0  ;;  %v2069_v14 = vpop.f32.mrf.mxu1  ;;  %v2798_v17 = vmax.f32 %v2796_v43, %v2797_v55 }
 0x325   : > { %v2865_v51 = vmax.f32 %v2864_v46, %v1876_v59  ;;  %v2883_v52 = vmax.f32 %v2882_v48, %v2069_v14  ;;  %v2807_v59 = vmax.f32 %v2805_v41, %v2806_v2  ;;  %v2825_v14 = vmax.f32 %v2823_v42, %v2824_v3 }
 0x326   : > { %v1878_v28 = vpop.f32.mrf.mxu0  ;;  %v2071_v32 = vpop.f32.mrf.mxu1 }
 0x327   : > { %v2874_v58 = vmax.f32 %v2873_v44, %v1878_v28  ;;  %v2892_v60 = vmax.f32 %v2891_v4, %v2071_v32 }
 0x328   : > { %v1880_v34 = vpop.f32.mrf.mxu0  ;;  %v2073_v35 = vpop.f32.mrf.mxu1 }
 0x329   : > { %v2866_v61 = vmax.f32 %v2865_v51, %v1880_v34  ;;  %v2884_v62 = vmax.f32 %v2883_v52, %v2073_v35 }
 0x32a   : > { %v1882_v24 = vpop.f32.mrf.mxu0  ;;  %v2075_v39 = vpop.f32.mrf.mxu1 }
 0x32b   : > { %v2875_v8 = vmax.f32 %v2874_v58, %v1882_v24  ;;  %v2893_v10 = vmax.f32 %v2892_v60, %v2075_v39  ;;  %v2867_v18 = vrot.slane %v2866_v61, 4  ;;  %v2885_v9 = vrot.slane %v2884_v62, 4 }
 0x32c   : > { %v1886_v40 = vpop.f32.mrf.mxu0  ;;  %v2079_v26 = vpop.f32.mrf.mxu1  ;;  %v2799_v24 = vrot.slane %v2798_v17, 1  ;;  %v2817_v39 = vrot.slane %v2816_v19, 1 }
 0x32d   : > { %v2876_v57 = vrot.slane %v2875_v8, 4  ;;  %v2894_v21 = vrot.slane %v2893_v10, 4  ;;  %v2868_v34 = vmax.f32 %v2866_v61, %v2867_v18  ;;  %v2886_v35 = vmax.f32 %v2884_v62, %v2885_v9 }
 0x32e   : > { %v1888_v49 = vpop.f32.mrf.mxu0  ;;  %v2081_v50 = vpop.f32.mrf.mxu1 }
 0x32f   : > { %v2869_v41 = vrot.slane %v2868_v34, 2  ;;  %v2887_v42 = vrot.slane %v2886_v35, 2 }
 0x330   : > { %v1890_v54 = vpop.f32.mrf.mxu0  ;;  %v2083_v20 = vpop.f32.mrf.mxu1 }
 0x331   : > { %v2936_v15 = vmax.f32 %v1886_v40, %v1890_v54  ;;  %v2954_v16 = vmax.f32 %v2079_v26, %v2083_v20  ;;  %v2877_v40 = vmax.f32 %v2875_v8, %v2876_v57  ;;  %v2895_v26 = vmax.f32 %v2893_v10, %v2894_v21 }
 0x332   : > { %v1892_v0 = vpop.f32.mrf.mxu0  ;;  %v2085_v1 = vpop.f32.mrf.mxu1  ;;  %v2800_v54 = vmax.f32 %v2798_v17, %v2799_v24  ;;  %v2818_v20 = vmax.f32 %v2816_v19, %v2817_v39  ;;  %v2870_v2 = vmax.f32 %v2868_v34, %v2869_v41  ;;  %v2888_v3 = vmax.f32 %v2886_v35, %v2887_v42 }
 0x333   : > { %v2945_v47 = vmax.f32 %v1888_v49, %v1892_v0  ;;  %v2963_v23 = vmax.f32 %v2081_v50, %v2085_v1  ;;  %v2808_v49 = vrot.slane %v2807_v59, 1  ;;  %v2826_v50 = vrot.slane %v2825_v14, 1 }
 0x334   : > { %v1896_v12 = vpop.f32.mrf.mxu0  ;;  %v2089_v11 = vpop.f32.mrf.mxu1  ;;  %v2878_v55 = vrot.slane %v2877_v40, 2  ;;  %v2896_v56 = vrot.slane %v2895_v26, 2 }
 0x335   : > { %v2937_v6 = vmax.f32 %v2936_v15, %v1896_v12  ;;  %v2955_v13 = vmax.f32 %v2954_v16, %v2089_v11  ;;  %v2809_v0 = vmax.f32 %v2807_v59, %v2808_v49  ;;  %v2827_v1 = vmax.f32 %v2825_v14, %v2826_v50 }
 0x336   : > { %v1898_v22 = vpop.f32.mrf.mxu0  ;;  %v2091_v36 = vpop.f32.mrf.mxu1  ;;  %v3159_v15 = vsel %vm3158_vm6, %v2800_v54, %v8176_v63  ;;  %v3176_v16 = vsel %vm3158_vm6, %v2818_v20, %v8179_v25  ;;  %v2879_v17 = vmax.f32 %v2877_v40, %v2878_v55  ;;  %v2897_v19 = vmax.f32 %v2895_v26, %v2896_v56 }
 0x337   : > { %v2946_v28 = vmax.f32 %v2945_v47, %v1898_v22  ;;  %v2964_v32 = vmax.f32 %v2963_v23, %v2091_v36  ;;  %v3169_v47 = vsel %vm3158_vm6, %v2809_v0, %v8182_v5  ;;  %v3183_v23 = vsel %vm3158_vm6, %v2827_v1, %v8185_v53 }
 0x338   : > { %v1900_v7 = vpop.f32.mrf.mxu0  ;;  %v2093_v27 = vpop.f32.mrf.mxu1  ;;  %v2871_v59 = vrot.slane %v2870_v2, 1  ;;  %v2889_v63 = vrot.slane %v2888_v3, 1 }
 0x339   : > { %v2938_v31 = vmax.f32 %v2937_v6, %v1900_v7  ;;  %v2956_v33 = vmax.f32 %v2955_v13, %v2093_v27 }
 0x33a   : > { %v1902_v29 = vpop.f32.mrf.mxu0  ;;  %v2095_v30 = vpop.f32.mrf.mxu1 }
 0x33b   : > { %v2947_v37 = vmax.f32 %v2946_v28, %v1902_v29  ;;  %v2965_v38 = vmax.f32 %v2964_v32, %v2095_v30  ;;  %v2939_v43 = vrot.slane %v2938_v31, 4  ;;  %v2957_v45 = vrot.slane %v2956_v33, 4 }
 0x33c   : > { %v1906_v46 = vpop.f32.mrf.mxu0  ;;  %v2099_v48 = vpop.f32.mrf.mxu1 }
 0x33d   : > { %v2948_v44 = vrot.slane %v2947_v37, 4  ;;  %v2966_v4 = vrot.slane %v2965_v38, 4  ;;  %v2940_v58 = vmax.f32 %v2938_v31, %v2939_v43  ;;  %v2958_v60 = vmax.f32 %v2956_v33, %v2957_v45 }
 0x33e   : > { %v1908_v51 = vpop.f32.mrf.mxu0  ;;  %v2101_v52 = vpop.f32.mrf.mxu1  ;;  %v2880_v31 = vrot.slane %v2879_v17, 1  ;;  %v2898_v33 = vrot.slane %v2897_v19, 1 }
 0x33f   : > { %v2949_v8 = vmax.f32 %v2947_v37, %v2948_v44  ;;  %v2967_v10 = vmax.f32 %v2965_v38, %v2966_v4  ;;  %v2941_v18 = vrot.slane %v2940_v58, 2  ;;  %v2959_v9 = vrot.slane %v2958_v60, 2 }
 0x340   : > { %v1910_v61 = vpop.f32.mrf.mxu0  ;;  %v2103_v62 = vpop.f32.mrf.mxu1  ;;  %v2872_v37 = vmax.f32 %v2870_v2, %v2871_v59  ;;  %v2890_v38 = vmax.f32 %v2888_v3, %v2889_v63  ;;  %v2881_v41 = vmax.f32 %v2879_v17, %v2880_v31  ;;  %v2899_v42 = vmax.f32 %v2897_v19, %v2898_v33 }
 0x341   : > { %v3008_v6 = vmax.f32 %v1906_v46, %v1910_v61  ;;  %v3026_v13 = vmax.f32 %v2099_v48, %v2103_v62  ;;  %v2950_v14 = vrot.slane %v2949_v8, 2  ;;  %v2968_v57 = vrot.slane %v2967_v10, 2 }
 0x342   : > { %v1912_v12 = vpop.f32.mrf.mxu0  ;;  %v2105_v11 = vpop.f32.mrf.mxu1  ;;  %v2942_v34 = vmax.f32 %v2940_v58, %v2941_v18  ;;  %v2960_v35 = vmax.f32 %v2958_v60, %v2959_v9  ;;  %v3161_v58 = vsel %vm3160_vm7, %v2872_v37, %v3159_v15  ;;  %v3177_v60 = vsel %vm3160_vm7, %v2890_v38, %v3176_v16 }
 0x343   : > { %v3017_v7 = vmax.f32 %v1908_v51, %v1912_v12  ;;  %v3035_v27 = vmax.f32 %v2101_v52, %v2105_v11  ;;  %v2951_v40 = vmax.f32 %v2949_v8, %v2950_v14  ;;  %v2969_v26 = vmax.f32 %v2967_v10, %v2968_v57 }
 0x344   : > { %v1916_v22 = vpop.f32.mrf.mxu0  ;;  %v2109_v36 = vpop.f32.mrf.mxu1  ;;  %v2943_v44 = vrot.slane %v2942_v34, 1  ;;  %v2961_v4 = vrot.slane %v2960_v35, 1  ;;  %v3170_v12 = vsel %vm3160_vm7, %v2881_v41, %v3169_v47  ;;  %v3184_v11 = vsel %vm3160_vm7, %v2899_v42, %v3183_v23 }
 0x345   : > { %v3009_v28 = vmax.f32 %v3008_v6, %v1916_v22  ;;  %v3027_v32 = vmax.f32 %v3026_v13, %v2109_v36  ;;  %v2952_v61 = vrot.slane %v2951_v40, 1  ;;  %v2970_v62 = vrot.slane %v2969_v26, 1 }
 0x346   : > { %v1918_v25 = vpop.f32.mrf.mxu0  ;;  %v2111_v21 = vpop.f32.mrf.mxu1  ;;  %v2944_v17 = vmax.f32 %v2942_v34, %v2943_v44  ;;  %v2962_v19 = vmax.f32 %v2960_v35, %v2961_v4  ;;  %v3080_v35 = vld [vmem:[#allocation2 + $0x30] sm:$0xff] }
 0x347   : > { %v3018_v53 = vmax.f32 %v3017_v7, %v1918_v25  ;;  %v3036_v30 = vmax.f32 %v3035_v27, %v2111_v21  ;;  %v2953_v6 = vmax.f32 %v2951_v40, %v2952_v61  ;;  %v2971_v13 = vmax.f32 %v2969_v26, %v2970_v62 }
 0x348   : > { %v1920_v5 = vpop.f32.mrf.mxu0  ;;  %v2113_v29 = vpop.f32.mrf.mxu1  ;;  %v3163_v23 = vsel %vm3162_vm8, %v2944_v17, %v3161_v58  ;;  %v3178_v27 = vsel %vm3162_vm8, %v2962_v19, %v3177_v60 }
 0x349   : > { %v3010_v24 = vmax.f32 %v3009_v28, %v1920_v5  ;;  %v3028_v39 = vmax.f32 %v3027_v32, %v2113_v29  ;;  %v3082_v29 = vld [vmem:[#allocation2 + $0x18] sm:$0xff] }
 0x34a   : > { %v1922_v43 = vpop.f32.mrf.mxu0  ;;  %v2115_v45 = vpop.f32.mrf.mxu1 }
 0x34b   : > { %v3011_v46 = vrot.slane %v3010_v24, 4  ;;  %v3029_v48 = vrot.slane %v3028_v39, 4  ;;  %v3019_v49 = vmax.f32 %v3018_v53, %v1922_v43  ;;  %v3037_v50 = vmax.f32 %v3036_v30, %v2115_v45 }
 0x34c   : > { %v2152_v51 = vpop.f32.mrf.mxu0  ;;  %v2345_v52 = vpop.f32.mrf.mxu1 }
 0x34d   : > { %v3012_v54 = vmax.f32 %v3010_v24, %v3011_v46  ;;  %v3030_v20 = vmax.f32 %v3028_v39, %v3029_v48  ;;  %v3020_v55 = vrot.slane %v3019_v49, 4  ;;  %v3038_v56 = vrot.slane %v3037_v50, 4  ;;  %v3081_v48 = vld [vmem:[#allocation2] sm:$0xff] }
 0x34e   : > { %v2154_v0 = vpop.f32.mrf.mxu0  ;;  %v2347_v1 = vpop.f32.mrf.mxu1  ;;  %v3171_v24 = vsel %vm3162_vm8, %v2953_v6, %v3170_v12  ;;  %v3185_v39 = vsel %vm3162_vm8, %v2971_v13, %v3184_v11 }
 0x34f   : > { %v3013_v2 = vrot.slane %v3012_v54, 2  ;;  %v3031_v3 = vrot.slane %v3030_v20, 2  ;;  %v3021_v8 = vmax.f32 %v3019_v49, %v3020_v55  ;;  %v3039_v10 = vmax.f32 %v3037_v50, %v3038_v56  ;;  %v3083_v50 = vld [vmem:[#allocation2 + $0x10] sm:$0xff] }
 0x350   : > { %v2156_v18 = vpop.f32.mrf.mxu0  ;;  %v2349_v9 = vpop.f32.mrf.mxu1 }
 0x351   : > { %v3014_v22 = vmax.f32 %v3012_v54, %v3013_v2  ;;  %v3032_v15 = vmax.f32 %v3030_v20, %v3031_v3  ;;  %v3022_v36 = vrot.slane %v3021_v8, 2  ;;  %v3040_v16 = vrot.slane %v3039_v10, 2 }
 0x352   : > { %v2540_v59 = vmax.f32 %v2152_v51, %v2156_v18  ;;  %v2558_v63 = vmax.f32 %v2345_v52, %v2349_v9  ;;  %v2158_v14 = vpop.f32.mrf.mxu0  ;;  %v2351_v57 = vpop.f32.mrf.mxu1 }
 0x353   : > { %v3015_v25 = vrot.slane %v3014_v22, 1  ;;  %v3033_v21 = vrot.slane %v3032_v15, 1  ;;  %v3023_v7 = vmax.f32 %v3021_v8, %v3022_v36  ;;  %v3041_v47 = vmax.f32 %v3039_v10, %v3040_v16 }
 0x354   : > { %v2549_v28 = vmax.f32 %v2154_v0, %v2158_v14  ;;  %v2567_v32 = vmax.f32 %v2347_v1, %v2351_v57  ;;  %v2162_v31 = vpop.f32.mrf.mxu0  ;;  %v2355_v33 = vpop.f32.mrf.mxu1 }
 0x355   : > { %v3016_v34 = vmax.f32 %v3014_v22, %v3015_v25  ;;  %v3034_v5 = vmax.f32 %v3032_v15, %v3033_v21  ;;  %v3024_v53 = vrot.slane %v3023_v7, 1  ;;  %v3042_v30 = vrot.slane %v3041_v47, 1 }
 0x356   : > { %v2541_v37 = vmax.f32 %v2540_v59, %v2162_v31  ;;  %v2559_v38 = vmax.f32 %v2558_v63, %v2355_v33  ;;  %v2164_v40 = vpop.f32.mrf.mxu0  ;;  %v2357_v26 = vpop.f32.mrf.mxu1 }
 0x357   : > { %v3165_v43 = vsel %vm3164_vm9, %v3016_v34, %v3163_v23  ;;  %v3179_v45 = vsel %vm3164_vm9, %v3034_v5, %v3178_v27  ;;  %v3025_v46 = vmax.f32 %v3023_v7, %v3024_v53  ;;  %v3043_v49 = vmax.f32 %v3041_v47, %v3042_v30 }
 0x358   : > { %v3223_v41 = vmax.f32 %v3080_v35, %v3165_v43  ;;  %v3225_v42 = vmax.f32 %v3082_v29, %v3179_v45  ;;  %v2550_v44 = vmax.f32 %v2549_v28, %v2164_v40  ;;  %v2568_v4 = vmax.f32 %v2567_v32, %v2357_v26  ;;  %v2166_v51 = vpop.f32.mrf.mxu0  ;;  %v2359_v52 = vpop.f32.mrf.mxu1 }
 0x359   : > { %v3172_v54 = vsel %vm3164_vm9, %v3025_v46, %v3171_v24  ;;  %v3186_v20 = vsel %vm3164_vm9, %v3043_v49, %v3185_v39  ;;  %v2542_v55 = vmax.f32 %v2541_v37, %v2166_v51  ;;  %v2560_v56 = vmax.f32 %v2559_v38, %v2359_v52 }
 0x35a   : > { %3231 = vst [vmem:[#allocation2 + $0x30] sm:$0xff] %v3223_v41  ;;  %3233 = vst [vmem:[#allocation2 + $0x18] sm:$0xff] %v3225_v42  ;;  %v3224_v58 = vmax.f32 %v3081_v48, %v3172_v54  ;;  %v3226_v60 = vmax.f32 %v3083_v50, %v3186_v20  ;;  %v2168_v61 = vpop.f32.mrf.mxu0  ;;  %v2361_v62 = vpop.f32.mrf.mxu1 }
 0x35b   : > { %v2551_v0 = vmax.f32 %v2550_v44, %v2168_v61  ;;  %v2569_v1 = vmax.f32 %v2568_v4, %v2361_v62  ;;  %v2543_v12 = vrot.slane %v2542_v55, 4  ;;  %v2561_v11 = vrot.slane %v2560_v56, 4 }
 0x35c   : > { %3232 = vst [vmem:[#allocation2] sm:$0xff] %v3224_v58  ;;  %3234 = vst [vmem:[#allocation2 + $0x10] sm:$0xff] %v3226_v60  ;;  %v2172_v2 = vpop.f32.mrf.mxu0  ;;  %v2365_v3 = vpop.f32.mrf.mxu1 }
 0x35d   : > { %v2552_v18 = vrot.slane %v2551_v0, 4  ;;  %v2570_v9 = vrot.slane %v2569_v1, 4  ;;  %v2544_v6 = vmax.f32 %v2542_v55, %v2543_v12  ;;  %v2562_v13 = vmax.f32 %v2560_v56, %v2561_v11 }
 0x35e   : > { %v2174_v8 = vpop.f32.mrf.mxu0  ;;  %v2367_v10 = vpop.f32.mrf.mxu1 }
 0x35f   : > { %v2553_v25 = vmax.f32 %v2551_v0, %v2552_v18  ;;  %v2571_v21 = vmax.f32 %v2569_v1, %v2570_v9  ;;  %v2545_v31 = vrot.slane %v2544_v6, 2  ;;  %v2563_v33 = vrot.slane %v2562_v13, 2 }
 0x360   : > { %v2176_v17 = vpop.f32.mrf.mxu0  ;;  %v2369_v19 = vpop.f32.mrf.mxu1 }
 0x361   : > { %v2612_v22 = vmax.f32 %v2172_v2, %v2176_v17  ;;  %v2630_v15 = vmax.f32 %v2365_v3, %v2369_v19  ;;  %v2554_v53 = vrot.slane %v2553_v25, 2  ;;  %v2572_v30 = vrot.slane %v2571_v21, 2 }
 0x362   : > { %v2178_v36 = vpop.f32.mrf.mxu0  ;;  %v2371_v16 = vpop.f32.mrf.mxu1  ;;  %v2546_v43 = vmax.f32 %v2544_v6, %v2545_v31  ;;  %v2564_v45 = vmax.f32 %v2562_v13, %v2563_v33 }
 0x363   : > { %v2621_v59 = vmax.f32 %v2174_v8, %v2178_v36  ;;  %v2639_v63 = vmax.f32 %v2367_v10, %v2371_v16  ;;  %v2555_v44 = vmax.f32 %v2553_v25, %v2554_v53  ;;  %v2573_v4 = vmax.f32 %v2571_v21, %v2572_v30 }
 0x364   : > { %v2182_v14 = vpop.f32.mrf.mxu0  ;;  %v2375_v57 = vpop.f32.mrf.mxu1  ;;  %v2547_v58 = vrot.slane %v2546_v43, 1  ;;  %v2565_v60 = vrot.slane %v2564_v45, 1 }
 0x365   : > { %v2613_v7 = vmax.f32 %v2612_v22, %v2182_v14  ;;  %v2631_v47 = vmax.f32 %v2630_v15, %v2375_v57  ;;  %v2556_v8 = vrot.slane %v2555_v44, 1  ;;  %v2574_v10 = vrot.slane %v2573_v4, 1 }
 0x366   : > { %v2184_v23 = vpop.f32.mrf.mxu0  ;;  %v2377_v27 = vpop.f32.mrf.mxu1  ;;  %v2548_v36 = vmax.f32 %v2546_v43, %v2547_v58  ;;  %v2566_v16 = vmax.f32 %v2564_v45, %v2565_v60 }
 0x367   : > { %v2622_v28 = vmax.f32 %v2621_v59, %v2184_v23  ;;  %v2640_v32 = vmax.f32 %v2639_v63, %v2377_v27 }
 0x368   : > { %v2186_v34 = vpop.f32.mrf.mxu0  ;;  %v2379_v35 = vpop.f32.mrf.mxu1 }
 0x369   : > { %v2614_v5 = vmax.f32 %v2613_v7, %v2186_v34  ;;  %v2632_v29 = vmax.f32 %v2631_v47, %v2379_v35  ;;  %v2557_v7 = vmax.f32 %v2555_v44, %v2556_v8  ;;  %v2575_v47 = vmax.f32 %v2573_v4, %v2574_v10 }
 0x36a   : > { %v2188_v24 = vpop.f32.mrf.mxu0  ;;  %v2381_v39 = vpop.f32.mrf.mxu1 }
 0x36b   : > { %v2615_v37 = vrot.slane %v2614_v5, 4  ;;  %v2633_v38 = vrot.slane %v2632_v29, 4  ;;  %v2623_v40 = vmax.f32 %v2622_v28, %v2188_v24  ;;  %v2641_v26 = vmax.f32 %v2640_v32, %v2381_v39 }
 0x36c   : > { %v2192_v46 = vpop.f32.mrf.mxu0  ;;  %v2385_v48 = vpop.f32.mrf.mxu1 }
 0x36d   : > { %v2616_v49 = vmax.f32 %v2614_v5, %v2615_v37  ;;  %v2634_v50 = vmax.f32 %v2632_v29, %v2633_v38  ;;  %v2624_v41 = vrot.slane %v2623_v40, 4  ;;  %v2642_v42 = vrot.slane %v2641_v26, 4 }
 0x36e   : > { %v2194_v51 = vpop.f32.mrf.mxu0  ;;  %v2387_v52 = vpop.f32.mrf.mxu1 }
 0x36f   : > { %v2617_v54 = vrot.slane %v2616_v49, 2  ;;  %v2635_v20 = vrot.slane %v2634_v50, 2  ;;  %v2625_v55 = vmax.f32 %v2623_v40, %v2624_v41  ;;  %v2643_v56 = vmax.f32 %v2641_v26, %v2642_v42 }
 0x370   : > { %v2196_v61 = vpop.f32.mrf.mxu0  ;;  %v2389_v62 = vpop.f32.mrf.mxu1 }
 0x371   : > { %v2618_v0 = vmax.f32 %v2616_v49, %v2617_v54  ;;  %v2636_v1 = vmax.f32 %v2634_v50, %v2635_v20  ;;  %v2626_v2 = vrot.slane %v2625_v55, 2  ;;  %v2644_v3 = vrot.slane %v2643_v56, 2 }
 0x372   : > { %v2684_v12 = vmax.f32 %v2192_v46, %v2196_v61  ;;  %v2702_v11 = vmax.f32 %v2385_v48, %v2389_v62  ;;  %v2198_v17 = vpop.f32.mrf.mxu0  ;;  %v2391_v19 = vpop.f32.mrf.mxu1 }
 0x373   : > { %v2619_v18 = vrot.slane %v2618_v0, 1  ;;  %v2637_v9 = vrot.slane %v2636_v1, 1  ;;  %v2627_v22 = vmax.f32 %v2625_v55, %v2626_v2  ;;  %v2645_v15 = vmax.f32 %v2643_v56, %v2644_v3 }
 0x374   : > { %v2693_v6 = vmax.f32 %v2194_v51, %v2198_v17  ;;  %v2711_v13 = vmax.f32 %v2387_v52, %v2391_v19  ;;  %v2202_v59 = vpop.f32.mrf.mxu0  ;;  %v2395_v63 = vpop.f32.mrf.mxu1 }
 0x375   : > { %v2620_v14 = vmax.f32 %v2618_v0, %v2619_v18  ;;  %v2638_v57 = vmax.f32 %v2636_v1, %v2637_v9  ;;  %v2628_v25 = vrot.slane %v2627_v22, 1  ;;  %v2646_v21 = vrot.slane %v2645_v15, 1 }
 0x376   : > { %v2685_v23 = vmax.f32 %v2684_v12, %v2202_v59  ;;  %v2703_v27 = vmax.f32 %v2702_v11, %v2395_v63  ;;  %v2204_v28 = vpop.f32.mrf.mxu0  ;;  %v2397_v32 = vpop.f32.mrf.mxu1 }
 0x377   : > { %v3187_v31 = vsel %vm3152_vm3, %v2620_v14, %v2548_v36  ;;  %v3201_v33 = vsel %vm3152_vm3, %v2638_v57, %v2566_v16  ;;  %v2629_v34 = vmax.f32 %v2627_v22, %v2628_v25  ;;  %v2647_v35 = vmax.f32 %v2645_v15, %v2646_v21 }
 0x378   : > { %v2694_v5 = vmax.f32 %v2693_v6, %v2204_v28  ;;  %v2712_v29 = vmax.f32 %v2711_v13, %v2397_v32  ;;  %v2206_v53 = vpop.f32.mrf.mxu0  ;;  %v2399_v30 = vpop.f32.mrf.mxu1 }
 0x379   : > { %v3194_v24 = vsel %vm3152_vm3, %v2629_v34, %v2557_v7  ;;  %v3208_v39 = vsel %vm3152_vm3, %v2647_v35, %v2575_v47  ;;  %v2686_v37 = vmax.f32 %v2685_v23, %v2206_v53  ;;  %v2704_v38 = vmax.f32 %v2703_v27, %v2399_v30 }
 0x37a   : > { %v2208_v40 = vpop.f32.mrf.mxu0  ;;  %v2401_v26 = vpop.f32.mrf.mxu1 }
 0x37b   : > { %v2687_v43 = vrot.slane %v2686_v37, 4  ;;  %v2705_v45 = vrot.slane %v2704_v38, 4  ;;  %v2695_v46 = vmax.f32 %v2694_v5, %v2208_v40  ;;  %v2713_v48 = vmax.f32 %v2712_v29, %v2401_v26 }
 0x37c   : > { %v2212_v49 = vpop.f32.mrf.mxu0  ;;  %v2405_v50 = vpop.f32.mrf.mxu1 }
 0x37d   : > { %v2688_v41 = vmax.f32 %v2686_v37, %v2687_v43  ;;  %v2706_v42 = vmax.f32 %v2704_v38, %v2705_v45  ;;  %v2696_v44 = vrot.slane %v2695_v46, 4  ;;  %v2714_v4 = vrot.slane %v2713_v48, 4 }
 0x37e   : > { %v2214_v51 = vpop.f32.mrf.mxu0  ;;  %v2407_v52 = vpop.f32.mrf.mxu1 }
 0x37f   : > { %v2689_v54 = vrot.slane %v2688_v41, 2  ;;  %v2707_v20 = vrot.slane %v2706_v42, 2  ;;  %v2697_v55 = vmax.f32 %v2695_v46, %v2696_v44  ;;  %v2715_v56 = vmax.f32 %v2713_v48, %v2714_v4 }
 0x380   : > { %v2216_v58 = vpop.f32.mrf.mxu0  ;;  %v2409_v60 = vpop.f32.mrf.mxu1 }
 0x381   : > { %v2690_v61 = vmax.f32 %v2688_v41, %v2689_v54  ;;  %v2708_v62 = vmax.f32 %v2706_v42, %v2707_v20  ;;  %v2698_v0 = vrot.slane %v2697_v55, 2  ;;  %v2716_v1 = vrot.slane %v2715_v56, 2 }
 0x382   : > { %v2756_v2 = vmax.f32 %v2212_v49, %v2216_v58  ;;  %v2774_v3 = vmax.f32 %v2405_v50, %v2409_v60  ;;  %v2218_v8 = vpop.f32.mrf.mxu0  ;;  %v2411_v10 = vpop.f32.mrf.mxu1 }
 0x383   : > { %v2691_v12 = vrot.slane %v2690_v61, 1  ;;  %v2709_v11 = vrot.slane %v2708_v62, 1  ;;  %v2699_v17 = vmax.f32 %v2697_v55, %v2698_v0  ;;  %v2717_v19 = vmax.f32 %v2715_v56, %v2716_v1 }
 0x384   : > { %v2765_v18 = vmax.f32 %v2214_v51, %v2218_v8  ;;  %v2783_v9 = vmax.f32 %v2407_v52, %v2411_v10  ;;  %v2222_v22 = vpop.f32.mrf.mxu0  ;;  %v2415_v15 = vpop.f32.mrf.mxu1 }
 0x385   : > { %v2692_v36 = vmax.f32 %v2690_v61, %v2691_v12  ;;  %v2710_v16 = vmax.f32 %v2708_v62, %v2709_v11  ;;  %v2700_v6 = vrot.slane %v2699_v17, 1  ;;  %v2718_v13 = vrot.slane %v2717_v19, 1 }
 0x386   : > { %v2757_v59 = vmax.f32 %v2756_v2, %v2222_v22  ;;  %v2775_v63 = vmax.f32 %v2774_v3, %v2415_v15  ;;  %v2224_v14 = vpop.f32.mrf.mxu0  ;;  %v2417_v57 = vpop.f32.mrf.mxu1 }
 0x387   : > { %v3188_v25 = vsel %vm3154_vm4, %v2692_v36, %v3187_v31  ;;  %v3202_v21 = vsel %vm3154_vm4, %v2710_v16, %v3201_v33  ;;  %v2701_v7 = vmax.f32 %v2699_v17, %v2700_v6  ;;  %v2719_v47 = vmax.f32 %v2717_v19, %v2718_v13 }
 0x388   : > { %v2766_v23 = vmax.f32 %v2765_v18, %v2224_v14  ;;  %v2784_v27 = vmax.f32 %v2783_v9, %v2417_v57  ;;  %v2226_v28 = vpop.f32.mrf.mxu0  ;;  %v2419_v32 = vpop.f32.mrf.mxu1 }
 0x389   : > { %v3195_v34 = vsel %vm3154_vm4, %v2701_v7, %v3194_v24  ;;  %v3209_v35 = vsel %vm3154_vm4, %v2719_v47, %v3208_v39  ;;  %v2758_v5 = vmax.f32 %v2757_v59, %v2226_v28  ;;  %v2776_v29 = vmax.f32 %v2775_v63, %v2419_v32 }
 0x38a   : > { %v2228_v53 = vpop.f32.mrf.mxu0  ;;  %v2421_v30 = vpop.f32.mrf.mxu1 }
 0x38b   : > { %v2759_v37 = vrot.slane %v2758_v5, 4  ;;  %v2777_v38 = vrot.slane %v2776_v29, 4  ;;  %v2767_v40 = vmax.f32 %v2766_v23, %v2228_v53  ;;  %v2785_v31 = vmax.f32 %v2784_v27, %v2421_v30 }
 0x38c   : > { %v2232_v26 = vpop.f32.mrf.mxu0  ;;  %v2425_v33 = vpop.f32.mrf.mxu1 }
 0x38d   : > { %v2760_v43 = vmax.f32 %v2758_v5, %v2759_v37  ;;  %v2778_v45 = vmax.f32 %v2776_v29, %v2777_v38  ;;  %v2768_v46 = vrot.slane %v2767_v40, 4  ;;  %v2786_v48 = vrot.slane %v2785_v31, 4 }
 0x38e   : > { %v2234_v49 = vpop.f32.mrf.mxu0  ;;  %v2427_v50 = vpop.f32.mrf.mxu1 }
 0x38f   : > { %v2761_v41 = vrot.slane %v2760_v43, 2  ;;  %v2779_v24 = vrot.slane %v2778_v45, 2  ;;  %v2769_v42 = vmax.f32 %v2767_v40, %v2768_v46  ;;  %v2787_v39 = vmax.f32 %v2785_v31, %v2786_v48 }
 0x390   : > { %v2236_v44 = vpop.f32.mrf.mxu0  ;;  %v2429_v4 = vpop.f32.mrf.mxu1 }
 0x391   : > { %v2762_v51 = vmax.f32 %v2760_v43, %v2761_v41  ;;  %v2780_v52 = vmax.f32 %v2778_v45, %v2779_v24  ;;  %v2770_v54 = vrot.slane %v2769_v42, 2  ;;  %v2788_v20 = vrot.slane %v2787_v39, 2 }
 0x392   : > { %v2238_v55 = vpop.f32.mrf.mxu0  ;;  %v2431_v56 = vpop.f32.mrf.mxu1  ;;  %v2846_v47 = vmax.f32 %v2425_v33, %v2429_v4 }
 0x393   : > { %v2763_v58 = vrot.slane %v2762_v51, 1  ;;  %v2781_v60 = vrot.slane %v2780_v52, 1  ;;  %v2771_v61 = vmax.f32 %v2769_v42, %v2770_v54  ;;  %v2789_v62 = vmax.f32 %v2787_v39, %v2788_v20 }
 0x394   : > { %v2242_v0 = vpop.f32.mrf.mxu0  ;;  %v2435_v1 = vpop.f32.mrf.mxu1  ;;  %v2837_v28 = vmax.f32 %v2234_v49, %v2238_v55  ;;  %v2855_v32 = vmax.f32 %v2427_v50, %v2431_v56 }
 0x395   : > { %v2764_v2 = vmax.f32 %v2762_v51, %v2763_v58  ;;  %v2782_v3 = vmax.f32 %v2780_v52, %v2781_v60  ;;  %v2772_v8 = vrot.slane %v2771_v61, 1  ;;  %v2790_v10 = vrot.slane %v2789_v62, 1 }
 0x396   : > { %v2244_v12 = vpop.f32.mrf.mxu0  ;;  %v2437_v11 = vpop.f32.mrf.mxu1 }
 0x397   : > { %v8216_v17 = vsel %vm3156_vm5, %v2764_v2, %v3188_v25  ;;  %v8219_v19 = vsel %vm3156_vm5, %v2782_v3, %v3202_v21  ;;  %v2773_v18 = vmax.f32 %v2771_v61, %v2772_v8  ;;  %v2791_v9 = vmax.f32 %v2789_v62, %v2790_v10 }
 0x398   : > { %v2246_v22 = vpop.f32.mrf.mxu0  ;;  %v2439_v15 = vpop.f32.mrf.mxu1  ;;  %v2828_v21 = vmax.f32 %v2232_v26, %v2236_v44  ;;  %v2856_v30 = vmax.f32 %v2855_v32, %v2437_v11 }
 0x399   : > { %v8222_v36 = vsel %vm3156_vm5, %v2773_v18, %v3195_v34  ;;  %v8225_v16 = vsel %vm3156_vm5, %v2791_v9, %v3209_v35  ;;  %v2847_v34 = vmax.f32 %v2846_v47, %v2435_v1  ;;  %v2838_v35 = vmax.f32 %v2837_v28, %v2244_v12 }
 0x39a   : > { %v2248_v6 = vpop.f32.mrf.mxu0  ;;  %v2441_v13 = vpop.f32.mrf.mxu1  ;;  %v2829_v5 = vmax.f32 %v2828_v21, %v2242_v0 }
 0x39b   : > { %v2848_v38 = vmax.f32 %v2847_v34, %v2439_v15  ;;  %v2839_v43 = vmax.f32 %v2838_v35, %v2248_v6  ;;  %v2857_v45 = vmax.f32 %v2856_v30, %v2441_v13 }
 0x39c   : > { %v2252_v59 = vpop.f32.mrf.mxu0  ;;  %v2445_v63 = vpop.f32.mrf.mxu1  ;;  %v2830_v37 = vmax.f32 %v2829_v5, %v2246_v22 }
 0x39d   : > { %v2849_v33 = vrot.slane %v2848_v38, 4  ;;  %v2840_v49 = vrot.slane %v2839_v43, 4  ;;  %v2858_v50 = vrot.slane %v2857_v45, 4 }
 0x39e   : > { %v2254_v14 = vpop.f32.mrf.mxu0  ;;  %v2447_v57 = vpop.f32.mrf.mxu1  ;;  %v2831_v26 = vrot.slane %v2830_v37, 4 }
 0x39f   : > { %v2850_v4 = vmax.f32 %v2848_v38, %v2849_v33  ;;  %v2841_v54 = vmax.f32 %v2839_v43, %v2840_v49  ;;  %v2859_v20 = vmax.f32 %v2857_v45, %v2858_v50 }
 0x3a0   : > { %v2256_v25 = vpop.f32.mrf.mxu0  ;;  %v2449_v7 = vpop.f32.mrf.mxu1  ;;  %v2832_v44 = vmax.f32 %v2830_v37, %v2831_v26 }
 0x3a1   : > { %v2851_v60 = vrot.slane %v2850_v4, 2  ;;  %v2900_v0 = vmax.f32 %v2252_v59, %v2256_v25  ;;  %v2918_v1 = vmax.f32 %v2445_v63, %v2449_v7  ;;  %v2842_v2 = vrot.slane %v2841_v54, 2 }
 0x3a2   : > { %v2258_v23 = vpop.f32.mrf.mxu0  ;;  %v2451_v27 = vpop.f32.mrf.mxu1  ;;  %v2833_v58 = vrot.slane %v2832_v44, 2  ;;  %v2860_v3 = vrot.slane %v2859_v20, 2 }
 0x3a3   : > { %v2909_v12 = vmax.f32 %v2254_v14, %v2258_v23  ;;  %v2927_v11 = vmax.f32 %v2447_v57, %v2451_v27  ;;  %v2852_v15 = vmax.f32 %v2850_v4, %v2851_v60  ;;  %v2843_v14 = vmax.f32 %v2841_v54, %v2842_v2 }
 0x3a4   : > { %v2262_v29 = vpop.f32.mrf.mxu0  ;;  %v2455_v53 = vpop.f32.mrf.mxu1  ;;  %v2834_v22 = vmax.f32 %v2832_v44, %v2833_v58  ;;  %v2861_v57 = vmax.f32 %v2859_v20, %v2860_v3 }
 0x3a5   : > { %v2901_v18 = vmax.f32 %v2900_v0, %v2262_v29  ;;  %v2919_v9 = vmax.f32 %v2918_v1, %v2455_v53 }
 0x3a6   : > { %v2264_v40 = vpop.f32.mrf.mxu0  ;;  %v2457_v31 = vpop.f32.mrf.mxu1 }
 0x3a7   : > { %v2910_v28 = vmax.f32 %v2909_v12, %v2264_v40  ;;  %v2928_v32 = vmax.f32 %v2927_v11, %v2457_v31  ;;  %v2835_v40 = vrot.slane %v2834_v22, 1  ;;  %v2853_v31 = vrot.slane %v2852_v15, 1 }
 0x3a8   : > { %v2266_v46 = vpop.f32.mrf.mxu0  ;;  %v2459_v48 = vpop.f32.mrf.mxu1 }
 0x3a9   : > { %v2902_v5 = vmax.f32 %v2901_v18, %v2266_v46  ;;  %v2920_v34 = vmax.f32 %v2919_v9, %v2459_v48  ;;  %v2836_v54 = vmax.f32 %v2834_v22, %v2835_v40  ;;  %v2854_v20 = vmax.f32 %v2852_v15, %v2853_v31 }
 0x3aa   : > { %v2268_v41 = vpop.f32.mrf.mxu0  ;;  %v2461_v24 = vpop.f32.mrf.mxu1 }
 0x3ab   : > { %v2911_v23 = vmax.f32 %v2910_v28, %v2268_v41  ;;  %v2929_v27 = vmax.f32 %v2928_v32, %v2461_v24  ;;  %v2903_v46 = vrot.slane %v2902_v5, 4  ;;  %v2921_v48 = vrot.slane %v2920_v34, 4 }
 0x3ac   : > { %v2272_v42 = vpop.f32.mrf.mxu0  ;;  %v2465_v39 = vpop.f32.mrf.mxu1  ;;  %v8229_v18 = vsel %vm3158_vm6, %v2836_v54, %v8216_v17  ;;  %v8233_v9 = vsel %vm3158_vm6, %v2854_v20, %v8219_v19 }
 0x3ad   : > { %v2912_v44 = vrot.slane %v2911_v23, 4  ;;  %v2930_v4 = vrot.slane %v2929_v27, 4 }
 0x3ae   : > { %v2274_v51 = vpop.f32.mrf.mxu0  ;;  %v2467_v52 = vpop.f32.mrf.mxu1 }
 0x3af   : > { %v2913_v2 = vmax.f32 %v2911_v23, %v2912_v44  ;;  %v2931_v3 = vmax.f32 %v2929_v27, %v2930_v4 }
 0x3b0   : > { %v2276_v55 = vpop.f32.mrf.mxu0  ;;  %v2469_v56 = vpop.f32.mrf.mxu1 }
 0x3b1   : > { %v2972_v6 = vmax.f32 %v2272_v42, %v2276_v55  ;;  %v2990_v13 = vmax.f32 %v2465_v39, %v2469_v56  ;;  %v2844_v42 = vrot.slane %v2843_v14, 1  ;;  %v2862_v39 = vrot.slane %v2861_v57, 1 }
 0x3b2   : > { %v2278_v61 = vpop.f32.mrf.mxu0  ;;  %v2471_v62 = vpop.f32.mrf.mxu1  ;;  %v2904_v55 = vmax.f32 %v2902_v5, %v2903_v46  ;;  %v2922_v56 = vmax.f32 %v2920_v34, %v2921_v48  ;;  %v2914_v34 = vrot.slane %v2913_v2, 2 }
 0x3b3   : > { %v2981_v59 = vmax.f32 %v2274_v51, %v2278_v61  ;;  %v2999_v63 = vmax.f32 %v2467_v52, %v2471_v62  ;;  %v2845_v0 = vmax.f32 %v2843_v14, %v2844_v42  ;;  %v2863_v1 = vmax.f32 %v2861_v57, %v2862_v39 }
 0x3b4   : > { %v2282_v8 = vpop.f32.mrf.mxu0  ;;  %v2475_v10 = vpop.f32.mrf.mxu1  ;;  %v2905_v22 = vrot.slane %v2904_v55, 2  ;;  %v2923_v15 = vrot.slane %v2922_v56, 2  ;;  %v2915_v40 = vmax.f32 %v2913_v2, %v2914_v34 }
 0x3b5   : > { %v2973_v25 = vmax.f32 %v2972_v6, %v2282_v8  ;;  %v2991_v7 = vmax.f32 %v2990_v13, %v2475_v10  ;;  %v8237_v28 = vsel %vm3158_vm6, %v2845_v0, %v8222_v36  ;;  %v8241_v32 = vsel %vm3158_vm6, %v2863_v1, %v8225_v16 }
 0x3b6   : > { %v2284_v21 = vpop.f32.mrf.mxu0  ;;  %v2477_v47 = vpop.f32.mrf.mxu1  ;;  %v2906_v23 = vmax.f32 %v2904_v55, %v2905_v22  ;;  %v2924_v27 = vmax.f32 %v2922_v56, %v2923_v15  ;;  %v2916_v55 = vrot.slane %v2915_v40, 1 }
 0x3b7   : > { %v2982_v29 = vmax.f32 %v2981_v59, %v2284_v21  ;;  %v3000_v53 = vmax.f32 %v2999_v63, %v2477_v47  ;;  %v2932_v59 = vrot.slane %v2931_v3, 2 }
 0x3b8   : > { %v2286_v35 = vpop.f32.mrf.mxu0  ;;  %v2479_v30 = vpop.f32.mrf.mxu1  ;;  %v2907_v44 = vrot.slane %v2906_v23, 1  ;;  %v2925_v4 = vrot.slane %v2924_v27, 1 }
 0x3b9   : > { %v2974_v37 = vmax.f32 %v2973_v25, %v2286_v35  ;;  %v2992_v38 = vmax.f32 %v2991_v7, %v2479_v30  ;;  %v2933_v31 = vmax.f32 %v2931_v3, %v2932_v59 }
 0x3ba   : > { %v2288_v43 = vpop.f32.mrf.mxu0  ;;  %v2481_v45 = vpop.f32.mrf.mxu1  ;;  %v2908_v2 = vmax.f32 %v2906_v23, %v2907_v44  ;;  %v2926_v3 = vmax.f32 %v2924_v27, %v2925_v4 }
 0x3bb   : > { %v2983_v26 = vmax.f32 %v2982_v29, %v2288_v43  ;;  %v3001_v33 = vmax.f32 %v3000_v53, %v2481_v45  ;;  %v2975_v41 = vrot.slane %v2974_v37, 4  ;;  %v2993_v24 = vrot.slane %v2992_v38, 4 }
 0x3bc   : > { %v2292_v49 = vpop.f32.mrf.mxu0  ;;  %v2485_v50 = vpop.f32.mrf.mxu1  ;;  %v2934_v56 = vrot.slane %v2933_v31, 1 }
 0x3bd   : > { %v2984_v58 = vrot.slane %v2983_v26, 4  ;;  %v3002_v60 = vrot.slane %v3001_v33, 4  ;;  %v2976_v8 = vmax.f32 %v2974_v37, %v2975_v41  ;;  %v2994_v10 = vmax.f32 %v2992_v38, %v2993_v24 }
 0x3be   : > { %v2294_v51 = vpop.f32.mrf.mxu0  ;;  %v2487_v52 = vpop.f32.mrf.mxu1 }
 0x3bf   : > { %v2985_v6 = vmax.f32 %v2983_v26, %v2984_v58  ;;  %v3003_v13 = vmax.f32 %v3001_v33, %v3002_v60  ;;  %v2977_v19 = vrot.slane %v2976_v8, 2  ;;  %v2995_v63 = vrot.slane %v2994_v10, 2 }
 0x3c0   : > { %v2296_v61 = vpop.f32.mrf.mxu0  ;;  %v2489_v62 = vpop.f32.mrf.mxu1 }
 0x3c1   : > { %v3044_v17 = vmax.f32 %v2292_v49, %v2296_v61  ;;  %v3062_v5 = vmax.f32 %v2485_v50, %v2489_v62  ;;  %v2986_v36 = vrot.slane %v2985_v6, 2  ;;  %v3004_v29 = vrot.slane %v3003_v13, 2 }
 0x3c2   : > { %v2298_v12 = vpop.f32.mrf.mxu0  ;;  %v2491_v11 = vpop.f32.mrf.mxu1  ;;  %v2978_v46 = vmax.f32 %v2976_v8, %v2977_v19  ;;  %v2996_v48 = vmax.f32 %v2994_v10, %v2995_v63  ;;  %v3191_v19 = vsel %vm3160_vm7, %v2908_v2, %v8229_v18  ;;  %v3205_v63 = vsel %vm3160_vm7, %v2926_v3, %v8233_v9 }
 0x3c3   : > { %v3053_v35 = vmax.f32 %v2294_v51, %v2298_v12  ;;  %v3071_v30 = vmax.f32 %v2487_v52, %v2491_v11  ;;  %v2987_v41 = vmax.f32 %v2985_v6, %v2986_v36  ;;  %v3005_v24 = vmax.f32 %v3003_v13, %v3004_v29 }
 0x3c4   : > { %v2302_v21 = vpop.f32.mrf.mxu0  ;;  %v2495_v47 = vpop.f32.mrf.mxu1  ;;  %v2979_v58 = vrot.slane %v2978_v46, 1  ;;  %v2997_v60 = vrot.slane %v2996_v48, 1  ;;  %v2917_v6 = vmax.f32 %v2915_v40, %v2916_v55  ;;  %v2935_v13 = vmax.f32 %v2933_v31, %v2934_v56 }
 0x3c5   : > { %v3045_v14 = vmax.f32 %v3044_v17, %v2302_v21  ;;  %v3063_v57 = vmax.f32 %v3062_v5, %v2495_v47  ;;  %v2988_v8 = vrot.slane %v2987_v41, 1  ;;  %v3006_v10 = vrot.slane %v3005_v24, 1 }
 0x3c6   : > { %v2304_v25 = vpop.f32.mrf.mxu0  ;;  %v2497_v7 = vpop.f32.mrf.mxu1  ;;  %v2980_v21 = vmax.f32 %v2978_v46, %v2979_v58  ;;  %v2998_v47 = vmax.f32 %v2996_v48, %v2997_v60  ;;  %v3198_v36 = vsel %vm3160_vm7, %v2917_v6, %v8237_v28  ;;  %v3212_v29 = vsel %vm3160_vm7, %v2935_v13, %v8241_v32 }
 0x3c7   : > { %v3054_v16 = vmax.f32 %v3053_v35, %v2304_v25  ;;  %v3072_v38 = vmax.f32 %v3071_v30, %v2497_v7  ;;  %v2989_v25 = vmax.f32 %v2987_v41, %v2988_v8  ;;  %v3007_v7 = vmax.f32 %v3005_v24, %v3006_v10  ;;  %v3084_v30 = vld [vmem:[#allocation2 + $0x8] sm:$0xff] }
 0x3c8   : > { %v2306_v53 = vpop.f32.mrf.mxu0  ;;  %v2499_v37 = vpop.f32.mrf.mxu1  ;;  %v3206_v18 = vsel %vm3162_vm8, %v2998_v47, %v3205_v63 }
 0x3c9   : > { %v3046_v43 = vmax.f32 %v3045_v14, %v2306_v53  ;;  %v3064_v45 = vmax.f32 %v3063_v57, %v2499_v37  ;;  %v3086_v57 = vld [vmem:[#allocation2 + $0x28] sm:$0xff]  ;;  %v3192_v53 = vsel %vm3162_vm8, %v2980_v21, %v3191_v19  ;;  %v3199_v40 = vsel %vm3162_vm8, %v2989_v25, %v3198_v36 }
 0x3ca   : > { %v2308_v26 = vpop.f32.mrf.mxu0  ;;  %v2501_v33 = vpop.f32.mrf.mxu1  ;;  %v3213_v31 = vsel %vm3162_vm8, %v3007_v7, %v3212_v29 }
 0x3cb   : > { %v3047_v49 = vrot.slane %v3046_v43, 4  ;;  %v3065_v50 = vrot.slane %v3064_v45, 4  ;;  %v3055_v42 = vmax.f32 %v3054_v16, %v2308_v26  ;;  %v3073_v39 = vmax.f32 %v3072_v38, %v2501_v33  ;;  %v3085_v38 = vld [vmem:[#allocation2 + $0x20] sm:$0xff] }
 0x3cd   : > { %v3048_v51 = vmax.f32 %v3046_v43, %v3047_v49  ;;  %v3066_v52 = vmax.f32 %v3064_v45, %v3065_v50  ;;  %v3056_v54 = vrot.slane %v3055_v42, 4  ;;  %v3074_v20 = vrot.slane %v3073_v39, 4  ;;  %v3087_v45 = vld [vmem:[#allocation2 + $0x38] sm:$0xff] }
 0x3cf   : > { %v3049_v61 = vrot.slane %v3048_v51, 2  ;;  %v3067_v62 = vrot.slane %v3066_v52, 2  ;;  %v3057_v0 = vmax.f32 %v3055_v42, %v3056_v54  ;;  %v3075_v1 = vmax.f32 %v3073_v39, %v3074_v20 }
 0x3d1   : > { %v3050_v12 = vmax.f32 %v3048_v51, %v3049_v61  ;;  %v3068_v11 = vmax.f32 %v3066_v52, %v3067_v62  ;;  %v3058_v22 = vrot.slane %v3057_v0, 2  ;;  %v3076_v15 = vrot.slane %v3075_v1, 2 }
 0x3d3   : > { %v3051_v17 = vrot.slane %v3050_v12, 1  ;;  %v3069_v5 = vrot.slane %v3068_v11, 1  ;;  %v3059_v34 = vmax.f32 %v3057_v0, %v3058_v22  ;;  %v3077_v59 = vmax.f32 %v3075_v1, %v3076_v15 }
 0x3d5   : > { %v3052_v35 = vmax.f32 %v3050_v12, %v3051_v17  ;;  %v3070_v14 = vmax.f32 %v3068_v11, %v3069_v5  ;;  %v3060_v23 = vrot.slane %v3059_v34, 1  ;;  %v3078_v27 = vrot.slane %v3077_v59, 1 }
 0x3d7   : > { %v3193_v9 = vsel %vm3164_vm9, %v3052_v35, %v3192_v53  ;;  %v3207_v37 = vsel %vm3164_vm9, %v3070_v14, %v3206_v18  ;;  %v3061_v16 = vmax.f32 %v3059_v34, %v3060_v23  ;;  %v3079_v43 = vmax.f32 %v3077_v59, %v3078_v27 }
 0x3d8   : > { %v3227_v28 = vmax.f32 %v3084_v30, %v3193_v9  ;;  %v3229_v46 = vmax.f32 %v3086_v57, %v3207_v37  ;;  %3242 = sbr.rel (%p6120_p12) target bundleno = 1852 (0x73c), region = 129 }
 0x3d9   : > { %v3200_v32 = vsel %vm3164_vm9, %v3061_v16, %v3199_v40  ;;  %v3214_v48 = vsel %vm3164_vm9, %v3079_v43, %v3213_v31 }
 0x3da   : > { %3235 = vst [vmem:[#allocation2 + $0x8] sm:$0xff] %v3227_v28  ;;  %3237 = vst [vmem:[#allocation2 + $0x28] sm:$0xff] %v3229_v46  ;;  %v3228_v26 = vmax.f32 %v3085_v38, %v3200_v32  ;;  %v3230_v33 = vmax.f32 %v3087_v45, %v3214_v48 }
 0x3dc   : > { %3236 = vst [vmem:[#allocation2 + $0x20] sm:$0xff] %v3228_v26  ;;  %3238 = vst [vmem:[#allocation2 + $0x38] sm:$0xff] %v3230_v33 }
 0x3dd   : > { %v6731_v49 = vld [vmem:[#allocation4 + $0xe4] ss:$16 sps:$4 sm:$0xff]   ;;  %v6735_v42 = vld [vmem:[#allocation4 + $0xe0] ss:$16 sps:$4 sm:$0xff]   ;;  %v3253_v63 = vlaneseq  ;;  %vm5868_vm10 = vcmask 130048  }
 0x3de   : > { %v6733_v50 = vld [vmem:[#allocation4 + $0x2e4] ss:$16 sps:$4 sm:$0xff]   ;;  %4875 = vmatprep.subr.bf16.mxu0 %v6731_v49  ;;  %v6736_v39 = vld [vmem:[#allocation4 + $0x2e0] ss:$16 sps:$4 sm:$0xff]  }
 0x3df   : > { %4916 = vmatprep.subr.bf16.mxu1 %v6733_v50  ;;  %v6737_v44 = vld [vmem:[#allocation4 + $0xc4] ss:$16 sps:$4 sm:$0xff]   ;;  %4876 = vmatpush1.bf16.msra.mxu0 %v6735_v42  ;;  %v6741_v41 = vld [vmem:[#allocation4 + $0xc0] ss:$16 sps:$4 sm:$0xff]   ;;  %v8260_v14 = vshrl.u32 %v3253_v63, 7 }
 0x3e0   : > { %4917 = vmatpush1.bf16.msra.mxu1 %v6736_v39  ;;  %v6739_v4 = vld [vmem:[#allocation4 + $0x2c4] ss:$16 sps:$4 sm:$0xff]   ;;  %4877 = vmatprep.subr.bf16.mxu0 %v6737_v44  ;;  %v6742_v24 = vld [vmem:[#allocation4 + $0x2c0] ss:$16 sps:$4 sm:$0xff]  }
 0x3e1   : > { %4918 = vmatprep.subr.bf16.mxu1 %v6739_v4  ;;  %v6743_v51 = vld [vmem:[#allocation4 + $0xa4] ss:$16 sps:$4 sm:$0xff]   ;;  %v6747_v54 = vld [vmem:[#allocation4 + $0xa0] ss:$16 sps:$4 sm:$0xff]   ;;  %v8263_v29 = vsub.s32 1, %v8260_v14  ;;  %v3267_v53 = vsub.s32 3, %v8260_v14 }
 0x3e2   : > { %v6745_v52 = vld [vmem:[#allocation4 + $0x2a4] ss:$16 sps:$4 sm:$0xff]   ;;  %v6748_v20 = vld [vmem:[#allocation4 + $0x2a0] ss:$16 sps:$4 sm:$0xff]   ;;  %v3271_v37 = vsub.s32 4, %v8260_v14  ;;  %v3279_v45 = vsub.s32 6, %v8260_v14 }
 0x3e3   : > { %4878 = vmatpush1.bf16.msra.mxu0 %v6741_v41  ;;  %v6749_v55 = vld [vmem:[#allocation4 + $0x84] ss:$16 sps:$4 sm:$0xff]   ;;  %v6753_v58 = vld [vmem:[#allocation4 + $0x80] ss:$16 sps:$4 sm:$0xff]   ;;  %v8282_v50 = vsub.s32 0, %v8260_v14  ;;  %v3263_v42 = vsub.s32 2, %v8260_v14 }
 0x3e4   : > { %4919 = vmatpush1.bf16.msra.mxu1 %v6742_v24  ;;  %4879 = vmatprep.subr.bf16.mxu0 %v6743_v51  ;;  %v6751_v56 = vld [vmem:[#allocation4 + $0x284] ss:$16 sps:$4 sm:$0xff]   ;;  %v6754_v60 = vld [vmem:[#allocation4 + $0x280] ss:$16 sps:$4 sm:$0xff]  }
 0x3e5   : > { %4920 = vmatprep.subr.bf16.mxu1 %v6745_v52  ;;  %v6755_v61 = vld [vmem:[#allocation4 + $0x64] ss:$16 sps:$4 sm:$0xff]   ;;  %v6759_v0 = vld [vmem:[#allocation4 + $0x60] ss:$16 sps:$4 sm:$0xff]  }
 0x3e6   : > { %v6757_v62 = vld [vmem:[#allocation4 + $0x264] ss:$16 sps:$4 sm:$0xff]   ;;  %v6760_v1 = vld [vmem:[#allocation4 + $0x260] ss:$16 sps:$4 sm:$0xff]  }
 0x3e7   : > { %4880 = vmatpush1.bf16.msra.mxu0 %v6747_v54  ;;  %v6761_v2 = vld [vmem:[#allocation4 + $0x44] ss:$16 sps:$4 sm:$0xff]   ;;  %v6765_v8 = vld [vmem:[#allocation4 + $0x40] ss:$16 sps:$4 sm:$0xff]  }
 0x3e8   : > { %4921 = vmatpush1.bf16.msra.mxu1 %v6748_v20  ;;  %4881 = vmatprep.subr.bf16.mxu0 %v6749_v55  ;;  %v6763_v3 = vld [vmem:[#allocation4 + $0x244] ss:$16 sps:$4 sm:$0xff]   ;;  %v6766_v10 = vld [vmem:[#allocation4 + $0x240] ss:$16 sps:$4 sm:$0xff]  }
 0x3e9   : > { %4922 = vmatprep.subr.bf16.mxu1 %v6751_v56  ;;  %v6767_v12 = vld [vmem:[#allocation4 + $0x24] ss:$16 sps:$4 sm:$0xff]   ;;  %v6771_v22 = vld [vmem:[#allocation4 + $0x20] ss:$16 sps:$4 sm:$0xff]  }
 0x3ea   : > { %v6769_v11 = vld [vmem:[#allocation4 + $0x224] ss:$16 sps:$4 sm:$0xff]   ;;  %v6772_v15 = vld [vmem:[#allocation4 + $0x220] ss:$16 sps:$4 sm:$0xff]  }
 0x3eb   : > { %4882 = vmatpush1.bf16.msra.mxu0 %v6753_v58  ;;  %v6773_v6 = vld [vmem:[#allocation4 + $0x4] ss:$16 sps:$4 sm:$0xff]   ;;  %v6777_v21 = vld [vmem:[#allocation4] ss:$16 sps:$4 sm:$0xff]  }
 0x3ec   : > { %4923 = vmatpush1.bf16.msra.mxu1 %v6754_v60  ;;  %4883 = vmatprep.subr.bf16.mxu0 %v6755_v61  ;;  %v6775_v13 = vld [vmem:[#allocation4 + $0x204] ss:$16 sps:$4 sm:$0xff]   ;;  %v6778_v47 = vld [vmem:[#allocation4 + $0x200] ss:$16 sps:$4 sm:$0xff]   ;;  %v3245_v61 = vld [vmem:[#allocation2 + $0x18] sm:$0xff] }
 0x3ed   : > { %4924 = vmatprep.subr.bf16.mxu1 %v6757_v62  ;;  %v6779_v17 = vld [vmem:[#allocation4 + $0x1e4] ss:$16 sps:$4 sm:$0xff]   ;;  %v6783_v34 = vld [vmem:[#allocation4 + $0x1e0] ss:$16 sps:$4 sm:$0xff]  }
 0x3ee   : > { %v6781_v5 = vld [vmem:[#allocation4 + $0x3e4] ss:$16 sps:$4 sm:$0xff]   ;;  %v6784_v59 = vld [vmem:[#allocation4 + $0x3e0] ss:$16 sps:$4 sm:$0xff]  }
 0x3ef   : > { %4884 = vmatpush1.bf16.msra.mxu0 %v6759_v0  ;;  %v6785_v19 = vld [vmem:[#allocation4 + $0x1c4] ss:$16 sps:$4 sm:$0xff]   ;;  %v6789_v7 = vld [vmem:[#allocation4 + $0x1c0] ss:$16 sps:$4 sm:$0xff]  }
 0x3f0   : > { %4925 = vmatpush1.bf16.msra.mxu1 %v6760_v1  ;;  %4885 = vmatprep.subr.bf16.mxu0 %v6761_v2  ;;  %v6787_v25 = vld [vmem:[#allocation4 + $0x3c4] ss:$16 sps:$4 sm:$0xff]   ;;  %v6790_v35 = vld [vmem:[#allocation4 + $0x3c0] ss:$16 sps:$4 sm:$0xff]  }
 0x3f1   : > { %4926 = vmatprep.subr.bf16.mxu1 %v6763_v3  ;;  %v6791_v30 = vld [vmem:[#allocation4 + $0x1a4] ss:$16 sps:$4 sm:$0xff]   ;;  %v6795_v23 = vld [vmem:[#allocation4 + $0x1a0] ss:$16 sps:$4 sm:$0xff]  }
 0x3f2   : > { %v6793_v57 = vld [vmem:[#allocation4 + $0x3a4] ss:$16 sps:$4 sm:$0xff]   ;;  %v6796_v27 = vld [vmem:[#allocation4 + $0x3a0] ss:$16 sps:$4 sm:$0xff]  }
 0x3f3   : > { %4886 = vmatpush1.bf16.msra.mxu0 %v6765_v8  ;;  %v6797_v36 = vld [vmem:[#allocation4 + $0x184] ss:$16 sps:$4 sm:$0xff]   ;;  %v6801_v9 = vld [vmem:[#allocation4 + $0x180] ss:$16 sps:$4 sm:$0xff]  }
 0x3f4   : > { %4927 = vmatpush1.bf16.msra.mxu1 %v6766_v10  ;;  %4887 = vmatprep.subr.bf16.mxu0 %v6767_v12  ;;  %v6799_v18 = vld [vmem:[#allocation4 + $0x384] ss:$16 sps:$4 sm:$0xff]   ;;  %v6802_v40 = vld [vmem:[#allocation4 + $0x380] ss:$16 sps:$4 sm:$0xff]  }
 0x3f5   : > { %4928 = vmatprep.subr.bf16.mxu1 %v6769_v11  ;;  %v3244_v16 = vld [vmem:[#allocation2] sm:$0xff]  ;;  %v3246_v43 = vld [vmem:[#allocation2 + $0x10] sm:$0xff] }
 0x3f6   : > { %v8270_v38 = vld [vmem:[%s8517_s11] sm:$0xff]  ;;  %v3243_v60 = vld [vmem:[#allocation2 + $0x30] sm:$0xff] }
 0x3f7   : > { %4888 = vmatpush1.bf16.msra.mxu0 %v6771_v22  ;;  %v3260_v31 = vrot.slane %v8270_v38, %v8263_v29  ;;  %v3268_v28 = vrot.slane %v8270_v38, %v3267_v53  ;;  %v6803_v46 = vld [vmem:[#allocation4 + $0x164] ss:$16 sps:$4 sm:$0xff]   ;;  %v8279_v33 = vrot.slane %v8270_v38, %v3271_v37  ;;  %v6807_v49 = vld [vmem:[#allocation4 + $0x160] ss:$16 sps:$4 sm:$0xff]   ;;  %v8286_v39 = vrot.slane %v8270_v38, %v3279_v45 }
 0x3f8   : > { %4929 = vmatpush1.bf16.msra.mxu1 %v6772_v15  ;;  %4889 = vmatprep.subr.bf16.mxu0 %v6773_v6  ;;  %v6805_v32 = vld [vmem:[#allocation4 + $0x364] ss:$16 sps:$4 sm:$0xff]   ;;  %v6808_v44 = vld [vmem:[#allocation4 + $0x360] ss:$16 sps:$4 sm:$0xff]   ;;  %v3256_v56 = vrot.slane %v8270_v38, %v8282_v50  ;;  %v3264_v58 = vrot.slane %v8270_v38, %v3263_v42 }
 0x3f9   : > { %4930 = vmatprep.subr.bf16.mxu1 %v6775_v13  ;;  %v3294_v48 = vadd.f32 %v3260_v31, %v3244_v16  ;;  %v3296_v26 = vadd.f32 %v3268_v28, %v3246_v43  ;;  %v6809_v24 = vld [vmem:[#allocation4 + $0x144] ss:$16 sps:$4 sm:$0xff]   ;;  %v6813_v52 = vld [vmem:[#allocation4 + $0x140] ss:$16 sps:$4 sm:$0xff]   ;;  %v3275_v16 = vsub.s32 5, %v8260_v14 }
 0x3fa   : > { %v6811_v51 = vld [vmem:[#allocation4 + $0x344] ss:$16 sps:$4 sm:$0xff]   ;;  %v6814_v55 = vld [vmem:[#allocation4 + $0x340] ss:$16 sps:$4 sm:$0xff]   ;;  %v3293_v1 = vadd.f32 %v3256_v56, %v3243_v60  ;;  %v3295_v2 = vadd.f32 %v3264_v58, %v3245_v61 }
 0x3fb   : > { %4890 = vmatpush1.bf16.msra.mxu0 %v6777_v21  ;;  %v3302_v4 = vmax.f32 %v3294_v48, 0.0  ;;  %v3304_v41 = vmax.f32 %v3296_v26, 0.0  ;;  %v6815_v62 = vld [vmem:[#allocation4 + $0x124] ss:$16 sps:$4 sm:$0xff]   ;;  %v6819_v3 = vld [vmem:[#allocation4 + $0x120] ss:$16 sps:$4 sm:$0xff]   ;;  %v3276_v48 = vrot.slane %v8270_v38, %v3275_v16 }
 0x3fc   : > { %4931 = vmatpush1.bf16.msra.mxu1 %v6778_v47  ;;  %4891 = vmatprep.subr.bf16.mxu0 %v6779_v17  ;;  %v6817_v0 = vld [vmem:[#allocation4 + $0x324] ss:$16 sps:$4 sm:$0xff]   ;;  %v6820_v8 = vld [vmem:[#allocation4 + $0x320] ss:$16 sps:$4 sm:$0xff]   ;;  %v3301_v11 = vmax.f32 %v3293_v1, 0.0  ;;  %v3303_v22 = vmax.f32 %v3295_v2, 0.0 }
 0x3fd   : > { %4932 = vmatprep.subr.bf16.mxu1 %v6781_v5  ;;  %v8288_v54 = vpack.c.bf16 %v3302_v4, %v3302_v4  ;;  %v8290_v20 = vpack.c.bf16 %v3304_v41, %v3304_v41  ;;  %v6821_v10 = vld [vmem:[#allocation4 + $0x104] ss:$16 sps:$4 sm:$0xff]   ;;  %v6825_v15 = vld [vmem:[#allocation4 + $0x100] ss:$16 sps:$4 sm:$0xff]   ;;  %v3250_v41 = vld [vmem:[#allocation2 + $0x38] sm:$0xff] }
 0x3fe   : > { %v6823_v12 = vld [vmem:[#allocation4 + $0x304] ss:$16 sps:$4 sm:$0xff]   ;;  %v6826_v6 = vld [vmem:[#allocation4 + $0x300] ss:$16 sps:$4 sm:$0xff]   ;;  %v8299_v47 = vpack.c.bf16 %v3301_v11, %v3301_v11  ;;  %v8301_v17 = vpack.c.bf16 %v3303_v22, %v3303_v22 }
 0x3ff   : > { %4892 = vmatpush2.bf16.msra.mxu0 %v6783_v34  ;;  %4907 = vmatprep.mubr.bf16.mxu0 %v8288_v54  ;;  %v6829_v13 = vld [vmem:[#allocation4 + $0x4e4] ss:$16 sps:$4 sm:$0xff]   ;;  %v6827_v5 = vld [vmem:[#allocation4 + $0x4e0] ss:$16 sps:$4 sm:$0xff]  }
 0x400   : > { %4933 = vmatpush2.bf16.msra.mxu1 %v6784_v59  ;;  %4893 = vmatprep.subr.bf16.mxu0 %v6785_v19  ;;  %v6832_v21 = vld [vmem:[#allocation4 + $0x6e4] ss:$16 sps:$4 sm:$0xff]   ;;  %v6830_v34 = vld [vmem:[#allocation4 + $0x6e0] ss:$16 sps:$4 sm:$0xff]  }
 0x401   : > { %4934 = vmatprep.subr.bf16.mxu1 %v6787_v25  ;;  %4948 = vmatprep.mubr.bf16.mxu1 %v8290_v20  ;;  %v6835_v59 = vld [vmem:[#allocation4 + $0x4c4] ss:$16 sps:$4 sm:$0xff]   ;;  %v6833_v63 = vld [vmem:[#allocation4 + $0x4c0] ss:$16 sps:$4 sm:$0xff]  }
 0x402   : > { %v6838_v19 = vld [vmem:[#allocation4 + $0x6c4] ss:$16 sps:$4 sm:$0xff]   ;;  %v6836_v25 = vld [vmem:[#allocation4 + $0x6c0] ss:$16 sps:$4 sm:$0xff]  }
 0x403   : > { %4894 = vmatpush2.bf16.msra.mxu0 %v6789_v7  ;;  %v6841_v7 = vld [vmem:[#allocation4 + $0x4a4] ss:$16 sps:$4 sm:$0xff]   ;;  %v6851_v43 = vld [vmem:[#allocation4 + $0x460] ss:$16 sps:$4 sm:$0xff]  }
 0x404   : > { %4935 = vmatpush2.bf16.msra.mxu1 %v6790_v35  ;;  %4895 = vmatprep.subr.bf16.mxu0 %v6791_v30  ;;  %v6844_v35 = vld [vmem:[#allocation4 + $0x6a4] ss:$16 sps:$4 sm:$0xff]   ;;  %v6839_v30 = vld [vmem:[#allocation4 + $0x4a0] ss:$16 sps:$4 sm:$0xff]  }
 0x405   : > { %4936 = vmatprep.subr.bf16.mxu1 %v6793_v57  ;;  %v6842_v57 = vld [vmem:[#allocation4 + $0x6a0] ss:$16 sps:$4 sm:$0xff]   ;;  %v6856_v37 = vld [vmem:[#allocation4 + $0x664] ss:$16 sps:$4 sm:$0xff]  }
 0x406   : > { %v6854_v45 = vld [vmem:[#allocation4 + $0x660] ss:$16 sps:$4 sm:$0xff]   ;;  %v6859_v31 = vld [vmem:[#allocation4 + $0x444] ss:$16 sps:$4 sm:$0xff]  }
 0x407   : > { %4896 = vmatpush2.bf16.msra.mxu0 %v6795_v23  ;;  %v6847_v23 = vld [vmem:[#allocation4 + $0x484] ss:$16 sps:$4 sm:$0xff]   ;;  %v6881_v22 = vld [vmem:[#allocation4 + $0x5c0] ss:$16 sps:$4 sm:$0xff]  }
 0x408   : > { %4937 = vmatpush2.bf16.msra.mxu1 %v6796_v27  ;;  %4897 = vmatprep.subr.bf16.mxu0 %v6797_v36  ;;  %v6850_v27 = vld [vmem:[#allocation4 + $0x684] ss:$16 sps:$4 sm:$0xff]   ;;  %v6845_v36 = vld [vmem:[#allocation4 + $0x480] ss:$16 sps:$4 sm:$0xff]  }
 0x409   : > { %4938 = vmatprep.subr.bf16.mxu1 %v6799_v18  ;;  %v6848_v18 = vld [vmem:[#allocation4 + $0x680] ss:$16 sps:$4 sm:$0xff]   ;;  %v6862_v28 = vld [vmem:[#allocation4 + $0x644] ss:$16 sps:$4 sm:$0xff]  }
 0x40a   : > { %v3248_v4 = vld [vmem:[#allocation2 + $0x20] sm:$0xff] }
 0x40b   : > { %4898 = vmatpush2.bf16.msra.mxu0 %v6801_v9  ;;  %v6853_v9 = vld [vmem:[#allocation4 + $0x464] ss:$16 sps:$4 sm:$0xff]  }
 0x40c   : > { %4939 = vmatpush2.bf16.msra.mxu1 %v6802_v40  ;;  %4899 = vmatprep.subr.bf16.mxu0 %v6803_v46  ;;  %v3283_v40 = vsub.s32 7, %v8260_v14  ;;  %v6857_v46 = vld [vmem:[#allocation4 + $0x440] ss:$16 sps:$4 sm:$0xff]   ;;  %v6871_v56 = vld [vmem:[#allocation4 + $0x404] ss:$16 sps:$4 sm:$0xff]  }
 0x40d   : > { %4940 = vmatprep.subr.bf16.mxu1 %v6805_v32  ;;  %v6860_v32 = vld [vmem:[#allocation4 + $0x640] ss:$16 sps:$4 sm:$0xff]   ;;  %v6874_v58 = vld [vmem:[#allocation4 + $0x604] ss:$16 sps:$4 sm:$0xff]  }
 0x40e   : > { %v3284_v26 = vrot.slane %v8270_v38, %v3283_v40  ;;  %v6869_v38 = vld [vmem:[#allocation4 + $0x400] ss:$16 sps:$4 sm:$0xff]   ;;  %v6877_v2 = vld [vmem:[#allocation4 + $0x5e4] ss:$16 sps:$4 sm:$0xff]  }
 0x40f   : > { %4900 = vmatpush2.bf16.msra.mxu0 %v6807_v49  ;;  %v6865_v49 = vld [vmem:[#allocation4 + $0x424] ss:$16 sps:$4 sm:$0xff]   ;;  %v6911_v40 = vld [vmem:[#allocation4 + $0x520] ss:$16 sps:$4 sm:$0xff]  }
 0x410   : > { %4941 = vmatpush2.bf16.msra.mxu1 %v6808_v44  ;;  %4901 = vmatprep.subr.bf16.mxu0 %v6809_v24  ;;  %v6868_v44 = vld [vmem:[#allocation4 + $0x624] ss:$16 sps:$4 sm:$0xff]   ;;  %v6863_v24 = vld [vmem:[#allocation4 + $0x420] ss:$16 sps:$4 sm:$0xff]  }
 0x411   : > { %4942 = vmatprep.subr.bf16.mxu1 %v6811_v51  ;;  %v6866_v51 = vld [vmem:[#allocation4 + $0x620] ss:$16 sps:$4 sm:$0xff]   ;;  %v6886_v11 = vld [vmem:[#allocation4 + $0x7c4] ss:$16 sps:$4 sm:$0xff]  }
 0x412   : > { %v6916_v16 = vld [vmem:[#allocation4 + $0x724] ss:$16 sps:$4 sm:$0xff]  }
 0x413   : > { %4902 = vmatpush2.bf16.msra.mxu0 %v6813_v52  ;;  %v3298_v52 = vadd.f32 %v3276_v48, %v3248_v4 }
 0x414   : > { %4943 = vmatpush2.bf16.msra.mxu1 %v6814_v55  ;;  %4903 = vmatprep.subr.bf16.mxu0 %v6815_v62  ;;  %v3300_v55 = vadd.f32 %v3284_v26, %v3250_v41  ;;  %v6872_v62 = vld [vmem:[#allocation4 + $0x600] ss:$16 sps:$4 sm:$0xff]   ;;  %v6923_v41 = vld [vmem:[#allocation4 + $0xe8] ss:$16 sps:$4 sm:$0xff]  }
 0x415   : > { %4944 = vmatprep.subr.bf16.mxu1 %v6817_v0  ;;  %v3306_v60 = vmax.f32 %v3298_v52, 0.0  ;;  %v6917_v26 = vld [vmem:[#allocation4 + $0x500] ss:$16 sps:$4 sm:$0xff]   ;;  %v6934_v52 = vld [vmem:[#allocation4 + $0x2cc] ss:$16 sps:$4 sm:$0xff]  }
 0x416   : > { %v3308_v61 = vmax.f32 %v3300_v55, 0.0  ;;  %v6929_v55 = vld [vmem:[#allocation4 + $0xc8] ss:$16 sps:$4 sm:$0xff]  }
 0x417   : > { %4904 = vmatpush2.bf16.msra.mxu0 %v6819_v3  ;;  %v8309_v0 = vpack.c.bf16 %v3306_v60, %v3306_v60  ;;  %v6880_v3 = vld [vmem:[#allocation4 + $0x7e4] ss:$16 sps:$4 sm:$0xff]   ;;  %v6940_v60 = vld [vmem:[#allocation4 + $0x2ac] ss:$16 sps:$4 sm:$0xff]  }
 0x418   : > { %4945 = vmatpush2.bf16.msra.mxu1 %v6820_v8  ;;  %4905 = vmatprep.subr.bf16.mxu0 %v6821_v10  ;;  %v8311_v1 = vpack.c.bf16 %v3308_v61, %v3308_v61  ;;  %v6875_v8 = vld [vmem:[#allocation4 + $0x5e0] ss:$16 sps:$4 sm:$0xff]   ;;  %v6935_v61 = vld [vmem:[#allocation4 + $0xa8] ss:$16 sps:$4 sm:$0xff]  }
 0x419   : > { %4946 = vmatprep.subr.bf16.mxu1 %v6823_v12  ;;  %v6878_v10 = vld [vmem:[#allocation4 + $0x7e0] ss:$16 sps:$4 sm:$0xff]   ;;  %v6883_v12 = vld [vmem:[#allocation4 + $0x5c4] ss:$16 sps:$4 sm:$0xff]  }
 0x41b   : > { %4906 = vmatpush2.bf16.msra.mxu0 %v6825_v15  ;;  %v6884_v15 = vld [vmem:[#allocation4 + $0x7c0] ss:$16 sps:$4 sm:$0xff]  }
 0x41c   : > { %4947 = vmatpush2.bf16.msra.mxu1 %v6826_v6  ;;  %4957 = vmatprep.subr.bf16.mxu0 %v6829_v13  ;;  %v6889_v6 = vld [vmem:[#allocation4 + $0x5a4] ss:$16 sps:$4 sm:$0xff]  }
 0x41d   : > { %4998 = vmatprep.subr.bf16.mxu1 %v6832_v21  ;;  %v6892_v13 = vld [vmem:[#allocation4 + $0x7a4] ss:$16 sps:$4 sm:$0xff]   ;;  %v6887_v21 = vld [vmem:[#allocation4 + $0x5a0] ss:$16 sps:$4 sm:$0xff]  }
 0x41e   : > { %4908 = vmatmul.mubr.bf16.vlgmr.msra.gmra.mxu0 %v8299_v47 }
 0x41f   : > { %4949 = vmatmul.mubr.bf16.vlgmr.msra.gmra.mxu1 %v8301_v17  ;;  %4958 = vmatpush1.bf16.msra.mxu0 %v6827_v5  ;;  %v6890_v5 = vld [vmem:[#allocation4 + $0x7a0] ss:$16 sps:$4 sm:$0xff]  }
 0x420   : > { %4999 = vmatpush1.bf16.msra.mxu1 %v6830_v34  ;;  %4959 = vmatprep.subr.bf16.mxu0 %v6835_v59  ;;  %v6895_v34 = vld [vmem:[#allocation4 + $0x584] ss:$16 sps:$4 sm:$0xff]  }
 0x421   : > { %5000 = vmatprep.subr.bf16.mxu1 %v6838_v19  ;;  %4989 = vmatprep.mubr.bf16.mxu0 %v8309_v0  ;;  %v6898_v59 = vld [vmem:[#allocation4 + $0x784] ss:$16 sps:$4 sm:$0xff]   ;;  %v6893_v19 = vld [vmem:[#allocation4 + $0x580] ss:$16 sps:$4 sm:$0xff]  }
 0x422   : > { %5030 = vmatprep.mubr.bf16.mxu1 %v8311_v1 }
 0x423   : > { %4960 = vmatpush1.bf16.msra.mxu0 %v6833_v63  ;;  %v6896_v63 = vld [vmem:[#allocation4 + $0x780] ss:$16 sps:$4 sm:$0xff]  }
 0x424   : > { %5001 = vmatpush1.bf16.msra.mxu1 %v6836_v25  ;;  %4961 = vmatprep.subr.bf16.mxu0 %v6841_v7  ;;  %v6901_v25 = vld [vmem:[#allocation4 + $0x564] ss:$16 sps:$4 sm:$0xff]  }
 0x425   : > { %5002 = vmatprep.subr.bf16.mxu1 %v6844_v35  ;;  %v6904_v7 = vld [vmem:[#allocation4 + $0x764] ss:$16 sps:$4 sm:$0xff]   ;;  %v6899_v35 = vld [vmem:[#allocation4 + $0x560] ss:$16 sps:$4 sm:$0xff]  }
 0x427   : > { %4962 = vmatpush1.bf16.msra.mxu0 %v6839_v30  ;;  %v6902_v30 = vld [vmem:[#allocation4 + $0x760] ss:$16 sps:$4 sm:$0xff]  }
 0x428   : > { %5003 = vmatpush1.bf16.msra.mxu1 %v6842_v57  ;;  %4963 = vmatprep.subr.bf16.mxu0 %v6847_v23  ;;  %v6907_v57 = vld [vmem:[#allocation4 + $0x544] ss:$16 sps:$4 sm:$0xff]  }
 0x429   : > { %5004 = vmatprep.subr.bf16.mxu1 %v6850_v27  ;;  %v6910_v23 = vld [vmem:[#allocation4 + $0x744] ss:$16 sps:$4 sm:$0xff]   ;;  %v6905_v27 = vld [vmem:[#allocation4 + $0x540] ss:$16 sps:$4 sm:$0xff]  }
 0x42b   : > { %4964 = vmatpush1.bf16.msra.mxu0 %v6845_v36  ;;  %v6908_v36 = vld [vmem:[#allocation4 + $0x740] ss:$16 sps:$4 sm:$0xff]  }
 0x42c   : > { %5005 = vmatpush1.bf16.msra.mxu1 %v6848_v18  ;;  %4965 = vmatprep.subr.bf16.mxu0 %v6853_v9  ;;  %v3247_v18 = vld [vmem:[#allocation2 + $0x8] sm:$0xff] }
 0x42d   : > { %5006 = vmatprep.subr.bf16.mxu1 %v6856_v37  ;;  %v3249_v9 = vld [vmem:[#allocation2 + $0x28] sm:$0xff]  ;;  %v6913_v37 = vld [vmem:[#allocation4 + $0x524] ss:$16 sps:$4 sm:$0xff]  }
 0x42f   : > { %4966 = vmatpush1.bf16.msra.mxu0 %v6851_v43  ;;  %v3297_v43 = vadd.f32 %v8279_v33, %v3247_v18  ;;  %v6928_v33 = vld [vmem:[#allocation4 + $0x2ec] ss:$16 sps:$4 sm:$0xff]   ;;  %v6980_v18 = vld [vmem:[#allocation4 + $0x3c8] ss:$16 sps:$4 sm:$0xff]  }
 0x430   : > { %5007 = vmatpush1.bf16.msra.mxu1 %v6854_v45  ;;  %4967 = vmatprep.subr.bf16.mxu0 %v6859_v31  ;;  %v3299_v45 = vadd.f32 %v8286_v39, %v3249_v9  ;;  %v6914_v31 = vld [vmem:[#allocation4 + $0x720] ss:$16 sps:$4 sm:$0xff]   ;;  %v6985_v9 = vld [vmem:[#allocation4 + $0x1ac] ss:$16 sps:$4 sm:$0xff]  }
 0x431   : > { %5008 = vmatprep.subr.bf16.mxu1 %v6862_v28  ;;  %v6919_v28 = vld [vmem:[#allocation4 + $0x504] ss:$16 sps:$4 sm:$0xff]  }
 0x432   : > { %v3307_v48 = vmax.f32 %v3299_v45, 0.0  ;;  %v6991_v45 = vld [vmem:[#allocation4 + $0x18c] ss:$16 sps:$4 sm:$0xff]  }
 0x433   : > { %4968 = vmatpush1.bf16.msra.mxu0 %v6857_v46  ;;  %v6922_v46 = vld [vmem:[#allocation4 + $0x704] ss:$16 sps:$4 sm:$0xff]  }
 0x434   : > { %5009 = vmatpush1.bf16.msra.mxu1 %v6860_v32  ;;  %4969 = vmatprep.subr.bf16.mxu0 %v6865_v49  ;;  %v3305_v32 = vmax.f32 %v3297_v43, 0.0  ;;  %v6920_v49 = vld [vmem:[#allocation4 + $0x700] ss:$16 sps:$4 sm:$0xff]   ;;  %v8319_v39 = vpack.c.bf16 %v3307_v48, %v3307_v48  ;;  %v6986_v43 = vld [vmem:[#allocation4 + $0x3a8] ss:$16 sps:$4 sm:$0xff]  }
 0x435   : > { %5010 = vmatprep.subr.bf16.mxu1 %v6868_v44  ;;  %v6925_v44 = vld [vmem:[#allocation4 + $0xec] ss:$16 sps:$4 sm:$0xff]   ;;  %v6995_v48 = vld [vmem:[#allocation4 + $0x168] ss:$16 sps:$4 sm:$0xff]  }
 0x436   : > { %v8317_v4 = vpack.c.bf16 %v3305_v32, %v3305_v32  ;;  %v7000_v32 = vld [vmem:[#allocation4 + $0x36c] ss:$16 sps:$4 sm:$0xff]  }
 0x437   : > { %4970 = vmatpush1.bf16.msra.mxu0 %v6863_v24  ;;  %v6926_v24 = vld [vmem:[#allocation4 + $0x2e8] ss:$16 sps:$4 sm:$0xff]  }
 0x438   : > { %5011 = vmatpush1.bf16.msra.mxu1 %v6866_v51  ;;  %4971 = vmatprep.subr.bf16.mxu0 %v6871_v56  ;;  %v6931_v51 = vld [vmem:[#allocation4 + $0xcc] ss:$16 sps:$4 sm:$0xff]   ;;  %v6932_v56 = vld [vmem:[#allocation4 + $0x2c8] ss:$16 sps:$4 sm:$0xff]  }
 0x439   : > { %5012 = vmatprep.subr.bf16.mxu1 %v6874_v58  ;;  %v6937_v58 = vld [vmem:[#allocation4 + $0xac] ss:$16 sps:$4 sm:$0xff]  }
 0x43b   : > { %4972 = vmatpush1.bf16.msra.mxu0 %v6869_v38  ;;  %v6938_v38 = vld [vmem:[#allocation4 + $0x2a8] ss:$16 sps:$4 sm:$0xff]  }
 0x43c   : > { %5013 = vmatpush1.bf16.msra.mxu1 %v6872_v62  ;;  %4973 = vmatprep.subr.bf16.mxu0 %v6877_v2  ;;  %v6943_v62 = vld [vmem:[#allocation4 + $0x8c] ss:$16 sps:$4 sm:$0xff]  }
 0x43d   : > { %5014 = vmatprep.subr.bf16.mxu1 %v6880_v3  ;;  %v6946_v2 = vld [vmem:[#allocation4 + $0x28c] ss:$16 sps:$4 sm:$0xff]   ;;  %v6941_v3 = vld [vmem:[#allocation4 + $0x88] ss:$16 sps:$4 sm:$0xff]  }
 0x43f   : > { %4974 = vmatpush2.bf16.msra.mxu0 %v6875_v8  ;;  %v6944_v8 = vld [vmem:[#allocation4 + $0x288] ss:$16 sps:$4 sm:$0xff]  }
 0x440   : > { %5015 = vmatpush2.bf16.msra.mxu1 %v6878_v10  ;;  %4975 = vmatprep.subr.bf16.mxu0 %v6883_v12  ;;  %v6949_v10 = vld [vmem:[#allocation4 + $0x6c] ss:$16 sps:$4 sm:$0xff]  }
 0x441   : > { %5016 = vmatprep.subr.bf16.mxu1 %v6886_v11  ;;  %v6952_v12 = vld [vmem:[#allocation4 + $0x26c] ss:$16 sps:$4 sm:$0xff]  }
 0x442   : > { %v6955_v11 = vld [vmem:[#allocation4 + $0x4c] ss:$16 sps:$4 sm:$0xff]  }
 0x443   : > { %4976 = vmatpush2.bf16.msra.mxu0 %v6881_v22  ;;  %v6958_v22 = vld [vmem:[#allocation4 + $0x24c] ss:$16 sps:$4 sm:$0xff]  }
 0x444   : > { %5017 = vmatpush2.bf16.msra.mxu1 %v6884_v15  ;;  %4977 = vmatprep.subr.bf16.mxu0 %v6889_v6  ;;  %v6953_v15 = vld [vmem:[#allocation4 + $0x48] ss:$16 sps:$4 sm:$0xff]  }
 0x445   : > { %5018 = vmatprep.subr.bf16.mxu1 %v6892_v13  ;;  %v6956_v6 = vld [vmem:[#allocation4 + $0x248] ss:$16 sps:$4 sm:$0xff]   ;;  %v6961_v13 = vld [vmem:[#allocation4 + $0x2c] ss:$16 sps:$4 sm:$0xff]  }
 0x447   : > { %4978 = vmatpush2.bf16.msra.mxu0 %v6887_v21  ;;  %v6964_v21 = vld [vmem:[#allocation4 + $0x22c] ss:$16 sps:$4 sm:$0xff]  }
 0x448   : > { %5019 = vmatpush2.bf16.msra.mxu1 %v6890_v5  ;;  %4979 = vmatprep.subr.bf16.mxu0 %v6895_v34  ;;  %v6959_v5 = vld [vmem:[#allocation4 + $0x28] ss:$16 sps:$4 sm:$0xff]  }
 0x449   : > { %5020 = vmatprep.subr.bf16.mxu1 %v6898_v59  ;;  %v6962_v34 = vld [vmem:[#allocation4 + $0x228] ss:$16 sps:$4 sm:$0xff]   ;;  %v6967_v59 = vld [vmem:[#allocation4 + $0xc] ss:$16 sps:$4 sm:$0xff]  }
 0x44b   : > { %4980 = vmatpush2.bf16.msra.mxu0 %v6893_v19  ;;  %v6970_v19 = vld [vmem:[#allocation4 + $0x20c] ss:$16 sps:$4 sm:$0xff]  }
 0x44c   : > { %5021 = vmatpush2.bf16.msra.mxu1 %v6896_v63  ;;  %4981 = vmatprep.subr.bf16.mxu0 %v6901_v25  ;;  %v6965_v63 = vld [vmem:[#allocation4 + $0x8] ss:$16 sps:$4 sm:$0xff]  }
 0x44d   : > { %5022 = vmatprep.subr.bf16.mxu1 %v6904_v7  ;;  %v6968_v25 = vld [vmem:[#allocation4 + $0x208] ss:$16 sps:$4 sm:$0xff]   ;;  %v6973_v7 = vld [vmem:[#allocation4 + $0x1ec] ss:$16 sps:$4 sm:$0xff]  }
 0x44f   : > { %4982 = vmatpush2.bf16.msra.mxu0 %v6899_v35  ;;  %v6976_v35 = vld [vmem:[#allocation4 + $0x3ec] ss:$16 sps:$4 sm:$0xff]  }
 0x450   : > { %5023 = vmatpush2.bf16.msra.mxu1 %v6902_v30  ;;  %4983 = vmatprep.subr.bf16.mxu0 %v6907_v57  ;;  %v6971_v30 = vld [vmem:[#allocation4 + $0x1e8] ss:$16 sps:$4 sm:$0xff]  }
 0x451   : > { %5024 = vmatprep.subr.bf16.mxu1 %v6910_v23  ;;  %v6974_v57 = vld [vmem:[#allocation4 + $0x3e8] ss:$16 sps:$4 sm:$0xff]   ;;  %v6979_v23 = vld [vmem:[#allocation4 + $0x1cc] ss:$16 sps:$4 sm:$0xff]  }
 0x453   : > { %4984 = vmatpush2.bf16.msra.mxu0 %v6905_v27  ;;  %v6982_v27 = vld [vmem:[#allocation4 + $0x3cc] ss:$16 sps:$4 sm:$0xff]  }
 0x454   : > { %5025 = vmatpush2.bf16.msra.mxu1 %v6908_v36  ;;  %4985 = vmatprep.subr.bf16.mxu0 %v6913_v37  ;;  %v6977_v36 = vld [vmem:[#allocation4 + $0x1c8] ss:$16 sps:$4 sm:$0xff]   ;;  %v6988_v37 = vld [vmem:[#allocation4 + $0x3ac] ss:$16 sps:$4 sm:$0xff]  }
 0x455   : > { %5026 = vmatprep.subr.bf16.mxu1 %v6916_v16  ;;  %v6983_v16 = vld [vmem:[#allocation4 + $0x1a8] ss:$16 sps:$4 sm:$0xff]  }
 0x457   : > { %4986 = vmatpush2.bf16.msra.mxu0 %v6911_v40  ;;  %v6994_v40 = vld [vmem:[#allocation4 + $0x38c] ss:$16 sps:$4 sm:$0xff]  }
 0x458   : > { %5027 = vmatpush2.bf16.msra.mxu1 %v6914_v31  ;;  %4987 = vmatprep.subr.bf16.mxu0 %v6919_v28  ;;  %v6989_v31 = vld [vmem:[#allocation4 + $0x188] ss:$16 sps:$4 sm:$0xff]  }
 0x459   : > { %5028 = vmatprep.subr.bf16.mxu1 %v6922_v46  ;;  %v6992_v28 = vld [vmem:[#allocation4 + $0x388] ss:$16 sps:$4 sm:$0xff]   ;;  %v6997_v46 = vld [vmem:[#allocation4 + $0x16c] ss:$16 sps:$4 sm:$0xff]  }
 0x45b   : > { %4988 = vmatpush2.bf16.msra.mxu0 %v6917_v26  ;;  %v6998_v26 = vld [vmem:[#allocation4 + $0x368] ss:$16 sps:$4 sm:$0xff]  }
 0x45c   : > { %5029 = vmatpush2.bf16.msra.mxu1 %v6920_v49  ;;  %5039 = vmatprep.subr.bf16.mxu0 %v6925_v44  ;;  %v7003_v49 = vld [vmem:[#allocation4 + $0x14c] ss:$16 sps:$4 sm:$0xff]  }
 0x45d   : > { %5080 = vmatprep.subr.bf16.mxu1 %v6928_v33  ;;  %v7006_v44 = vld [vmem:[#allocation4 + $0x34c] ss:$16 sps:$4 sm:$0xff]   ;;  %v7001_v33 = vld [vmem:[#allocation4 + $0x148] ss:$16 sps:$4 sm:$0xff]  }
 0x45e   : > { %4990 = vmatmul.mubr.bf16.vlgmr.msra.gmra.mxu0 %v8317_v4 }
 0x45f   : > { %5031 = vmatmul.mubr.bf16.vlgmr.msra.gmra.mxu1 %v8319_v39  ;;  %5040 = vmatpush1.bf16.msra.mxu0 %v6923_v41  ;;  %v7004_v41 = vld [vmem:[#allocation4 + $0x348] ss:$16 sps:$4 sm:$0xff]  }
 0x460   : > { %5081 = vmatpush1.bf16.msra.mxu1 %v6926_v24  ;;  %5041 = vmatprep.subr.bf16.mxu0 %v6931_v51  ;;  %v7009_v24 = vld [vmem:[#allocation4 + $0x12c] ss:$16 sps:$4 sm:$0xff]  }
 0x461   : > { %5082 = vmatprep.subr.bf16.mxu1 %v6934_v52  ;;  %5071 = vmatprep.mubr.bf16.mxu0 %v8288_v54  ;;  %v6947_v54 = vld [vmem:[#allocation4 + $0x68] ss:$16 sps:$4 sm:$0xff]   ;;  %v7012_v51 = vld [vmem:[#allocation4 + $0x32c] ss:$16 sps:$4 sm:$0xff]  }
 0x462   : > { %5112 = vmatprep.mubr.bf16.mxu1 %v8290_v20  ;;  %v6950_v20 = vld [vmem:[#allocation4 + $0x268] ss:$16 sps:$4 sm:$0xff]  }
 0x463   : > { %5042 = vmatpush1.bf16.msra.mxu0 %v6929_v55  ;;  %v7007_v52 = vld [vmem:[#allocation4 + $0x128] ss:$16 sps:$4 sm:$0xff]  }
 0x464   : > { %5083 = vmatpush1.bf16.msra.mxu1 %v6932_v56  ;;  %5043 = vmatprep.subr.bf16.mxu0 %v6937_v58  ;;  %v7010_v55 = vld [vmem:[#allocation4 + $0x328] ss:$16 sps:$4 sm:$0xff]   ;;  %v7015_v56 = vld [vmem:[#allocation4 + $0x10c] ss:$16 sps:$4 sm:$0xff]  }
 0x465   : > { %5084 = vmatprep.subr.bf16.mxu1 %v6940_v60  ;;  %v7018_v58 = vld [vmem:[#allocation4 + $0x30c] ss:$16 sps:$4 sm:$0xff]   ;;  %v7013_v60 = vld [vmem:[#allocation4 + $0x108] ss:$16 sps:$4 sm:$0xff]  }
 0x467   : > { %5044 = vmatpush1.bf16.msra.mxu0 %v6935_v61  ;;  %v7016_v61 = vld [vmem:[#allocation4 + $0x308] ss:$16 sps:$4 sm:$0xff]  }
 0x468   : > { %5085 = vmatpush1.bf16.msra.mxu1 %v6938_v38  ;;  %5045 = vmatprep.subr.bf16.mxu0 %v6943_v62  ;;  %v7021_v38 = vld [vmem:[#allocation4 + $0x4ec] ss:$16 sps:$4 sm:$0xff]  }
 0x469   : > { %5086 = vmatprep.subr.bf16.mxu1 %v6946_v2  ;;  %v7024_v62 = vld [vmem:[#allocation4 + $0x6ec] ss:$16 sps:$4 sm:$0xff]   ;;  %v7019_v2 = vld [vmem:[#allocation4 + $0x4e8] ss:$16 sps:$4 sm:$0xff]  }
 0x46b   : > { %5046 = vmatpush1.bf16.msra.mxu0 %v6941_v3  ;;  %v7022_v3 = vld [vmem:[#allocation4 + $0x6e8] ss:$16 sps:$4 sm:$0xff]  }
 0x46c   : > { %5087 = vmatpush1.bf16.msra.mxu1 %v6944_v8  ;;  %5047 = vmatprep.subr.bf16.mxu0 %v6949_v10  ;;  %v7027_v8 = vld [vmem:[#allocation4 + $0x4cc] ss:$16 sps:$4 sm:$0xff]  }
 0x46d   : > { %5088 = vmatprep.subr.bf16.mxu1 %v6952_v12  ;;  %v7030_v10 = vld [vmem:[#allocation4 + $0x6cc] ss:$16 sps:$4 sm:$0xff]   ;;  %v7025_v12 = vld [vmem:[#allocation4 + $0x4c8] ss:$16 sps:$4 sm:$0xff]  }
 0x46f   : > { %5048 = vmatpush1.bf16.msra.mxu0 %v6947_v54  ;;  %v7028_v54 = vld [vmem:[#allocation4 + $0x6c8] ss:$16 sps:$4 sm:$0xff]  }
 0x470   : > { %5089 = vmatpush1.bf16.msra.mxu1 %v6950_v20  ;;  %5049 = vmatprep.subr.bf16.mxu0 %v6955_v11  ;;  %v7033_v20 = vld [vmem:[#allocation4 + $0x4ac] ss:$16 sps:$4 sm:$0xff]  }
 0x471   : > { %5090 = vmatprep.subr.bf16.mxu1 %v6958_v22  ;;  %v7036_v11 = vld [vmem:[#allocation4 + $0x6ac] ss:$16 sps:$4 sm:$0xff]   ;;  %v7031_v22 = vld [vmem:[#allocation4 + $0x4a8] ss:$16 sps:$4 sm:$0xff]  }
 0x473   : > { %5050 = vmatpush1.bf16.msra.mxu0 %v6953_v15  ;;  %v7034_v15 = vld [vmem:[#allocation4 + $0x6a8] ss:$16 sps:$4 sm:$0xff]  }
 0x474   : > { %5091 = vmatpush1.bf16.msra.mxu1 %v6956_v6  ;;  %5051 = vmatprep.subr.bf16.mxu0 %v6961_v13  ;;  %v7039_v6 = vld [vmem:[#allocation4 + $0x48c] ss:$16 sps:$4 sm:$0xff]   ;;  %v7037_v13 = vld [vmem:[#allocation4 + $0x488] ss:$16 sps:$4 sm:$0xff]  }
 0x475   : > { %5092 = vmatprep.subr.bf16.mxu1 %v6964_v21  ;;  %v7045_v21 = vld [vmem:[#allocation4 + $0x46c] ss:$16 sps:$4 sm:$0xff]  }
 0x477   : > { %5052 = vmatpush1.bf16.msra.mxu0 %v6959_v5  ;;  %v7048_v5 = vld [vmem:[#allocation4 + $0x66c] ss:$16 sps:$4 sm:$0xff]  }
 0x478   : > { %5093 = vmatpush1.bf16.msra.mxu1 %v6962_v34  ;;  %5053 = vmatprep.subr.bf16.mxu0 %v6967_v59  ;;  %v7043_v34 = vld [vmem:[#allocation4 + $0x468] ss:$16 sps:$4 sm:$0xff]  }
 0x479   : > { %5094 = vmatprep.subr.bf16.mxu1 %v6970_v19  ;;  %v7046_v59 = vld [vmem:[#allocation4 + $0x668] ss:$16 sps:$4 sm:$0xff]   ;;  %v7051_v19 = vld [vmem:[#allocation4 + $0x44c] ss:$16 sps:$4 sm:$0xff]  }
 0x47b   : > { %5054 = vmatpush1.bf16.msra.mxu0 %v6965_v63  ;;  %v7052_v63 = vld [vmem:[#allocation4 + $0x648] ss:$16 sps:$4 sm:$0xff]  }
 0x47c   : > { %5095 = vmatpush1.bf16.msra.mxu1 %v6968_v25  ;;  %5055 = vmatprep.subr.bf16.mxu0 %v6973_v7  ;;  %v7057_v25 = vld [vmem:[#allocation4 + $0x42c] ss:$16 sps:$4 sm:$0xff]  }
 0x47d   : > { %5096 = vmatprep.subr.bf16.mxu1 %v6976_v35  ;;  %v7060_v7 = vld [vmem:[#allocation4 + $0x62c] ss:$16 sps:$4 sm:$0xff]   ;;  %v7055_v35 = vld [vmem:[#allocation4 + $0x428] ss:$16 sps:$4 sm:$0xff]  }
 0x47f   : > { %5056 = vmatpush2.bf16.msra.mxu0 %v6971_v30  ;;  %v7058_v30 = vld [vmem:[#allocation4 + $0x628] ss:$16 sps:$4 sm:$0xff]  }
 0x480   : > { %5097 = vmatpush2.bf16.msra.mxu1 %v6974_v57  ;;  %5057 = vmatprep.subr.bf16.mxu0 %v6979_v23  ;;  %v7063_v57 = vld [vmem:[#allocation4 + $0x40c] ss:$16 sps:$4 sm:$0xff]  }
 0x481   : > { %5098 = vmatprep.subr.bf16.mxu1 %v6982_v27  ;;  %v7066_v23 = vld [vmem:[#allocation4 + $0x60c] ss:$16 sps:$4 sm:$0xff]   ;;  %v7061_v27 = vld [vmem:[#allocation4 + $0x408] ss:$16 sps:$4 sm:$0xff]  }
 0x483   : > { %5058 = vmatpush2.bf16.msra.mxu0 %v6977_v36  ;;  %v7064_v36 = vld [vmem:[#allocation4 + $0x608] ss:$16 sps:$4 sm:$0xff]  }
 0x484   : > { %5099 = vmatpush2.bf16.msra.mxu1 %v6980_v18  ;;  %5059 = vmatprep.subr.bf16.mxu0 %v6985_v9  ;;  %v7069_v18 = vld [vmem:[#allocation4 + $0x5ec] ss:$16 sps:$4 sm:$0xff]  }
 0x485   : > { %5100 = vmatprep.subr.bf16.mxu1 %v6988_v37  ;;  %v7072_v9 = vld [vmem:[#allocation4 + $0x7ec] ss:$16 sps:$4 sm:$0xff]   ;;  %v7067_v37 = vld [vmem:[#allocation4 + $0x5e8] ss:$16 sps:$4 sm:$0xff]  }
 0x487   : > { %5060 = vmatpush2.bf16.msra.mxu0 %v6983_v16  ;;  %v7070_v16 = vld [vmem:[#allocation4 + $0x7e8] ss:$16 sps:$4 sm:$0xff]  }
 0x488   : > { %5101 = vmatpush2.bf16.msra.mxu1 %v6986_v43  ;;  %5061 = vmatprep.subr.bf16.mxu0 %v6991_v45  ;;  %v7075_v43 = vld [vmem:[#allocation4 + $0x5cc] ss:$16 sps:$4 sm:$0xff]  }
 0x489   : > { %5102 = vmatprep.subr.bf16.mxu1 %v6994_v40  ;;  %v7078_v45 = vld [vmem:[#allocation4 + $0x7cc] ss:$16 sps:$4 sm:$0xff]   ;;  %v7073_v40 = vld [vmem:[#allocation4 + $0x5c8] ss:$16 sps:$4 sm:$0xff]  }
 0x48b   : > { %5062 = vmatpush2.bf16.msra.mxu0 %v6989_v31  ;;  %v7076_v31 = vld [vmem:[#allocation4 + $0x7c8] ss:$16 sps:$4 sm:$0xff]  }
 0x48c   : > { %5103 = vmatpush2.bf16.msra.mxu1 %v6992_v28  ;;  %5063 = vmatprep.subr.bf16.mxu0 %v6997_v46  ;;  %v7081_v28 = vld [vmem:[#allocation4 + $0x5ac] ss:$16 sps:$4 sm:$0xff]  }
 0x48d   : > { %5104 = vmatprep.subr.bf16.mxu1 %v7000_v32  ;;  %v7084_v46 = vld [vmem:[#allocation4 + $0x7ac] ss:$16 sps:$4 sm:$0xff]   ;;  %v7079_v32 = vld [vmem:[#allocation4 + $0x5a8] ss:$16 sps:$4 sm:$0xff]  }
 0x48f   : > { %5064 = vmatpush2.bf16.msra.mxu0 %v6995_v48  ;;  %v7082_v48 = vld [vmem:[#allocation4 + $0x7a8] ss:$16 sps:$4 sm:$0xff]  }
 0x490   : > { %5105 = vmatpush2.bf16.msra.mxu1 %v6998_v26  ;;  %5065 = vmatprep.subr.bf16.mxu0 %v7003_v49  ;;  %v7087_v26 = vld [vmem:[#allocation4 + $0x58c] ss:$16 sps:$4 sm:$0xff]  }
 0x491   : > { %5106 = vmatprep.subr.bf16.mxu1 %v7006_v44  ;;  %v7090_v49 = vld [vmem:[#allocation4 + $0x78c] ss:$16 sps:$4 sm:$0xff]   ;;  %v7085_v44 = vld [vmem:[#allocation4 + $0x588] ss:$16 sps:$4 sm:$0xff]  }
 0x493   : > { %5066 = vmatpush2.bf16.msra.mxu0 %v7001_v33  ;;  %v7088_v33 = vld [vmem:[#allocation4 + $0x788] ss:$16 sps:$4 sm:$0xff]  }
 0x494   : > { %5107 = vmatpush2.bf16.msra.mxu1 %v7004_v41  ;;  %5067 = vmatprep.subr.bf16.mxu0 %v7009_v24  ;;  %v7093_v41 = vld [vmem:[#allocation4 + $0x56c] ss:$16 sps:$4 sm:$0xff]  }
 0x495   : > { %5108 = vmatprep.subr.bf16.mxu1 %v7012_v51  ;;  %v7096_v24 = vld [vmem:[#allocation4 + $0x76c] ss:$16 sps:$4 sm:$0xff]   ;;  %v7091_v51 = vld [vmem:[#allocation4 + $0x568] ss:$16 sps:$4 sm:$0xff]  }
 0x497   : > { %5068 = vmatpush2.bf16.msra.mxu0 %v7007_v52  ;;  %v7094_v52 = vld [vmem:[#allocation4 + $0x768] ss:$16 sps:$4 sm:$0xff]  }
 0x498   : > { %5109 = vmatpush2.bf16.msra.mxu1 %v7010_v55  ;;  %5069 = vmatprep.subr.bf16.mxu0 %v7015_v56  ;;  %v7099_v55 = vld [vmem:[#allocation4 + $0x54c] ss:$16 sps:$4 sm:$0xff]  }
 0x499   : > { %5110 = vmatprep.subr.bf16.mxu1 %v7018_v58  ;;  %v7102_v56 = vld [vmem:[#allocation4 + $0x74c] ss:$16 sps:$4 sm:$0xff]   ;;  %v7097_v58 = vld [vmem:[#allocation4 + $0x548] ss:$16 sps:$4 sm:$0xff]  }
 0x49b   : > { %5070 = vmatpush2.bf16.msra.mxu0 %v7013_v60  ;;  %v7100_v60 = vld [vmem:[#allocation4 + $0x748] ss:$16 sps:$4 sm:$0xff]  }
 0x49c   : > { %5111 = vmatpush2.bf16.msra.mxu1 %v7016_v61  ;;  %5121 = vmatprep.subr.bf16.mxu0 %v7021_v38  ;;  %v7105_v61 = vld [vmem:[#allocation4 + $0x52c] ss:$16 sps:$4 sm:$0xff]  }
 0x49d   : > { %5162 = vmatprep.subr.bf16.mxu1 %v7024_v62  ;;  %v7108_v38 = vld [vmem:[#allocation4 + $0x72c] ss:$16 sps:$4 sm:$0xff]   ;;  %v7103_v62 = vld [vmem:[#allocation4 + $0x528] ss:$16 sps:$4 sm:$0xff]  }
 0x49e   : > { %5072 = vmatmul.mubr.bf16.vlgmr.msra.gmra.mxu0 %v8299_v47  ;;  %v7042_v47 = vld [vmem:[#allocation4 + $0x68c] ss:$16 sps:$4 sm:$0xff]  }
 0x49f   : > { %5113 = vmatmul.mubr.bf16.vlgmr.msra.gmra.mxu1 %v8301_v17  ;;  %5122 = vmatpush1.bf16.msra.mxu0 %v7019_v2  ;;  %v7040_v17 = vld [vmem:[#allocation4 + $0x688] ss:$16 sps:$4 sm:$0xff]  }
 0x4a0   : > { %5163 = vmatpush1.bf16.msra.mxu1 %v7022_v3  ;;  %5123 = vmatprep.subr.bf16.mxu0 %v7027_v8  ;;  %v7106_v2 = vld [vmem:[#allocation4 + $0x728] ss:$16 sps:$4 sm:$0xff]   ;;  %v7111_v3 = vld [vmem:[#allocation4 + $0x50c] ss:$16 sps:$4 sm:$0xff]  }
 0x4a1   : > { %5164 = vmatprep.subr.bf16.mxu1 %v7030_v10  ;;  %5153 = vmatprep.mubr.bf16.mxu0 %v8309_v0  ;;  %v7054_v0 = vld [vmem:[#allocation4 + $0x64c] ss:$16 sps:$4 sm:$0xff]   ;;  %v7109_v10 = vld [vmem:[#allocation4 + $0x508] ss:$16 sps:$4 sm:$0xff]  }
 0x4a2   : > { %5194 = vmatprep.mubr.bf16.mxu1 %v8311_v1  ;;  %v7049_v1 = vld [vmem:[#allocation4 + $0x448] ss:$16 sps:$4 sm:$0xff]   ;;  %v7114_v8 = vld [vmem:[#allocation4 + $0x70c] ss:$16 sps:$4 sm:$0xff]  }
 0x4a3   : > { %5124 = vmatpush1.bf16.msra.mxu0 %v7025_v12  ;;  %v7112_v12 = vld [vmem:[#allocation4 + $0x708] ss:$16 sps:$4 sm:$0xff]  }
 0x4a4   : > { %5165 = vmatpush1.bf16.msra.mxu1 %v7028_v54  ;;  %5125 = vmatprep.subr.bf16.mxu0 %v7033_v20  ;;  %v7117_v54 = vld [vmem:[#allocation7 + $0x74] ss:$8 sps:$4 sm:$0xff]   ;;  %v7115_v20 = vld [vmem:[#allocation7 + $0x70] ss:$8 sps:$4 sm:$0xff]  }
 0x4a5   : > { %5166 = vmatprep.subr.bf16.mxu1 %v7036_v11  ;;  %v7120_v11 = vld [vmem:[#allocation7 + $0x64] ss:$8 sps:$4 sm:$0xff]  }
 0x4a7   : > { %5126 = vmatpush1.bf16.msra.mxu0 %v7031_v22 }
 0x4a8   : > { %5167 = vmatpush1.bf16.msra.mxu1 %v7034_v15  ;;  %5127 = vmatprep.subr.bf16.mxu0 %v7039_v6  ;;  %v7118_v6 = vld [vmem:[#allocation7 + $0x60] ss:$8 sps:$4 sm:$0xff]  }
 0x4a9   : > { %5168 = vmatprep.subr.bf16.mxu1 %v7042_v47 }
 0x4ab   : > { %5128 = vmatpush1.bf16.msra.mxu0 %v7037_v13 }
 0x4ac   : > { %5169 = vmatpush1.bf16.msra.mxu1 %v7040_v17  ;;  %5129 = vmatprep.subr.bf16.mxu0 %v7045_v21  ;;  %v7123_v17 = vld [vmem:[#allocation7 + $0x54] ss:$8 sps:$4 sm:$0xff]  }
 0x4ad   : > { %5170 = vmatprep.subr.bf16.mxu1 %v7048_v5 }
 0x4af   : > { %5130 = vmatpush1.bf16.msra.mxu0 %v7043_v34  ;;  %v7121_v34 = vld [vmem:[#allocation7 + $0x50] ss:$8 sps:$4 sm:$0xff]  }
 0x4b0   : > { %5171 = vmatpush1.bf16.msra.mxu1 %v7046_v59  ;;  %5131 = vmatprep.subr.bf16.mxu0 %v7051_v19 }
 0x4b1   : > { %5172 = vmatprep.subr.bf16.mxu1 %v7054_v0  ;;  %v7126_v0 = vld [vmem:[#allocation7 + $0x44] ss:$8 sps:$4 sm:$0xff]  }
 0x4b3   : > { %5132 = vmatpush1.bf16.msra.mxu0 %v7049_v1  ;;  %v7163_v1 = vld [vmem:[#allocation7 + $0x170] ss:$8 sps:$4 sm:$0xff]  }
 0x4b4   : > { %5173 = vmatpush1.bf16.msra.mxu1 %v7052_v63  ;;  %5133 = vmatprep.subr.bf16.mxu0 %v7057_v25  ;;  %v7168_v63 = vld [vmem:[#allocation7 + $0x164] ss:$8 sps:$4 sm:$0xff]   ;;  %v7166_v25 = vld [vmem:[#allocation7 + $0x160] ss:$8 sps:$4 sm:$0xff]  }
 0x4b5   : > { %5174 = vmatprep.subr.bf16.mxu1 %v7060_v7  ;;  %v7129_v7 = vld [vmem:[#allocation7 + $0x34] ss:$8 sps:$4 sm:$0xff]  }
 0x4b7   : > { %5134 = vmatpush1.bf16.msra.mxu0 %v7055_v35  ;;  %v7171_v35 = vld [vmem:[#allocation7 + $0x154] ss:$8 sps:$4 sm:$0xff]  }
 0x4b8   : > { %5175 = vmatpush1.bf16.msra.mxu1 %v7058_v30  ;;  %5135 = vmatprep.subr.bf16.mxu0 %v7063_v57  ;;  %v7127_v30 = vld [vmem:[#allocation7 + $0x30] ss:$8 sps:$4 sm:$0xff]  }
 0x4b9   : > { %5176 = vmatprep.subr.bf16.mxu1 %v7066_v23  ;;  %v7169_v57 = vld [vmem:[#allocation7 + $0x150] ss:$8 sps:$4 sm:$0xff]   ;;  %v7132_v23 = vld [vmem:[#allocation7 + $0x24] ss:$8 sps:$4 sm:$0xff]  }
 0x4bb   : > { %5136 = vmatpush1.bf16.msra.mxu0 %v7061_v27  ;;  %v7174_v27 = vld [vmem:[#allocation7 + $0x144] ss:$8 sps:$4 sm:$0xff]  }
 0x4bc   : > { %5177 = vmatpush1.bf16.msra.mxu1 %v7064_v36  ;;  %5137 = vmatprep.subr.bf16.mxu0 %v7069_v18  ;;  %v7130_v36 = vld [vmem:[#allocation7 + $0x20] ss:$8 sps:$4 sm:$0xff]  }
 0x4bd   : > { %5178 = vmatprep.subr.bf16.mxu1 %v7072_v9  ;;  %v7172_v18 = vld [vmem:[#allocation7 + $0x140] ss:$8 sps:$4 sm:$0xff]   ;;  %v7135_v9 = vld [vmem:[#allocation7 + $0x14] ss:$8 sps:$4 sm:$0xff]  }
 0x4bf   : > { %5138 = vmatpush2.bf16.msra.mxu0 %v7067_v37  ;;  %v7177_v37 = vld [vmem:[#allocation7 + $0x134] ss:$8 sps:$4 sm:$0xff]  }
 0x4c0   : > { %5179 = vmatpush2.bf16.msra.mxu1 %v7070_v16  ;;  %5139 = vmatprep.subr.bf16.mxu0 %v7075_v43  ;;  %v7133_v16 = vld [vmem:[#allocation7 + $0x10] ss:$8 sps:$4 sm:$0xff]  }
 0x4c1   : > { %5180 = vmatprep.subr.bf16.mxu1 %v7078_v45  ;;  %v7175_v43 = vld [vmem:[#allocation7 + $0x130] ss:$8 sps:$4 sm:$0xff]   ;;  %v7138_v45 = vld [vmem:[#allocation7 + $0x4] ss:$8 sps:$4 sm:$0xff]  }
 0x4c3   : > { %5140 = vmatpush2.bf16.msra.mxu0 %v7073_v40  ;;  %v7180_v40 = vld [vmem:[#allocation7 + $0x124] ss:$8 sps:$4 sm:$0xff]  }
 0x4c4   : > { %5181 = vmatpush2.bf16.msra.mxu1 %v7076_v31  ;;  %5141 = vmatprep.subr.bf16.mxu0 %v7081_v28  ;;  %v7136_v31 = vld [vmem:[#allocation7] ss:$8 sps:$4 sm:$0xff]  }
 0x4c5   : > { %5182 = vmatprep.subr.bf16.mxu1 %v7084_v46  ;;  %v7178_v28 = vld [vmem:[#allocation7 + $0x120] ss:$8 sps:$4 sm:$0xff]   ;;  %v7141_v46 = vld [vmem:[#allocation7 + $0xf4] ss:$8 sps:$4 sm:$0xff]  }
 0x4c7   : > { %5142 = vmatpush2.bf16.msra.mxu0 %v7079_v32  ;;  %v7183_v32 = vld [vmem:[#allocation7 + $0x114] ss:$8 sps:$4 sm:$0xff]  }
 0x4c8   : > { %5183 = vmatpush2.bf16.msra.mxu1 %v7082_v48  ;;  %5143 = vmatprep.subr.bf16.mxu0 %v7087_v26  ;;  %v7139_v48 = vld [vmem:[#allocation7 + $0xf0] ss:$8 sps:$4 sm:$0xff]  }
 0x4c9   : > { %5184 = vmatprep.subr.bf16.mxu1 %v7090_v49  ;;  %v7181_v26 = vld [vmem:[#allocation7 + $0x110] ss:$8 sps:$4 sm:$0xff]   ;;  %v7144_v49 = vld [vmem:[#allocation7 + $0xe4] ss:$8 sps:$4 sm:$0xff]  }
 0x4cb   : > { %5144 = vmatpush2.bf16.msra.mxu0 %v7085_v44  ;;  %v7186_v44 = vld [vmem:[#allocation7 + $0x104] ss:$8 sps:$4 sm:$0xff]  }
 0x4cc   : > { %5185 = vmatpush2.bf16.msra.mxu1 %v7088_v33  ;;  %5145 = vmatprep.subr.bf16.mxu0 %v7093_v41  ;;  %v7142_v33 = vld [vmem:[#allocation7 + $0xe0] ss:$8 sps:$4 sm:$0xff]  }
 0x4cd   : > { %5186 = vmatprep.subr.bf16.mxu1 %v7096_v24  ;;  %v7184_v41 = vld [vmem:[#allocation7 + $0x100] ss:$8 sps:$4 sm:$0xff]   ;;  %v7147_v24 = vld [vmem:[#allocation7 + $0xd4] ss:$8 sps:$4 sm:$0xff]  }
 0x4cf   : > { %5146 = vmatpush2.bf16.msra.mxu0 %v7091_v51  ;;  %v7189_v51 = vld [vmem:[#allocation7 + $0x1f4] ss:$8 sps:$4 sm:$0xff]  }
 0x4d0   : > { %5187 = vmatpush2.bf16.msra.mxu1 %v7094_v52  ;;  %5147 = vmatprep.subr.bf16.mxu0 %v7099_v55  ;;  %v7145_v52 = vld [vmem:[#allocation7 + $0xd0] ss:$8 sps:$4 sm:$0xff]  }
 0x4d1   : > { %5188 = vmatprep.subr.bf16.mxu1 %v7102_v56  ;;  %v7187_v55 = vld [vmem:[#allocation7 + $0x1f0] ss:$8 sps:$4 sm:$0xff]   ;;  %v7150_v56 = vld [vmem:[#allocation7 + $0xc4] ss:$8 sps:$4 sm:$0xff]  }
 0x4d3   : > { %5148 = vmatpush2.bf16.msra.mxu0 %v7097_v58  ;;  %v7192_v58 = vld [vmem:[#allocation7 + $0x1e4] ss:$8 sps:$4 sm:$0xff]  }
 0x4d4   : > { %5189 = vmatpush2.bf16.msra.mxu1 %v7100_v60  ;;  %5149 = vmatprep.subr.bf16.mxu0 %v7105_v61  ;;  %v7148_v60 = vld [vmem:[#allocation7 + $0xc0] ss:$8 sps:$4 sm:$0xff]  }
 0x4d5   : > { %5190 = vmatprep.subr.bf16.mxu1 %v7108_v38  ;;  %v7190_v61 = vld [vmem:[#allocation7 + $0x1e0] ss:$8 sps:$4 sm:$0xff]   ;;  %v7153_v38 = vld [vmem:[#allocation7 + $0xb4] ss:$8 sps:$4 sm:$0xff]  }
 0x4d7   : > { %5150 = vmatpush2.bf16.msra.mxu0 %v7103_v62  ;;  %v7195_v62 = vld [vmem:[#allocation7 + $0x1d4] ss:$8 sps:$4 sm:$0xff]  }
 0x4d8   : > { %5191 = vmatpush2.bf16.msra.mxu1 %v7106_v2  ;;  %5151 = vmatprep.subr.bf16.mxu0 %v7111_v3  ;;  %v7151_v2 = vld [vmem:[#allocation7 + $0xb0] ss:$8 sps:$4 sm:$0xff]  }
 0x4d9   : > { %5192 = vmatprep.subr.bf16.mxu1 %v7114_v8  ;;  %v7193_v3 = vld [vmem:[#allocation7 + $0x1d0] ss:$8 sps:$4 sm:$0xff]   ;;  %v7156_v8 = vld [vmem:[#allocation7 + $0xa4] ss:$8 sps:$4 sm:$0xff]  }
 0x4db   : > { %5152 = vmatpush2.bf16.msra.mxu0 %v7109_v10  ;;  %v7198_v10 = vld [vmem:[#allocation7 + $0x1c4] ss:$8 sps:$4 sm:$0xff]  }
 0x4dc   : > { %5193 = vmatpush2.bf16.msra.mxu1 %v7112_v12  ;;  %5607 = vmatprep.subr.bf16.mxu0 %v7117_v54  ;;  %v7154_v12 = vld [vmem:[#allocation7 + $0xa0] ss:$8 sps:$4 sm:$0xff]  }
 0x4dd   : > { %v7196_v54 = vld [vmem:[#allocation7 + $0x1c0] ss:$8 sps:$4 sm:$0xff]  }
 0x4de   : > { %v8329_v22 = vpop.f32.mrf.mxu0  ;;  %5154 = vmatmul.mubr.bf16.vlgmr.msra.gmra.mxu0 %v8317_v4  ;;  %v7165_v4 = vld [vmem:[#allocation7 + $0x174] ss:$8 sps:$4 sm:$0xff]  }
 0x4df   : > { %v8331_v15 = vpop.f32.mrf.mxu1  ;;  %5195 = vmatmul.mubr.bf16.vlgmr.msra.gmra.mxu1 %v8319_v39  ;;  %5608 = vmatpush1.bf16.msra.mxu0 %v7115_v20  ;;  %v7124_v39 = vld [vmem:[#allocation7 + $0x40] ss:$8 sps:$4 sm:$0xff]   ;;  %v7159_v20 = vld [vmem:[#allocation7 + $0x94] ss:$8 sps:$4 sm:$0xff]  }
 0x4e0   : > { %v8335_v47 = vpop.f32.mrf.mxu0  ;;  %5609 = vmatprep.subr.bf16.mxu0 %v7120_v11  ;;  %5648 = vmatprep.subr.bf16.mxu1 %v7165_v4  ;;  %v7201_v11 = vld [vmem:[#allocation7 + $0x1b4] ss:$8 sps:$4 sm:$0xff]   ;;  %v7204_v4 = vld [vmem:[#allocation7 + $0x1a4] ss:$8 sps:$4 sm:$0xff]  }
 0x4e1   : > { %v8337_v13 = vpop.f32.mrf.mxu1  ;;  %5649 = vmatpush1.bf16.msra.mxu1 %v7163_v1 }
 0x4e2   : > { %v4913_v21 = vpop.f32.mrf.mxu0  ;;  %5650 = vmatprep.subr.bf16.mxu1 %v7168_v63 }
 0x4e3   : > { %v4954_v5 = vpop.f32.mrf.mxu1  ;;  %5610 = vmatpush1.bf16.msra.mxu0 %v7118_v6  ;;  %v8342_v6 = vld [vmem:[%s8518_s12] sm:$0xf]  ;;  %v7199_v21 = vld [vmem:[#allocation7 + $0x1b0] ss:$8 sps:$4 sm:$0xff]  }
 0x4e4   : > { %v4914_v59 = vpop.f32.mrf.mxu0  ;;  %5611 = vmatprep.subr.bf16.mxu0 %v7123_v17  ;;  %v7157_v17 = vld [vmem:[#allocation7 + $0x90] ss:$8 sps:$4 sm:$0xff]   ;;  %v7162_v5 = vld [vmem:[#allocation7 + $0x84] ss:$8 sps:$4 sm:$0xff]  }
 0x4e5   : > { %v4955_v19 = vpop.f32.mrf.mxu1  ;;  %5651 = vmatpush1.bf16.msra.mxu1 %v7166_v25  ;;  %v3582_v59 = vrot.slane %v8342_v6, %v8263_v29 }
 0x4e6   : > { %5652 = vmatprep.subr.bf16.mxu1 %v7171_v35  ;;  %v7160_v19 = vld [vmem:[#allocation7 + $0x80] ss:$8 sps:$4 sm:$0xff]  }
 0x4e7   : > { %5612 = vmatpush1.bf16.msra.mxu0 %v7121_v34  ;;  %v3578_v34 = vrot.slane %v8342_v6, %v8282_v50  ;;  %v4912_v1 = vadd.f32 %v8335_v47, %v3582_v59 }
 0x4e8   : > { %5613 = vmatprep.subr.bf16.mxu0 %v7126_v0 }
 0x4e9   : > { %5653 = vmatpush1.bf16.msra.mxu1 %v7169_v57  ;;  %v4910_v0 = vadd.f32 %v8329_v22, %v3578_v34  ;;  %v4953_v35 = vadd.f32 %v8337_v13, %v4912_v1  ;;  %v7205_v22 = vld [vmem:[#allocation7 + $0x190] ss:$8 sps:$4 sm:$0xff]  }
 0x4ea   : > { %5654 = vmatprep.subr.bf16.mxu1 %v7174_v27  ;;  %v7207_v27 = vld [vmem:[#allocation7 + $0x194] ss:$8 sps:$4 sm:$0xff]  }
 0x4eb   : > { %5614 = vmatpush1.bf16.msra.mxu0 %v7124_v39  ;;  %v4951_v63 = vadd.f32 %v8331_v15, %v4910_v0  ;;  %v7202_v39 = vld [vmem:[#allocation7 + $0x1a0] ss:$8 sps:$4 sm:$0xff]  }
 0x4ec   : > { %5615 = vmatprep.subr.bf16.mxu0 %v7129_v7 }
 0x4ed   : > { %5655 = vmatpush1.bf16.msra.mxu1 %v7172_v18 }
 0x4ee   : > { %5656 = vmatprep.subr.bf16.mxu1 %v7177_v37 }
 0x4ef   : > { %5616 = vmatpush1.bf16.msra.mxu0 %v7127_v30 }
 0x4f0   : > { %5617 = vmatprep.subr.bf16.mxu0 %v7132_v23 }
 0x4f1   : > { %5657 = vmatpush1.bf16.msra.mxu1 %v7175_v43 }
 0x4f2   : > { %5658 = vmatprep.subr.bf16.mxu1 %v7180_v40 }
 0x4f3   : > { %5618 = vmatpush1.bf16.msra.mxu0 %v7130_v36 }
 0x4f4   : > { %5619 = vmatprep.subr.bf16.mxu0 %v7135_v9 }
 0x4f5   : > { %5659 = vmatpush1.bf16.msra.mxu1 %v7178_v28 }
 0x4f6   : > { %5660 = vmatprep.subr.bf16.mxu1 %v7183_v32 }
 0x4f7   : > { %5620 = vmatpush1.bf16.msra.mxu0 %v7133_v16 }
 0x4f8   : > { %5621 = vmatprep.subr.bf16.mxu0 %v7138_v45  ;;  %v7210_v45 = vld [vmem:[#allocation7 + $0x184] ss:$8 sps:$4 sm:$0xff]  }
 0x4f9   : > { %5661 = vmatpush1.bf16.msra.mxu1 %v7181_v26 }
 0x4fa   : > { %5662 = vmatprep.subr.bf16.mxu1 %v7186_v44 }
 0x4fb   : > { %5622 = vmatpush1.bf16.msra.mxu0 %v7136_v31  ;;  %v7208_v31 = vld [vmem:[#allocation7 + $0x180] ss:$8 sps:$4 sm:$0xff]  }
 0x4fc   : > { %5623 = vmatprep.subr.bf16.mxu0 %v7141_v46 }
 0x4fd   : > { %5663 = vmatpush1.bf16.msra.mxu1 %v7184_v41 }
 0x4fe   : > { %5664 = vmatprep.subr.bf16.mxu1 %v7189_v51  ;;  %v7212_v51 = vld [vmem:[%s8519_s10 + $0x38] sm:$0xff]  }
 0x4ff   : > { %5624 = vmatpush2.bf16.msra.mxu0 %v7139_v48 }
 0x500   : > { %5625 = vmatprep.subr.bf16.mxu0 %v7144_v49 }
 0x501   : > { %5665 = vmatpush2.bf16.msra.mxu1 %v7187_v55  ;;  %v7214_v55 = vld [vmem:[%s8519_s10 + $0x30] sm:$0xff]  }
 0x502   : > { %5666 = vmatprep.subr.bf16.mxu1 %v7192_v58  ;;  %v7216_v58 = vld [vmem:[%s8519_s10 + $0x28] sm:$0xff]  }
 0x503   : > { %5626 = vmatpush2.bf16.msra.mxu0 %v7142_v33 }
 0x504   : > { %5627 = vmatprep.subr.bf16.mxu0 %v7147_v24  ;;  %v7211_v24 = vld [vmem:[%s8519_s10 + $0x78] sm:$0xff]  }
 0x505   : > { %5667 = vmatpush2.bf16.msra.mxu1 %v7190_v61  ;;  %v7218_v61 = vld [vmem:[%s8519_s10 + $0x20] sm:$0xff]  }
 0x506   : > { %5668 = vmatprep.subr.bf16.mxu1 %v7195_v62  ;;  %v7220_v62 = vld [vmem:[%s8519_s10 + $0x18] sm:$0xff]  }
 0x507   : > { %5628 = vmatpush2.bf16.msra.mxu0 %v7145_v52  ;;  %v7213_v52 = vld [vmem:[%s8519_s10 + $0x70] sm:$0xff]  }
 0x508   : > { %5629 = vmatprep.subr.bf16.mxu0 %v7150_v56  ;;  %v7215_v56 = vld [vmem:[%s8519_s10 + $0x68] sm:$0xff]  }
 0x509   : > { %5669 = vmatpush2.bf16.msra.mxu1 %v7193_v3  ;;  %v7222_v3 = vld [vmem:[%s8519_s10 + $0x10] sm:$0xff]  }
 0x50a   : > { %5670 = vmatprep.subr.bf16.mxu1 %v7198_v10  ;;  %v3590_v10 = vrot.slane %v8342_v6, %v3267_v53 }
 0x50b   : > { %5630 = vmatpush2.bf16.msra.mxu0 %v7148_v60  ;;  %v7217_v60 = vld [vmem:[%s8519_s10 + $0x60] sm:$0xff]  }
 0x50c   : > { %5631 = vmatprep.subr.bf16.mxu0 %v7153_v38  ;;  %v7219_v38 = vld [vmem:[%s8519_s10 + $0x58] sm:$0xff]  }
 0x50d   : > { %5671 = vmatpush2.bf16.msra.mxu1 %v7196_v54 }
 0x50e   : > { %5672 = vmatprep.subr.bf16.mxu1 %v7201_v11 }
 0x50f   : > { %5632 = vmatpush2.bf16.msra.mxu0 %v7151_v2  ;;  %v7221_v2 = vld [vmem:[%s8519_s10 + $0x50] sm:$0xff]  }
 0x510   : > { %5633 = vmatprep.subr.bf16.mxu0 %v7156_v8  ;;  %v3586_v8 = vrot.slane %v8342_v6, %v3263_v42 }
 0x511   : > { %5673 = vmatpush2.bf16.msra.mxu1 %v7199_v21 }
 0x512   : > { %5674 = vmatprep.subr.bf16.mxu1 %v7204_v4 }
 0x513   : > { %5634 = vmatpush2.bf16.msra.mxu0 %v7154_v12 }
 0x514   : > { %5635 = vmatprep.subr.bf16.mxu0 %v7159_v20 }
 0x515   : > { %5675 = vmatpush2.bf16.msra.mxu1 %v7202_v39 }
 0x516   : > { %5676 = vmatprep.subr.bf16.mxu1 %v7207_v27  ;;  %v7225_v27 = vld [vmem:[%s8519_s10 + $0x40] sm:$0xff]  }
 0x517   : > { %5636 = vmatpush2.bf16.msra.mxu0 %v7157_v17 }
 0x518   : > { %5637 = vmatprep.subr.bf16.mxu0 %v7162_v5 }
 0x519   : > { %5677 = vmatpush2.bf16.msra.mxu1 %v7205_v22  ;;  %v5275_v22 = vld [vmem:[%s8520_s6] sm:$0x3] }
 0x51a   : > { %5678 = vmatprep.subr.bf16.mxu1 %v7210_v45 }
 0x51b   : > { %5638 = vmatpush2.bf16.msra.mxu0 %v7160_v19 }
 0x51c   : > { %6500 = vmatprep.subr.bf16.mxu0 %v7211_v24 }
 0x51d   : > { %5679 = vmatpush2.bf16.msra.mxu1 %v7208_v31 }
 0x51e   : > { %v4991_v25 = vpop.f32.mrf.mxu0 }
 0x51f   : > { %v5032_v7 = vpop.f32.mrf.mxu1  ;;  %v4992_v30 = vadd.f32 %v4991_v25, %v4951_v63 }
 0x520   : > { %v4993_v57 = vpop.f32.mrf.mxu0 }
 0x521   : > { %v5034_v23 = vpop.f32.mrf.mxu1  ;;  %v5033_v36 = vadd.f32 %v5032_v7, %v4992_v30  ;;  %v4994_v18 = vadd.f32 %v4993_v57, %v4953_v35  ;;  %v7223_v35 = vld [vmem:[%s8519_s10 + $0x48] sm:$0xff]  }
 0x522   : > { %v4995_v9 = vpop.f32.mrf.mxu0  ;;  %v7224_v30 = vld [vmem:[%s8519_s10 + $0x8] sm:$0xff]  }
 0x523   : > { %v5036_v47 = vpop.f32.mrf.mxu1  ;;  %v5035_v37 = vadd.f32 %v5034_v23, %v4994_v18  ;;  %v5203_v15 = vmax.f32 %v5033_v36, 0.0  ;;  %v7226_v36 = vld [vmem:[%s8519_s10] sm:$0xff]   ;;  %v5280_v9 = vrot.slane %v5275_v22, %v8282_v50 }
 0x524   : > { %v4996_v16 = vpop.f32.mrf.mxu0  ;;  %v5284_v47 = vrot.slane %v5275_v22, %v8263_v29  ;;  %v6441_v29 = vld [vmem:[%s8521_s8] ss:$0 sm:$0xff] }
 0x525   : > { %v5037_v43 = vpop.f32.mrf.mxu1  ;;  %v5204_v40 = vmax.f32 %v5035_v37, 0.0  ;;  %v5207_v28 = vpack.c.bf16 %v5203_v15, %v5203_v15 }
 0x527   : > { %v5208_v13 = vpack.c.bf16 %v5204_v40, %v5204_v40 }
 0x529   : > { %5639 = vmatprep.mubr.bf16.mxu0 %v5208_v13 }
 0x52a   : > { %5640 = vmatmul.mubr.bf16.vlgmr.msra.gmra.mxu0 %v5207_v28 }
 0x52b   : > { %6501 = vmatpush3.bf16.msra.mxu0 %v7212_v51 }
 0x52c   : > { %6502 = vmatprep.subr.bf16.mxu0 %v7213_v52 }
 0x52f   : > { %6503 = vmatpush3.bf16.msra.mxu0 %v7214_v55 }
 0x530   : > { %6504 = vmatprep.subr.bf16.mxu0 %v7215_v56 }
 0x533   : > { %6505 = vmatpush3.bf16.msra.mxu0 %v7216_v58 }
 0x534   : > { %6506 = vmatprep.subr.bf16.mxu0 %v7217_v60 }
 0x537   : > { %6507 = vmatpush3.bf16.msra.mxu0 %v7218_v61 }
 0x538   : > { %6508 = vmatprep.subr.bf16.mxu0 %v7219_v38 }
 0x53b   : > { %6509 = vmatpush3.bf16.msra.mxu0 %v7220_v62 }
 0x53c   : > { %6510 = vmatprep.subr.bf16.mxu0 %v7221_v2 }
 0x53f   : > { %6511 = vmatpush3.bf16.msra.mxu0 %v7222_v3 }
 0x540   : > { %6512 = vmatprep.subr.bf16.mxu0 %v7223_v35 }
 0x543   : > { %6513 = vmatpush3.bf16.msra.mxu0 %v7224_v30 }
 0x544   : > { %6514 = vmatprep.subr.bf16.mxu0 %v7225_v27 }
 0x547   : > { %6515 = vmatpush3.bf16.msra.mxu0 %v7226_v36 }
 0x55e   : > { %v5073_v46 = vpop.f32.mrf.mxu0 }
 0x55f   : > { %v5114_v32 = vpop.f32.mrf.mxu1  ;;  %v5074_v12 = vadd.f32 %v5073_v46, %v3586_v8 }
 0x560   : > { %v5075_v48 = vpop.f32.mrf.mxu0 }
 0x561   : > { %v5116_v26 = vpop.f32.mrf.mxu1  ;;  %v5076_v54 = vadd.f32 %v5075_v48, %v3590_v10  ;;  %v5115_v20 = vadd.f32 %v5114_v32, %v5074_v12 }
 0x562   : > { %v5077_v49 = vpop.f32.mrf.mxu0 }
 0x563   : > { %v5118_v44 = vpop.f32.mrf.mxu1  ;;  %v5117_v21 = vadd.f32 %v5116_v26, %v5076_v54 }
 0x564   : > { %v5078_v33 = vpop.f32.mrf.mxu0 }
 0x565   : > { %v5119_v41 = vpop.f32.mrf.mxu1 }
 0x59e   : > { %v5155_v11 = vpop.f32.mrf.mxu0 }
 0x59f   : > { %v5196_v17 = vpop.f32.mrf.mxu1  ;;  %v5156_v5 = vadd.f32 %v5155_v11, %v5115_v20 }
 0x5a0   : > { %v5157_v34 = vpop.f32.mrf.mxu0 }
 0x5a1   : > { %v5198_v59 = vpop.f32.mrf.mxu1  ;;  %v5197_v19 = vadd.f32 %v5196_v17, %v5156_v5  ;;  %v5158_v0 = vadd.f32 %v5157_v34, %v5117_v21 }
 0x5a2   : > { %v5159_v1 = vpop.f32.mrf.mxu0 }
 0x5a3   : > { %v5200_v4 = vpop.f32.mrf.mxu1  ;;  %v5199_v63 = vadd.f32 %v5198_v59, %v5158_v0  ;;  %v5205_v39 = vmax.f32 %v5197_v19, 0.0 }
 0x5a4   : > { %v5160_v42 = vpop.f32.mrf.mxu0 }
 0x5a5   : > { %v5201_v25 = vpop.f32.mrf.mxu1  ;;  %v5206_v14 = vmax.f32 %v5199_v63, 0.0  ;;  %v5209_v53 = vpack.c.bf16 %v5205_v39, %v5205_v39 }
 0x5a7   : > { %v5210_v7 = vpack.c.bf16 %v5206_v14, %v5206_v14 }
 0x5a9   : > { %5680 = vmatprep.mubr.bf16.mxu1 %v5210_v7 }
 0x5aa   : > { %5681 = vmatmul.mubr.bf16.vlgmr.msra.gmra.mxu1 %v5209_v53 }
 0x5ea   : > { %v5641_v6 = vpop.f32.mrf.mxu0 }
 0x5eb   : > { %v5642_v37 = vadd.f32 %v5641_v6, %v5280_v9 }
 0x5ec   : > { %v5643_v57 = vpop.f32.mrf.mxu0 }
 0x5ed   : > { %v5644_v16 = vadd.f32 %v5643_v57, %v5284_v47 }
 0x5ee   : > { %v5645_v23 = vpop.f32.mrf.mxu0 }
 0x5f0   : > { %v5646_v18 = vpop.f32.mrf.mxu0 }
 0x66a   : > { %v5682_v15 = vpop.f32.mrf.mxu1 }
 0x66b   : > { %v5683_v43 = vadd.f32 %v5682_v15, %v5642_v37 }
 0x66c   : > { %v5684_v45 = vpop.f32.mrf.mxu1 }
 0x66d   : > { %v5685_v40 = vadd.f32 %v5684_v45, %v5644_v16  ;;  %v5689_v31 = vmax.f32 %v5683_v43, 0.0 }
 0x66e   : > { %v5686_v13 = vpop.f32.mrf.mxu1 }
 0x66f   : > { %v5690_v28 = vmax.f32 %v5685_v40, 0.0  ;;  %v5691_v48 = vpack.c.bf16 %v5689_v31, %v5689_v31 }
 0x670   : > { %v5687_v46 = vpop.f32.mrf.mxu1 }
 0x671   : > { %v5692_v32 = vpack.c.bf16 %v5690_v28, %v5690_v28 }
 0x673   : > { %5860 = vmatprep.mubr.bf16.mxu0 %v5692_v32 }
 0x674   : > { %5861 = vmatmul.mubr.bf16.vlgmr.msra.gmra.mxu0 %v5691_v48 }
 0x734   : > { %v6516_v26 = vpop.f32.mrf.mxu0 }
 0x736   : > { %v6517_v50 = vpop.f32.mrf.mxu0 }
 0x737   : > { %v6518_v49 = vadd.f32 %v6517_v50, %v6516_v26 }
 0x738   : > { %v6519_v44 = vpop.f32.mrf.mxu0 }
 0x739   : > { %v5863_v33 = vadd.f32 %v6518_v49, %v6441_v29 }
 0x73a   : > { %v6520_v41 = vpop.f32.mrf.mxu0 }
 0x73b   : > { %5869 = vst.msk [vmem:[%s653_s28] sm:$0xff] %vm5868_vm10, %v5863_v33 }
 0x73c PF: > { %s8522_s11 = sld [smem:[#allocation15_spill]]  ;;  %s5884_s25 = sshll.u32 %s653_s28, 4  ;;  %s5885_s25 = int_to_ptr.vmem [resolvable:$true] %s5884_s25 }
 0x73d   : > { %s8523_s18 = sld [smem:[#allocation27_spill]]  ;;  %s5871_s7 = scalar_lea.sflag [#allocation6], %s651_s19 }
 0x73e   : > { %s7279_s27 = scalar_lea.vmem %s5885_s25, 128  ;;  %p8524_p2 = scmp.ne.s32.totalorder %s8507_s14, 0 }
 0x73f   : > { %p7280_p1 = scmp.ne.s32.totalorder %s5885_s25, %s7279_s27  ;;  %s7405_s24 = smov [#allocation9]  }
 0x740   : > { %s7283_s6 = sshll.u32 %s7405_s24, 4  ;;  %s7284_s6 = int_to_ptr.vmem [resolvable:$false] %s7283_s6 }
 0x741   : > { %p7281_p5 = pnand %p7280_p1, %p8524_p2  ;;  %s7285_s23 = scalar_lea.vmem %s7284_s6, 256 }
 0x742   : > { %s6459_s21 = sshll.u32 %s8522_s11, 7  ;;  %p7286_p0 = scmp.lt.s32.totalorder %s5885_s25, %s7284_s6 }
 0x743   : > { %s5882_s13 = scalar_lea.hbm %s8523_s18, %s6459_s21  ;;  %p7282_p6 = pneg %p7281_p5 }
 0x744   : > { %p7287_p4 = scmp.lt.s32.totalorder %s7285_s23, %s7279_s27 }
 0x746   : > { %p7288_p8 = por %p7287_p4, %p7286_p0 }
 0x748   : > { %p7289_p9 = pnand %p7288_p8, %p7282_p6 }
 0x74a   : > { %7292 = shalt.err (!%p7289_p9)
}
 0x74b   : > { %s7293_s30 = scalar_lea.hbm %s5882_s13, 128  ;;  %s7297_s28 = scalar_lea.hbm %s8523_s18, 256 }
 0x74c   : > { %p7294_p11 = scmp.ne.s32.totalorder %s5882_s13, %s7293_s30  ;;  %p7298_p3 = scmp.lt.s32.totalorder %s5882_s13, %s8523_s18 }
 0x74d   : > { %p7299_p7 = scmp.lt.s32.totalorder %s7297_s28, %s7293_s30 }
 0x74e   : > { %p7295_p10 = pnand %p7294_p11, %p8524_p2 }
 0x74f   : > { %p7300_p12 = por %p7299_p7, %p7298_p3 }
 0x750   : > { %p7296_p13 = pneg %p7295_p10 }
 0x752   : > { %p7301_p1 = pnand %p7300_p12, %p7296_p13 }
 0x754   : > { %7304 = shalt.err (!%p7301_p1)
}
 0x755   : > { %6605 = dma.vmem_to_hbm [thread:$0]  (%p8524_p2), %s5885_s25, 128, %s5882_s13, %s5871_s7  }
 0x756 PF: > { %s8525_s21 = sld [smem:[#allocation13_spill]]  ;;  %p6622_p5 = scmp.ge.s32.totalorder %s7395_s17, 2 }
 0x757   : > { %s8526_s20 = sld [smem:[#allocation18_spill]] }
 0x75c   : > { %s5896_s12 = sand.u32 1, %s8525_s21  }
 0x75d   : > { %p8527_p6 = scmp.ne.s32.totalorder %s8526_s20, 0  ;;  %s5897_s27 = scalar_lea.sflag [#allocation6], %s5896_s12 }
 0x75f   : > { %p6615_p0 = pnand %p6622_p5, %p8527_p6 }
 0x761   : > { %p6616_p4 = pneg %p6615_p0 }
 0x763   : > { %7354 = dma.done.wait (%p6616_p4), %s5897_s27, 128  }
 0x764   : > { %7356 = vsyncadd (%p6616_p4), %s5897_s27, 4294967168  ;;  %s28_s17 = sadd.s32 1, %s7395_s17   ;;  %s8528_s24 = sld [smem:[#allocation14_spill]] }
 0x765   : > { %p25_p8 = scmp.ge.s32.totalorder %s28_s17, 6   ;;  %s8529_s27 = sld [smem:[#allocation19_spill]] }
 0x766   : > { %s8530_s14 = sld [smem:[#allocation20_spill]]  ;;  %s8533_s25 = smov %s7363_s26 }
 0x767   : > { %s8531_s13 = sld [smem:[#allocation16_spill]]  ;;  %s8535_s28 = smov %s7375_s29 }
 0x768   : > { %s8532_s7 = sld [smem:[#allocation17_spill]]  ;;  %s8537_s30 = smov %s7387_s15 }
 0x76a   : > { %s8534_s26 = smov %s8528_s24  ;;  %27 = sbr.rel (!%p25_p8) target bundleno = 16 (0x10), region = 170 }
 0x76c   : > { %s8536_s29 = smov %s8530_s14  ;;  %s8538_s14 = smov %s7391_s16 }
 0x76d   : > { %s8539_s15 = smov %s8531_s13 }
 0x76e   : > { %s8540_s16 = smov %s8532_s7 }
 0x76f   :  { %5902 = vsyncpa [#allocation5], 1 }
 0x770   :  { %5904 = vsyncpa [#allocation5 + $0x1], 1 }
 0x771   :  { %5905 = vsyncpa [#allocation8], 1 }
 0x772   :  { %5906 = vsyncpa [#allocation6], 1 }
 0x773   :  { %5908 = vsyncpa [#allocation6 + $0x1], 1 }

</bundles_post_ra>
